<compile_context>
chip_gen: v5e
topology: v5e:2x2
jax: 0.10.0
libtpu: 0.0.40
codegen_flags: <defaults>
</compile_context>

<pallas_src>
import functools

import jax
import jax.numpy as jnp
from jax.experimental import pallas as pl
from jax.experimental.pallas import tpu as pltpu


# ----------------------------------------------------------------------------
# Fused Pallas kernel: propagation layers + concat + gather + BPR loss
# ----------------------------------------------------------------------------
def ngcf_fused_kernel(users_ref, pos_ref, neg_ref,     # scalar-prefetch (SMEM)
                      l_ref, e0_ref, *rest,            # tensors, out, scratch
                      num_layers, batch, l2_reg):
    w_refs = rest[:2 * num_layers]          # (W12, b12) per layer
    loss_ref = rest[2 * num_layers]         # SMEM (1, 1) scalar output
    all_emb_ref = rest[2 * num_layers + 1]  # VMEM (N, total_d) scratch

    L = l_ref[...]                          # (N, N) bf16 laplacian
    E = e0_ref[...]                         # (N, D) f32 initial embedding
    d0 = E.shape[1]

    # embedding_list[0] = initial (un-normalized) embedding.
    all_emb_ref[:, 0:d0] = E
    col = d0

    for layer in range(num_layers):
        W12 = w_refs[2 * layer + 0][...]    # (2*D_in, D_out) bf16, [W1; W2]
        b12 = w_refs[2 * layer + 1][...]    # (1, D_out)      f32,  b1 + b2

        E_bf = E.astype(jnp.bfloat16)
        # One graph matmul instead of two:  A = L + I  =>  A @ E = L @ E + E.
        l_mul = jnp.dot(L, E_bf, preferred_element_type=jnp.float32)
        a_mul = l_mul + E                   # == A @ E
        affinity = l_mul * E                # == (L @ E) * E

        # Fused feature matmul: [a_mul | affinity] @ [W1; W2] + (b1 + b2).
        # Both halves are 128-wide lane-dense panels -> the concat is just
        # vregs placed side by side; K = 2*D_in fills the 256-wide MXU.
        X = jnp.concatenate([a_mul, affinity], axis=1).astype(jnp.bfloat16)
        z = jnp.dot(X, W12, preferred_element_type=jnp.float32) + b12

        e_new = jnp.maximum(z, 0.2 * z)     # LeakyReLU(0.2): mul+max on VPU
        # TODO(synk): stochastic message dropout omitted (rate = 0 / eval mode).

        # F.normalize(p=2, dim=1): x / max(||x||, 1e-12) == x * rsqrt(max(ss, 1e-24))
        sumsq = jnp.sum(e_new * e_new, axis=1, keepdims=True)
        inv_norm = jax.lax.rsqrt(jnp.maximum(sumsq, 1e-24))  # EUP rsqrt (free slot)

        d_out = e_new.shape[1]
        all_emb_ref[:, col:col + d_out] = e_new * inv_norm
        col += d_out
        E = e_new

    # ------------------------------------------------------------------
    # BPR loss via per-row scalar accumulation: no (batch, total_d) u/p/n
    # tensors, no concatenate, no cross-sublane relayout.  batch is small
    # and static, so a Python loop over rows is fine (scalar live ranges).
    # ------------------------------------------------------------------
    bpr_sum = jnp.float32(0.0)
    uu_sum = jnp.float32(0.0)
    pp_sum = jnp.float32(0.0)
    nn_sum = jnp.float32(0.0)
    for i in range(batch):
        u = all_emb_ref[pl.ds(users_ref[i], 1), :]   # (1, total_d) f32
        p = all_emb_ref[pl.ds(pos_ref[i], 1), :]
        n = all_emb_ref[pl.ds(neg_ref[i], 1), :]

        # diff = <u, p> - <u, n> = <u, p - n>  (one multiply + one reduce)
        diff = jnp.sum(u * (p - n))
        # stable log(sigmoid(x)) = min(x, 0) - log1p(exp(-|x|))
        bpr_sum += jnp.minimum(diff, 0.0) - jnp.log1p(jnp.exp(-jnp.abs(diff)))

        uu_sum += jnp.sum(u * u)
        pp_sum += jnp.sum(p * p)
        nn_sum += jnp.sum(n * n)

    bpr = -bpr_sum / batch
    # Replicates the original code exactly: ||u||^2 + ||p||^2 + ||n|| (un-squared).
    l2norm = (uu_sum + pp_sum + jnp.sqrt(nn_sum)) / 2.0
    loss_ref[0, 0] = bpr + l2_reg * l2norm / batch


# ----------------------------------------------------------------------------
# Wrapper
# ----------------------------------------------------------------------------
def ngcf_forward(params, L, users, pos_items, neg_items, l2_reg):
    """Full NGCF.forward as one fused pallas_call. Returns the scalar loss."""
    num_layers = len(params["layers_cfg"])
    E0 = jnp.concatenate(
        [params["user_embed"], params["item_embed"]], axis=0).astype(jnp.float32)
    N, D = E0.shape
    total_d = D + sum(params["layers_cfg"])
    batch = int(users.shape[0])

    tensor_inputs = [L.astype(jnp.bfloat16), E0]
    for layer in range(num_layers):
        # Fuse the two per-layer feature matmuls: W12 = [W1; W2], b12 = b1 + b2.
        w12 = jnp.concatenate(
            [params[f"W1_{layer}"], params[f"W2_{layer}"]], axis=0)
        b12 = params[f"b1_{layer}"] + params[f"b2_{layer}"]
        tensor_inputs += [w12.astype(jnp.bfloat16), b12.astype(jnp.float32)]

    kernel = functools.partial(
        ngcf_fused_kernel,
        num_layers=num_layers, batch=batch, l2_reg=float(l2_reg))

    vmem = pl.BlockSpec(memory_space=pltpu.MemorySpace.VMEM)
    grid_spec = pltpu.PrefetchScalarGridSpec(
        num_scalar_prefetch=3,                        # users, pos, neg -> SMEM
        grid=(1,),
        in_specs=[vmem] * len(tensor_inputs),
        out_specs=pl.BlockSpec(memory_space=pltpu.MemorySpace.SMEM),
        # TODO(synk): at production N, store this scratch in bf16 and set an
        # explicit vmem_limit_bytes re-derived for v7x's 64 MiB VMEM.
        scratch_shapes=[pltpu.VMEM((N, total_d), jnp.float32)],
    )

    loss = pl.pallas_call(
        kernel,
        out_shape=jax.ShapeDtypeStruct((1, 1), jnp.float32),
        grid_spec=grid_spec,
        compiler_params=pltpu.CompilerParams(
            dimension_semantics=("arbitrary",)),
    )(users.astype(jnp.int32), pos_items.astype(jnp.int32),
      neg_items.astype(jnp.int32), *tensor_inputs)
    return loss[0, 0]


# ----------------------------------------------------------------------------
# Pure-JAX f32 reference (matches the PyTorch module, eval mode)
# ----------------------------------------------------------------------------
def ngcf_reference(params, L, users, pos_items, neg_items, l2_reg):
    N = L.shape[0]
    A = L + jnp.eye(N, dtype=jnp.float32)
    E = jnp.concatenate([params["user_embed"], params["item_embed"]], axis=0)
    emb_list = [E]
    for layer in range(len(params["layers_cfg"])):
        a_mul = A @ E
        l_mul = L @ E
        left = a_mul @ params[f"W1_{layer}"] + params[f"b1_{layer}"]
        right = (l_mul * E) @ params[f"W2_{layer}"] + params[f"b2_{layer}"]
        E = jax.nn.leaky_relu(left + right, negative_slope=0.2)
        norm = jnp.maximum(
            jnp.sqrt(jnp.sum(E * E, axis=1, keepdims=True)), 1e-12)
        emb_list.append(E / norm)
    all_emb = jnp.concatenate(emb_list, axis=1)
    u = all_emb[users]
    p = all_emb[pos_items]
    n = all_emb[neg_items]
    diff = jnp.sum(u * p, axis=1) - jnp.sum(u * n, axis=1)
    bpr = -jnp.mean(jnp.log(jax.nn.sigmoid(diff)))
    l2norm = (jnp.sum(u * u) + jnp.sum(p * p) + jnp.sqrt(jnp.sum(n * n))) / 2.0
    return bpr + l2_reg * l2norm / users.shape[0]


# ----------------------------------------------------------------------------
# Deterministic parameter / graph construction
# ----------------------------------------------------------------------------
def xavier_uniform(key, shape):
    fan_out, fan_in = shape[0], shape[1]
    bound = (6.0 / (fan_in + fan_out)) ** 0.5
    return jax.random.uniform(key, shape, jnp.float32, -bound, bound)


def build_norm_laplacian(key, user_nums, item_nums):
    """Symmetric-normalized bipartite adjacency D^-1/2 R D^-1/2 (dense, small)."""
    N = user_nums + item_nums
    r = (jax.random.uniform(key, (user_nums, item_nums)) < 0.15).astype(jnp.float32)
    adj = jnp.zeros((N, N), jnp.float32)
    adj = adj.at[:user_nums, user_nums:].set(r)
    adj = adj.at[user_nums:, :user_nums].set(r.T)
    deg = jnp.maximum(jnp.sum(adj, axis=1), 1.0)
    d_inv_sqrt = 1.0 / jnp.sqrt(deg)
    L = adj * d_inv_sqrt[:, None] * d_inv_sqrt[None, :]
    return L          # adj_mat = L + I is exploited inside the kernel


if __name__ == "__main__":
    # Small, TPU-friendly synthetic sizes (feature width 128 = lane-dense).
    user_nums = 40
    item_nums = 88
    N = user_nums + item_nums          # 128
    embed_size = 128
    layers_cfg = [128, 128]            # args.layer_size
    l2_reg = 1e-4
    batch = 8

    key = jax.random.PRNGKey(0)
    keys = jax.random.split(key, 16)

    L = build_norm_laplacian(keys[0], user_nums, item_nums)

    params = {
        "layers_cfg": layers_cfg,
        "user_embed": xavier_uniform(keys[1], (user_nums, embed_size)),
        "item_embed": xavier_uniform(keys[2], (item_nums, embed_size)),
    }
    dims = [embed_size] + layers_cfg
    k_idx = 3
    for layer in range(len(layers_cfg)):
        params[f"W1_{layer}"] = xavier_uniform(keys[k_idx], (dims[layer], dims[layer + 1])); k_idx += 1
        params[f"b1_{layer}"] = xavier_uniform(keys[k_idx], (1, dims[layer + 1])); k_idx += 1
        params[f"W2_{layer}"] = xavier_uniform(keys[k_idx], (dims[layer], dims[layer + 1])); k_idx += 1
        params[f"b2_{layer}"] = xavier_uniform(keys[k_idx], (1, dims[layer + 1])); k_idx += 1

    users = jax.random.randint(keys[k_idx], (batch,), 0, user_nums); k_idx += 1
    pos_items = jax.random.randint(keys[k_idx], (batch,), user_nums, N); k_idx += 1
    neg_items = jax.random.randint(keys[k_idx], (batch,), user_nums, N)

    loss = ngcf_forward(params, L, users, pos_items, neg_items, l2_reg)
    loss = jax.block_until_ready(loss)
    assert jnp.isfinite(loss), "loss is not finite"

    # Correctness check vs. f32 reference (loose tolerance: bf16 MXU operands).
    ref = jax.block_until_ready(
        ngcf_reference(params, L, users, pos_items, neg_items, l2_reg))
    assert jnp.abs(loss - ref) <= 5e-2 * jnp.abs(ref) + 1e-2, (loss, ref)

    print("KERNEL_OK")
</pallas_src>

<mosaic_0001>
module attributes {stable_mosaic.version = 11 : i64} {
  func.func @ngcf_fused_kernel(%arg0: i32, %arg1: memref<8xi32, #tpu.memory_space<smem>>, %arg2: memref<8xi32, #tpu.memory_space<smem>>, %arg3: memref<8xi32, #tpu.memory_space<smem>>, %arg4: memref<128x128xbf16, #tpu.memory_space<vmem>>, %arg5: memref<128x128xf32, #tpu.memory_space<vmem>>, %arg6: memref<256x128xbf16, #tpu.memory_space<vmem>>, %arg7: memref<1x128xf32, #tpu.memory_space<vmem>>, %arg8: memref<256x128xbf16, #tpu.memory_space<vmem>>, %arg9: memref<1x128xf32, #tpu.memory_space<vmem>>, %arg10: memref<1x1xf32, #tpu.memory_space<smem>>, %arg11: memref<128x384xf32, #tpu.memory_space<vmem>>) attributes {dimension_semantics = [#tpu.dimension_semantics<arbitrary>], iteration_bounds = array<i64: 1>, scalar_prefetch = 3 : i64, scratch_operands = 1 : i64, tpu.core_type = #tpu.core_type<tc>, window_params = [{pipeline_mode = #tpu.pipeline_mode<synchronous>, transform_indices = @transform_0, window_bounds = array<i64: 128, 128>}, {pipeline_mode = #tpu.pipeline_mode<synchronous>, transform_indices = @transform_1, window_bounds = array<i64: 128, 128>}, {pipeline_mode = #tpu.pipeline_mode<synchronous>, transform_indices = @transform_2, window_bounds = array<i64: 256, 128>}, {pipeline_mode = #tpu.pipeline_mode<synchronous>, transform_indices = @transform_3, window_bounds = array<i64: 1, 128>}, {pipeline_mode = #tpu.pipeline_mode<synchronous>, transform_indices = @transform_4, window_bounds = array<i64: 256, 128>}, {pipeline_mode = #tpu.pipeline_mode<synchronous>, transform_indices = @transform_5, window_bounds = array<i64: 1, 128>}, {transform_indices = @transform_6, window_bounds = array<i64: 1, 1>}]} {
    %c0 = arith.constant 0 : index
    %c0_0 = arith.constant 0 : index
    %0 = vector.load %arg4[%c0, %c0_0] : memref<128x128xbf16, #tpu.memory_space<vmem>>, vector<128x128xbf16>
    %c0_1 = arith.constant 0 : index
    %c0_2 = arith.constant 0 : index
    %1 = vector.load %arg5[%c0_1, %c0_2] : memref<128x128xf32, #tpu.memory_space<vmem>>, vector<128x128xf32>
    %c0_3 = arith.constant 0 : index
    %c0_4 = arith.constant 0 : index
    %2 = vector.load %arg11[%c0_3, %c0_4] : memref<128x384xf32, #tpu.memory_space<vmem>>, vector<128x128xf32>
    tpu.vector_store %arg11[%c0_3, %c0_4], %1 {strides = array<i32>} : memref<128x384xf32, #tpu.memory_space<vmem>>, vector<128x128xf32>,
    %c0_5 = arith.constant 0 : index
    %c0_6 = arith.constant 0 : index
    %3 = vector.load %arg6[%c0_5, %c0_6] : memref<256x128xbf16, #tpu.memory_space<vmem>>, vector<256x128xbf16>
    %c0_7 = arith.constant 0 : index
    %c0_8 = arith.constant 0 : index
    %4 = vector.load %arg7[%c0_7, %c0_8] : memref<1x128xf32, #tpu.memory_space<vmem>>, vector<1x128xf32>
    %5 = arith.truncf %1 : vector<128x128xf32> to vector<128x128xbf16>
    %cst = arith.constant dense<0.000000e+00> : vector<128x128xf32>
    %6 = tpu.matmul %0, %5, %cst {dimension_numbers = #tpu.dot_dimension_numbers<[1], [0], [0], [1], [0, 0, 1, 1], [], []>} : vector<128x128xbf16>, vector<128x128xbf16>, vector<128x128xf32> -> vector<128x128xf32>
    %7 = arith.addf %6, %1 : vector<128x128xf32>
    %8 = arith.mulf %6, %1 : vector<128x128xf32>
    %9 = tpu.concatenate %7, %8 in 1 : vector<128x128xf32>, vector<128x128xf32> -> vector<128x256xf32>
    %10 = arith.truncf %9 : vector<128x256xf32> to vector<128x256xbf16>
    %cst_9 = arith.constant dense<0.000000e+00> : vector<128x128xf32>
    %11 = tpu.matmul %10, %3, %cst_9 {dimension_numbers = #tpu.dot_dimension_numbers<[1], [0], [0], [1], [0, 0, 1, 1], [], []>} : vector<128x256xbf16>, vector<256x128xbf16>, vector<128x128xf32> -> vector<128x128xf32>
    %12 = vector.broadcast %4 : vector<1x128xf32> to vector<128x128xf32>
    %13 = arith.addf %11, %12 : vector<128x128xf32>
    %cst_10 = arith.constant 2.000000e-01 : f32
    %14 = vector.broadcast %cst_10 : f32 to vector<128x128xf32>
    %15 = arith.mulf %14, %13 : vector<128x128xf32>
    %16 = arith.maximumf %13, %15 : vector<128x128xf32>
    %17 = arith.mulf %16, %16 : vector<128x128xf32>
    %cst_11 = arith.constant dense<0.000000e+00> : vector<128xf32>
    %18 = vector.multi_reduction <add>, %17, %cst_11 [1] : vector<128x128xf32> to vector<128xf32>
    %19 = vector.shape_cast %18 : vector<128xf32> to vector<128x1xf32>
    %cst_12 = arith.constant 1.000000e-24 : f32
    %20 = vector.broadcast %cst_12 : f32 to vector<128x1xf32>
    %21 = arith.maximumf %19, %20 : vector<128x1xf32>
    %22 = math.rsqrt %21 : vector<128x1xf32>
    %23 = vector.broadcast %22 : vector<128x1xf32> to vector<128x128xf32>
    %24 = arith.mulf %16, %23 : vector<128x128xf32>
    %c0_13 = arith.constant 0 : index
    %c128 = arith.constant 128 : index
    %25 = vector.load %arg11[%c0_13, %c128] : memref<128x384xf32, #tpu.memory_space<vmem>>, vector<128x128xf32>
    tpu.vector_store %arg11[%c0_13, %c128], %24 {strides = array<i32>} : memref<128x384xf32, #tpu.memory_space<vmem>>, vector<128x128xf32>,
    %c0_14 = arith.constant 0 : index
    %c0_15 = arith.constant 0 : index
    %26 = vector.load %arg8[%c0_14, %c0_15] : memref<256x128xbf16, #tpu.memory_space<vmem>>, vector<256x128xbf16>
    %c0_16 = arith.constant 0 : index
    %c0_17 = arith.constant 0 : index
    %27 = vector.load %arg9[%c0_16, %c0_17] : memref<1x128xf32, #tpu.memory_space<vmem>>, vector<1x128xf32>
    %28 = arith.truncf %16 : vector<128x128xf32> to vector<128x128xbf16>
    %cst_18 = arith.constant dense<0.000000e+00> : vector<128x128xf32>
    %29 = tpu.matmul %0, %28, %cst_18 {dimension_numbers = #tpu.dot_dimension_numbers<[1], [0], [0], [1], [0, 0, 1, 1], [], []>} : vector<128x128xbf16>, vector<128x128xbf16>, vector<128x128xf32> -> vector<128x128xf32>
    %30 = arith.addf %29, %16 : vector<128x128xf32>
    %31 = arith.mulf %29, %16 : vector<128x128xf32>
    %32 = tpu.concatenate %30, %31 in 1 : vector<128x128xf32>, vector<128x128xf32> -> vector<128x256xf32>
    %33 = arith.truncf %32 : vector<128x256xf32> to vector<128x256xbf16>
    %cst_19 = arith.constant dense<0.000000e+00> : vector<128x128xf32>
    %34 = tpu.matmul %33, %26, %cst_19 {dimension_numbers = #tpu.dot_dimension_numbers<[1], [0], [0], [1], [0, 0, 1, 1], [], []>} : vector<128x256xbf16>, vector<256x128xbf16>, vector<128x128xf32> -> vector<128x128xf32>
    %35 = vector.broadcast %27 : vector<1x128xf32> to vector<128x128xf32>
    %36 = arith.addf %34, %35 : vector<128x128xf32>
    %cst_20 = arith.constant 2.000000e-01 : f32
    %37 = vector.broadcast %cst_20 : f32 to vector<128x128xf32>
    %38 = arith.mulf %37, %36 : vector<128x128xf32>
    %39 = arith.maximumf %36, %38 : vector<128x128xf32>
    %40 = arith.mulf %39, %39 : vector<128x128xf32>
    %cst_21 = arith.constant dense<0.000000e+00> : vector<128xf32>
    %41 = vector.multi_reduction <add>, %40, %cst_21 [1] : vector<128x128xf32> to vector<128xf32>
    %42 = vector.shape_cast %41 : vector<128xf32> to vector<128x1xf32>
    %cst_22 = arith.constant 1.000000e-24 : f32
    %43 = vector.broadcast %cst_22 : f32 to vector<128x1xf32>
    %44 = arith.maximumf %42, %43 : vector<128x1xf32>
    %45 = math.rsqrt %44 : vector<128x1xf32>
    %46 = vector.broadcast %45 : vector<128x1xf32> to vector<128x128xf32>
    %47 = arith.mulf %39, %46 : vector<128x128xf32>
    %c0_23 = arith.constant 0 : index
    %c256 = arith.constant 256 : index
    %48 = vector.load %arg11[%c0_23, %c256] : memref<128x384xf32, #tpu.memory_space<vmem>>, vector<128x128xf32>
    tpu.vector_store %arg11[%c0_23, %c256], %47 {strides = array<i32>} : memref<128x384xf32, #tpu.memory_space<vmem>>, vector<128x128xf32>,
    %c0_24 = arith.constant 0 : index
    %49 = memref.load %arg1[%c0_24] : memref<8xi32, #tpu.memory_space<smem>>
    %50 = arith.index_cast %49 : i32 to index
    %c0_25 = arith.constant 0 : index
    %51 = vector.load %arg11[%50, %c0_25] : memref<128x384xf32, #tpu.memory_space<vmem>>, vector<1x384xf32>
    %c0_26 = arith.constant 0 : index
    %52 = memref.load %arg2[%c0_26] : memref<8xi32, #tpu.memory_space<smem>>
    %53 = arith.index_cast %52 : i32 to index
    %c0_27 = arith.constant 0 : index
    %54 = vector.load %arg11[%53, %c0_27] : memref<128x384xf32, #tpu.memory_space<vmem>>, vector<1x384xf32>
    %c0_28 = arith.constant 0 : index
    %55 = memref.load %arg3[%c0_28] : memref<8xi32, #tpu.memory_space<smem>>
    %56 = arith.index_cast %55 : i32 to index
    %c0_29 = arith.constant 0 : index
    %57 = vector.load %arg11[%56, %c0_29] : memref<128x384xf32, #tpu.memory_space<vmem>>, vector<1x384xf32>
    %58 = arith.subf %54, %57 : vector<1x384xf32>
    %59 = arith.mulf %51, %58 : vector<1x384xf32>
    %60 = vector.shape_cast %59 : vector<1x384xf32> to vector<1x1x384xf32>
    %cst_30 = arith.constant dense<0.000000e+00> : vector<1xf32>
    %61 = vector.multi_reduction <add>, %60, %cst_30 [1, 2] : vector<1x1x384xf32> to vector<1xf32>
    %62 = vector.shape_cast %61 : vector<1xf32> to vector<1x1x1xf32>
    %63 = vector.extract %62[0, 0, 0] : f32 from vector<1x1x1xf32>
    %cst_31 = arith.constant 0.000000e+00 : f32
    %64 = arith.minimumf %63, %cst_31 : f32
    %65 = math.absf %63 : f32
    %cst_32 = arith.constant 0.000000e+00 : f32
    %66 = arith.subf %cst_32, %65 : f32
    %67 = math.exp %66 : f32
    %68 = math.log1p %67 : f32
    %69 = arith.subf %64, %68 : f32
    %cst_33 = arith.constant 0.000000e+00 : f32
    %70 = arith.addf %cst_33, %69 : f32
    %71 = arith.mulf %51, %51 : vector<1x384xf32>
    %72 = vector.shape_cast %71 : vector<1x384xf32> to vector<1x1x384xf32>
    %cst_34 = arith.constant dense<0.000000e+00> : vector<1xf32>
    %73 = vector.multi_reduction <add>, %72, %cst_34 [1, 2] : vector<1x1x384xf32> to vector<1xf32>
    %74 = vector.shape_cast %73 : vector<1xf32> to vector<1x1x1xf32>
    %75 = vector.extract %74[0, 0, 0] : f32 from vector<1x1x1xf32>
    %cst_35 = arith.constant 0.000000e+00 : f32
    %76 = arith.addf %cst_35, %75 : f32
    %77 = arith.mulf %54, %54 : vector<1x384xf32>
    %78 = vector.shape_cast %77 : vector<1x384xf32> to vector<1x1x384xf32>
    %cst_36 = arith.constant dense<0.000000e+00> : vector<1xf32>
    %79 = vector.multi_reduction <add>, %78, %cst_36 [1, 2] : vector<1x1x384xf32> to vector<1xf32>
    %80 = vector.shape_cast %79 : vector<1xf32> to vector<1x1x1xf32>
    %81 = vector.extract %80[0, 0, 0] : f32 from vector<1x1x1xf32>
    %cst_37 = arith.constant 0.000000e+00 : f32
    %82 = arith.addf %cst_37, %81 : f32
    %83 = arith.mulf %57, %57 : vector<1x384xf32>
    %84 = vector.shape_cast %83 : vector<1x384xf32> to vector<1x1x384xf32>
    %cst_38 = arith.constant dense<0.000000e+00> : vector<1xf32>
    %85 = vector.multi_reduction <add>, %84, %cst_38 [1, 2] : vector<1x1x384xf32> to vector<1xf32>
    %86 = vector.shape_cast %85 : vector<1xf32> to vector<1x1x1xf32>
    %87 = vector.extract %86[0, 0, 0] : f32 from vector<1x1x1xf32>
    %cst_39 = arith.constant 0.000000e+00 : f32
    %88 = arith.addf %cst_39, %87 : f32
    %c1 = arith.constant 1 : index
    %89 = memref.load %arg1[%c1] : memref<8xi32, #tpu.memory_space<smem>>
    %90 = arith.index_cast %89 : i32 to index
    %c0_40 = arith.constant 0 : index
    %91 = vector.load %arg11[%90, %c0_40] : memref<128x384xf32, #tpu.memory_space<vmem>>, vector<1x384xf32>
    %c1_41 = arith.constant 1 : index
    %92 = memref.load %arg2[%c1_41] : memref<8xi32, #tpu.memory_space<smem>>
    %93 = arith.index_cast %92 : i32 to index
    %c0_42 = arith.constant 0 : index
    %94 = vector.load %arg11[%93, %c0_42] : memref<128x384xf32, #tpu.memory_space<vmem>>, vector<1x384xf32>
    %c1_43 = arith.constant 1 : index
    %95 = memref.load %arg3[%c1_43] : memref<8xi32, #tpu.memory_space<smem>>
    %96 = arith.index_cast %95 : i32 to index
    %c0_44 = arith.constant 0 : index
    %97 = vector.load %arg11[%96, %c0_44] : memref<128x384xf32, #tpu.memory_space<vmem>>, vector<1x384xf32>
    %98 = arith.subf %94, %97 : vector<1x384xf32>
    %99 = arith.mulf %91, %98 : vector<1x384xf32>
    %100 = vector.shape_cast %99 : vector<1x384xf32> to vector<1x1x384xf32>
    %cst_45 = arith.constant dense<0.000000e+00> : vector<1xf32>
    %101 = vector.multi_reduction <add>, %100, %cst_45 [1, 2] : vector<1x1x384xf32> to vector<1xf32>
    %102 = vector.shape_cast %101 : vector<1xf32> to vector<1x1x1xf32>
    %103 = vector.extract %102[0, 0, 0] : f32 from vector<1x1x1xf32>
    %cst_46 = arith.constant 0.000000e+00 : f32
    %104 = arith.minimumf %103, %cst_46 : f32
    %105 = math.absf %103 : f32
    %cst_47 = arith.constant 0.000000e+00 : f32
    %106 = arith.subf %cst_47, %105 : f32
    %107 = math.exp %106 : f32
    %108 = math.log1p %107 : f32
    %109 = arith.subf %104, %108 : f32
    %110 = arith.addf %70, %109 : f32
    %111 = arith.mulf %91, %91 : vector<1x384xf32>
    %112 = vector.shape_cast %111 : vector<1x384xf32> to vector<1x1x384xf32>
    %cst_48 = arith.constant dense<0.000000e+00> : vector<1xf32>
    %113 = vector.multi_reduction <add>, %112, %cst_48 [1, 2] : vector<1x1x384xf32> to vector<1xf32>
    %114 = vector.shape_cast %113 : vector<1xf32> to vector<1x1x1xf32>
    %115 = vector.extract %114[0, 0, 0] : f32 from vector<1x1x1xf32>
    %116 = arith.addf %76, %115 : f32
    %117 = arith.mulf %94, %94 : vector<1x384xf32>
    %118 = vector.shape_cast %117 : vector<1x384xf32> to vector<1x1x384xf32>
    %cst_49 = arith.constant dense<0.000000e+00> : vector<1xf32>
    %119 = vector.multi_reduction <add>, %118, %cst_49 [1, 2] : vector<1x1x384xf32> to vector<1xf32>
    %120 = vector.shape_cast %119 : vector<1xf32> to vector<1x1x1xf32>
    %121 = vector.extract %120[0, 0, 0] : f32 from vector<1x1x1xf32>
    %122 = arith.addf %82, %121 : f32
    %123 = arith.mulf %97, %97 : vector<1x384xf32>
    %124 = vector.shape_cast %123 : vector<1x384xf32> to vector<1x1x384xf32>
    %cst_50 = arith.constant dense<0.000000e+00> : vector<1xf32>
    %125 = vector.multi_reduction <add>, %124, %cst_50 [1, 2] : vector<1x1x384xf32> to vector<1xf32>
    %126 = vector.shape_cast %125 : vector<1xf32> to vector<1x1x1xf32>
    %127 = vector.extract %126[0, 0, 0] : f32 from vector<1x1x1xf32>
    %128 = arith.addf %88, %127 : f32
    %c2 = arith.constant 2 : index
    %129 = memref.load %arg1[%c2] : memref<8xi32, #tpu.memory_space<smem>>
    %130 = arith.index_cast %129 : i32 to index
    %c0_51 = arith.constant 0 : index
    %131 = vector.load %arg11[%130, %c0_51] : memref<128x384xf32, #tpu.memory_space<vmem>>, vector<1x384xf32>
    %c2_52 = arith.constant 2 : index
    %132 = memref.load %arg2[%c2_52] : memref<8xi32, #tpu.memory_space<smem>>
    %133 = arith.index_cast %132 : i32 to index
    %c0_53 = arith.constant 0 : index
    %134 = vector.load %arg11[%133, %c0_53] : memref<128x384xf32, #tpu.memory_space<vmem>>, vector<1x384xf32>
    %c2_54 = arith.constant 2 : index
    %135 = memref.load %arg3[%c2_54] : memref<8xi32, #tpu.memory_space<smem>>
    %136 = arith.index_cast %135 : i32 to index
    %c0_55 = arith.constant 0 : index
    %137 = vector.load %arg11[%136, %c0_55] : memref<128x384xf32, #tpu.memory_space<vmem>>, vector<1x384xf32>
    %138 = arith.subf %134, %137 : vector<1x384xf32>
    %139 = arith.mulf %131, %138 : vector<1x384xf32>
    %140 = vector.shape_cast %139 : vector<1x384xf32> to vector<1x1x384xf32>
    %cst_56 = arith.constant dense<0.000000e+00> : vector<1xf32>
    %141 = vector.multi_reduction <add>, %140, %cst_56 [1, 2] : vector<1x1x384xf32> to vector<1xf32>
    %142 = vector.shape_cast %141 : vector<1xf32> to vector<1x1x1xf32>
    %143 = vector.extract %142[0, 0, 0] : f32 from vector<1x1x1xf32>
    %cst_57 = arith.constant 0.000000e+00 : f32
    %144 = arith.minimumf %143, %cst_57 : f32
    %145 = math.absf %143 : f32
    %cst_58 = arith.constant 0.000000e+00 : f32
    %146 = arith.subf %cst_58, %145 : f32
    %147 = math.exp %146 : f32
    %148 = math.log1p %147 : f32
    %149 = arith.subf %144, %148 : f32
    %150 = arith.addf %110, %149 : f32
    %151 = arith.mulf %131, %131 : vector<1x384xf32>
    %152 = vector.shape_cast %151 : vector<1x384xf32> to vector<1x1x384xf32>
    %cst_59 = arith.constant dense<0.000000e+00> : vector<1xf32>
    %153 = vector.multi_reduction <add>, %152, %cst_59 [1, 2] : vector<1x1x384xf32> to vector<1xf32>
    %154 = vector.shape_cast %153 : vector<1xf32> to vector<1x1x1xf32>
    %155 = vector.extract %154[0, 0, 0] : f32 from vector<1x1x1xf32>
    %156 = arith.addf %116, %155 : f32
    %157 = arith.mulf %134, %134 : vector<1x384xf32>
    %158 = vector.shape_cast %157 : vector<1x384xf32> to vector<1x1x384xf32>
    %cst_60 = arith.constant dense<0.000000e+00> : vector<1xf32>
    %159 = vector.multi_reduction <add>, %158, %cst_60 [1, 2] : vector<1x1x384xf32> to vector<1xf32>
    %160 = vector.shape_cast %159 : vector<1xf32> to vector<1x1x1xf32>
    %161 = vector.extract %160[0, 0, 0] : f32 from vector<1x1x1xf32>
    %162 = arith.addf %122, %161 : f32
    %163 = arith.mulf %137, %137 : vector<1x384xf32>
    %164 = vector.shape_cast %163 : vector<1x384xf32> to vector<1x1x384xf32>
    %cst_61 = arith.constant dense<0.000000e+00> : vector<1xf32>
    %165 = vector.multi_reduction <add>, %164, %cst_61 [1, 2] : vector<1x1x384xf32> to vector<1xf32>
    %166 = vector.shape_cast %165 : vector<1xf32> to vector<1x1x1xf32>
    %167 = vector.extract %166[0, 0, 0] : f32 from vector<1x1x1xf32>
    %168 = arith.addf %128, %167 : f32
    %c3 = arith.constant 3 : index
    %169 = memref.load %arg1[%c3] : memref<8xi32, #tpu.memory_space<smem>>
    %170 = arith.index_cast %169 : i32 to index
    %c0_62 = arith.constant 0 : index
    %171 = vector.load %arg11[%170, %c0_62] : memref<128x384xf32, #tpu.memory_space<vmem>>, vector<1x384xf32>
    %c3_63 = arith.constant 3 : index
    %172 = memref.load %arg2[%c3_63] : memref<8xi32, #tpu.memory_space<smem>>
    %173 = arith.index_cast %172 : i32 to index
    %c0_64 = arith.constant 0 : index
    %174 = vector.load %arg11[%173, %c0_64] : memref<128x384xf32, #tpu.memory_space<vmem>>, vector<1x384xf32>
    %c3_65 = arith.constant 3 : index
    %175 = memref.load %arg3[%c3_65] : memref<8xi32, #tpu.memory_space<smem>>
    %176 = arith.index_cast %175 : i32 to index
    %c0_66 = arith.constant 0 : index
    %177 = vector.load %arg11[%176, %c0_66] : memref<128x384xf32, #tpu.memory_space<vmem>>, vector<1x384xf32>
    %178 = arith.subf %174, %177 : vector<1x384xf32>
    %179 = arith.mulf %171, %178 : vector<1x384xf32>
    %180 = vector.shape_cast %179 : vector<1x384xf32> to vector<1x1x384xf32>
    %cst_67 = arith.constant dense<0.000000e+00> : vector<1xf32>
    %181 = vector.multi_reduction <add>, %180, %cst_67 [1, 2] : vector<1x1x384xf32> to vector<1xf32>
    %182 = vector.shape_cast %181 : vector<1xf32> to vector<1x1x1xf32>
    %183 = vector.extract %182[0, 0, 0] : f32 from vector<1x1x1xf32>
    %cst_68 = arith.constant 0.000000e+00 : f32
    %184 = arith.minimumf %183, %cst_68 : f32
    %185 = math.absf %183 : f32
    %cst_69 = arith.constant 0.000000e+00 : f32
    %186 = arith.subf %cst_69, %185 : f32
    %187 = math.exp %186 : f32
    %188 = math.log1p %187 : f32
    %189 = arith.subf %184, %188 : f32
    %190 = arith.addf %150, %189 : f32
    %191 = arith.mulf %171, %171 : vector<1x384xf32>
    %192 = vector.shape_cast %191 : vector<1x384xf32> to vector<1x1x384xf32>
    %cst_70 = arith.constant dense<0.000000e+00> : vector<1xf32>
    %193 = vector.multi_reduction <add>, %192, %cst_70 [1, 2] : vector<1x1x384xf32> to vector<1xf32>
    %194 = vector.shape_cast %193 : vector<1xf32> to vector<1x1x1xf32>
    %195 = vector.extract %194[0, 0, 0] : f32 from vector<1x1x1xf32>
    %196 = arith.addf %156, %195 : f32
    %197 = arith.mulf %174, %174 : vector<1x384xf32>
    %198 = vector.shape_cast %197 : vector<1x384xf32> to vector<1x1x384xf32>
    %cst_71 = arith.constant dense<0.000000e+00> : vector<1xf32>
    %199 = vector.multi_reduction <add>, %198, %cst_71 [1, 2] : vector<1x1x384xf32> to vector<1xf32>
    %200 = vector.shape_cast %199 : vector<1xf32> to vector<1x1x1xf32>
    %201 = vector.extract %200[0, 0, 0] : f32 from vector<1x1x1xf32>
    %202 = arith.addf %162, %201 : f32
    %203 = arith.mulf %177, %177 : vector<1x384xf32>
    %204 = vector.shape_cast %203 : vector<1x384xf32> to vector<1x1x384xf32>
    %cst_72 = arith.constant dense<0.000000e+00> : vector<1xf32>
    %205 = vector.multi_reduction <add>, %204, %cst_72 [1, 2] : vector<1x1x384xf32> to vector<1xf32>
    %206 = vector.shape_cast %205 : vector<1xf32> to vector<1x1x1xf32>
    %207 = vector.extract %206[0, 0, 0] : f32 from vector<1x1x1xf32>
    %208 = arith.addf %168, %207 : f32
    %c4 = arith.constant 4 : index
    %209 = memref.load %arg1[%c4] : memref<8xi32, #tpu.memory_space<smem>>
    %210 = arith.index_cast %209 : i32 to index
    %c0_73 = arith.constant 0 : index
    %211 = vector.load %arg11[%210, %c0_73] : memref<128x384xf32, #tpu.memory_space<vmem>>, vector<1x384xf32>
    %c4_74 = arith.constant 4 : index
    %212 = memref.load %arg2[%c4_74] : memref<8xi32, #tpu.memory_space<smem>>
    %213 = arith.index_cast %212 : i32 to index
    %c0_75 = arith.constant 0 : index
    %214 = vector.load %arg11[%213, %c0_75] : memref<128x384xf32, #tpu.memory_space<vmem>>, vector<1x384xf32>
    %c4_76 = arith.constant 4 : index
    %215 = memref.load %arg3[%c4_76] : memref<8xi32, #tpu.memory_space<smem>>
    %216 = arith.index_cast %215 : i32 to index
    %c0_77 = arith.constant 0 : index
    %217 = vector.load %arg11[%216, %c0_77] : memref<128x384xf32, #tpu.memory_space<vmem>>, vector<1x384xf32>
    %218 = arith.subf %214, %217 : vector<1x384xf32>
    %219 = arith.mulf %211, %218 : vector<1x384xf32>
    %220 = vector.shape_cast %219 : vector<1x384xf32> to vector<1x1x384xf32>
    %cst_78 = arith.constant dense<0.000000e+00> : vector<1xf32>
    %221 = vector.multi_reduction <add>, %220, %cst_78 [1, 2] : vector<1x1x384xf32> to vector<1xf32>
    %222 = vector.shape_cast %221 : vector<1xf32> to vector<1x1x1xf32>
    %223 = vector.extract %222[0, 0, 0] : f32 from vector<1x1x1xf32>
    %cst_79 = arith.constant 0.000000e+00 : f32
    %224 = arith.minimumf %223, %cst_79 : f32
    %225 = math.absf %223 : f32
    %cst_80 = arith.constant 0.000000e+00 : f32
    %226 = arith.subf %cst_80, %225 : f32
    %227 = math.exp %226 : f32
    %228 = math.log1p %227 : f32
    %229 = arith.subf %224, %228 : f32
    %230 = arith.addf %190, %229 : f32
    %231 = arith.mulf %211, %211 : vector<1x384xf32>
    %232 = vector.shape_cast %231 : vector<1x384xf32> to vector<1x1x384xf32>
    %cst_81 = arith.constant dense<0.000000e+00> : vector<1xf32>
    %233 = vector.multi_reduction <add>, %232, %cst_81 [1, 2] : vector<1x1x384xf32> to vector<1xf32>
    %234 = vector.shape_cast %233 : vector<1xf32> to vector<1x1x1xf32>
    %235 = vector.extract %234[0, 0, 0] : f32 from vector<1x1x1xf32>
    %236 = arith.addf %196, %235 : f32
    %237 = arith.mulf %214, %214 : vector<1x384xf32>
    %238 = vector.shape_cast %237 : vector<1x384xf32> to vector<1x1x384xf32>
    %cst_82 = arith.constant dense<0.000000e+00> : vector<1xf32>
    %239 = vector.multi_reduction <add>, %238, %cst_82 [1, 2] : vector<1x1x384xf32> to vector<1xf32>
    %240 = vector.shape_cast %239 : vector<1xf32> to vector<1x1x1xf32>
    %241 = vector.extract %240[0, 0, 0] : f32 from vector<1x1x1xf32>
    %242 = arith.addf %202, %241 : f32
    %243 = arith.mulf %217, %217 : vector<1x384xf32>
    %244 = vector.shape_cast %243 : vector<1x384xf32> to vector<1x1x384xf32>
    %cst_83 = arith.constant dense<0.000000e+00> : vector<1xf32>
    %245 = vector.multi_reduction <add>, %244, %cst_83 [1, 2] : vector<1x1x384xf32> to vector<1xf32>
    %246 = vector.shape_cast %245 : vector<1xf32> to vector<1x1x1xf32>
    %247 = vector.extract %246[0, 0, 0] : f32 from vector<1x1x1xf32>
    %248 = arith.addf %208, %247 : f32
    %c5 = arith.constant 5 : index
    %249 = memref.load %arg1[%c5] : memref<8xi32, #tpu.memory_space<smem>>
    %250 = arith.index_cast %249 : i32 to index
    %c0_84 = arith.constant 0 : index
    %251 = vector.load %arg11[%250, %c0_84] : memref<128x384xf32, #tpu.memory_space<vmem>>, vector<1x384xf32>
    %c5_85 = arith.constant 5 : index
    %252 = memref.load %arg2[%c5_85] : memref<8xi32, #tpu.memory_space<smem>>
    %253 = arith.index_cast %252 : i32 to index
    %c0_86 = arith.constant 0 : index
    %254 = vector.load %arg11[%253, %c0_86] : memref<128x384xf32, #tpu.memory_space<vmem>>, vector<1x384xf32>
    %c5_87 = arith.constant 5 : index
    %255 = memref.load %arg3[%c5_87] : memref<8xi32, #tpu.memory_space<smem>>
    %256 = arith.index_cast %255 : i32 to index
    %c0_88 = arith.constant 0 : index
    %257 = vector.load %arg11[%256, %c0_88] : memref<128x384xf32, #tpu.memory_space<vmem>>, vector<1x384xf32>
    %258 = arith.subf %254, %257 : vector<1x384xf32>
    %259 = arith.mulf %251, %258 : vector<1x384xf32>
    %260 = vector.shape_cast %259 : vector<1x384xf32> to vector<1x1x384xf32>
    %cst_89 = arith.constant dense<0.000000e+00> : vector<1xf32>
    %261 = vector.multi_reduction <add>, %260, %cst_89 [1, 2] : vector<1x1x384xf32> to vector<1xf32>
    %262 = vector.shape_cast %261 : vector<1xf32> to vector<1x1x1xf32>
    %263 = vector.extract %262[0, 0, 0] : f32 from vector<1x1x1xf32>
    %cst_90 = arith.constant 0.000000e+00 : f32
    %264 = arith.minimumf %263, %cst_90 : f32
    %265 = math.absf %263 : f32
    %cst_91 = arith.constant 0.000000e+00 : f32
    %266 = arith.subf %cst_91, %265 : f32
    %267 = math.exp %266 : f32
    %268 = math.log1p %267 : f32
    %269 = arith.subf %264, %268 : f32
    %270 = arith.addf %230, %269 : f32
    %271 = arith.mulf %251, %251 : vector<1x384xf32>
    %272 = vector.shape_cast %271 : vector<1x384xf32> to vector<1x1x384xf32>
    %cst_92 = arith.constant dense<0.000000e+00> : vector<1xf32>
    %273 = vector.multi_reduction <add>, %272, %cst_92 [1, 2] : vector<1x1x384xf32> to vector<1xf32>
    %274 = vector.shape_cast %273 : vector<1xf32> to vector<1x1x1xf32>
    %275 = vector.extract %274[0, 0, 0] : f32 from vector<1x1x1xf32>
    %276 = arith.addf %236, %275 : f32
    %277 = arith.mulf %254, %254 : vector<1x384xf32>
    %278 = vector.shape_cast %277 : vector<1x384xf32> to vector<1x1x384xf32>
    %cst_93 = arith.constant dense<0.000000e+00> : vector<1xf32>
    %279 = vector.multi_reduction <add>, %278, %cst_93 [1, 2] : vector<1x1x384xf32> to vector<1xf32>
    %280 = vector.shape_cast %279 : vector<1xf32> to vector<1x1x1xf32>
    %281 = vector.extract %280[0, 0, 0] : f32 from vector<1x1x1xf32>
    %282 = arith.addf %242, %281 : f32
    %283 = arith.mulf %257, %257 : vector<1x384xf32>
    %284 = vector.shape_cast %283 : vector<1x384xf32> to vector<1x1x384xf32>
    %cst_94 = arith.constant dense<0.000000e+00> : vector<1xf32>
    %285 = vector.multi_reduction <add>, %284, %cst_94 [1, 2] : vector<1x1x384xf32> to vector<1xf32>
    %286 = vector.shape_cast %285 : vector<1xf32> to vector<1x1x1xf32>
    %287 = vector.extract %286[0, 0, 0] : f32 from vector<1x1x1xf32>
    %288 = arith.addf %248, %287 : f32
    %c6 = arith.constant 6 : index
    %289 = memref.load %arg1[%c6] : memref<8xi32, #tpu.memory_space<smem>>
    %290 = arith.index_cast %289 : i32 to index
    %c0_95 = arith.constant 0 : index
    %291 = vector.load %arg11[%290, %c0_95] : memref<128x384xf32, #tpu.memory_space<vmem>>, vector<1x384xf32>
    %c6_96 = arith.constant 6 : index
    %292 = memref.load %arg2[%c6_96] : memref<8xi32, #tpu.memory_space<smem>>
    %293 = arith.index_cast %292 : i32 to index
    %c0_97 = arith.constant 0 : index
    %294 = vector.load %arg11[%293, %c0_97] : memref<128x384xf32, #tpu.memory_space<vmem>>, vector<1x384xf32>
    %c6_98 = arith.constant 6 : index
    %295 = memref.load %arg3[%c6_98] : memref<8xi32, #tpu.memory_space<smem>>
    %296 = arith.index_cast %295 : i32 to index
    %c0_99 = arith.constant 0 : index
    %297 = vector.load %arg11[%296, %c0_99] : memref<128x384xf32, #tpu.memory_space<vmem>>, vector<1x384xf32>
    %298 = arith.subf %294, %297 : vector<1x384xf32>
    %299 = arith.mulf %291, %298 : vector<1x384xf32>
    %300 = vector.shape_cast %299 : vector<1x384xf32> to vector<1x1x384xf32>
    %cst_100 = arith.constant dense<0.000000e+00> : vector<1xf32>
    %301 = vector.multi_reduction <add>, %300, %cst_100 [1, 2] : vector<1x1x384xf32> to vector<1xf32>
    %302 = vector.shape_cast %301 : vector<1xf32> to vector<1x1x1xf32>
    %303 = vector.extract %302[0, 0, 0] : f32 from vector<1x1x1xf32>
    %cst_101 = arith.constant 0.000000e+00 : f32
    %304 = arith.minimumf %303, %cst_101 : f32
    %305 = math.absf %303 : f32
    %cst_102 = arith.constant 0.000000e+00 : f32
    %306 = arith.subf %cst_102, %305 : f32
    %307 = math.exp %306 : f32
    %308 = math.log1p %307 : f32
    %309 = arith.subf %304, %308 : f32
    %310 = arith.addf %270, %309 : f32
    %311 = arith.mulf %291, %291 : vector<1x384xf32>
    %312 = vector.shape_cast %311 : vector<1x384xf32> to vector<1x1x384xf32>
    %cst_103 = arith.constant dense<0.000000e+00> : vector<1xf32>
    %313 = vector.multi_reduction <add>, %312, %cst_103 [1, 2] : vector<1x1x384xf32> to vector<1xf32>
    %314 = vector.shape_cast %313 : vector<1xf32> to vector<1x1x1xf32>
    %315 = vector.extract %314[0, 0, 0] : f32 from vector<1x1x1xf32>
    %316 = arith.addf %276, %315 : f32
    %317 = arith.mulf %294, %294 : vector<1x384xf32>
    %318 = vector.shape_cast %317 : vector<1x384xf32> to vector<1x1x384xf32>
    %cst_104 = arith.constant dense<0.000000e+00> : vector<1xf32>
    %319 = vector.multi_reduction <add>, %318, %cst_104 [1, 2] : vector<1x1x384xf32> to vector<1xf32>
    %320 = vector.shape_cast %319 : vector<1xf32> to vector<1x1x1xf32>
    %321 = vector.extract %320[0, 0, 0] : f32 from vector<1x1x1xf32>
    %322 = arith.addf %282, %321 : f32
    %323 = arith.mulf %297, %297 : vector<1x384xf32>
    %324 = vector.shape_cast %323 : vector<1x384xf32> to vector<1x1x384xf32>
    %cst_105 = arith.constant dense<0.000000e+00> : vector<1xf32>
    %325 = vector.multi_reduction <add>, %324, %cst_105 [1, 2] : vector<1x1x384xf32> to vector<1xf32>
    %326 = vector.shape_cast %325 : vector<1xf32> to vector<1x1x1xf32>
    %327 = vector.extract %326[0, 0, 0] : f32 from vector<1x1x1xf32>
    %328 = arith.addf %288, %327 : f32
    %c7 = arith.constant 7 : index
    %329 = memref.load %arg1[%c7] : memref<8xi32, #tpu.memory_space<smem>>
    %330 = arith.index_cast %329 : i32 to index
    %c0_106 = arith.constant 0 : index
    %331 = vector.load %arg11[%330, %c0_106] : memref<128x384xf32, #tpu.memory_space<vmem>>, vector<1x384xf32>
    %c7_107 = arith.constant 7 : index
    %332 = memref.load %arg2[%c7_107] : memref<8xi32, #tpu.memory_space<smem>>
    %333 = arith.index_cast %332 : i32 to index
    %c0_108 = arith.constant 0 : index
    %334 = vector.load %arg11[%333, %c0_108] : memref<128x384xf32, #tpu.memory_space<vmem>>, vector<1x384xf32>
    %c7_109 = arith.constant 7 : index
    %335 = memref.load %arg3[%c7_109] : memref<8xi32, #tpu.memory_space<smem>>
    %336 = arith.index_cast %335 : i32 to index
    %c0_110 = arith.constant 0 : index
    %337 = vector.load %arg11[%336, %c0_110] : memref<128x384xf32, #tpu.memory_space<vmem>>, vector<1x384xf32>
    %338 = arith.subf %334, %337 : vector<1x384xf32>
    %339 = arith.mulf %331, %338 : vector<1x384xf32>
    %340 = vector.shape_cast %339 : vector<1x384xf32> to vector<1x1x384xf32>
    %cst_111 = arith.constant dense<0.000000e+00> : vector<1xf32>
    %341 = vector.multi_reduction <add>, %340, %cst_111 [1, 2] : vector<1x1x384xf32> to vector<1xf32>
    %342 = vector.shape_cast %341 : vector<1xf32> to vector<1x1x1xf32>
    %343 = vector.extract %342[0, 0, 0] : f32 from vector<1x1x1xf32>
    %cst_112 = arith.constant 0.000000e+00 : f32
    %344 = arith.minimumf %343, %cst_112 : f32
    %345 = math.absf %343 : f32
    %cst_113 = arith.constant 0.000000e+00 : f32
    %346 = arith.subf %cst_113, %345 : f32
    %347 = math.exp %346 : f32
    %348 = math.log1p %347 : f32
    %349 = arith.subf %344, %348 : f32
    %350 = arith.addf %310, %349 : f32
    %351 = arith.mulf %331, %331 : vector<1x384xf32>
    %352 = vector.shape_cast %351 : vector<1x384xf32> to vector<1x1x384xf32>
    %cst_114 = arith.constant dense<0.000000e+00> : vector<1xf32>
    %353 = vector.multi_reduction <add>, %352, %cst_114 [1, 2] : vector<1x1x384xf32> to vector<1xf32>
    %354 = vector.shape_cast %353 : vector<1xf32> to vector<1x1x1xf32>
    %355 = vector.extract %354[0, 0, 0] : f32 from vector<1x1x1xf32>
    %356 = arith.addf %316, %355 : f32
    %357 = arith.mulf %334, %334 : vector<1x384xf32>
    %358 = vector.shape_cast %357 : vector<1x384xf32> to vector<1x1x384xf32>
    %cst_115 = arith.constant dense<0.000000e+00> : vector<1xf32>
    %359 = vector.multi_reduction <add>, %358, %cst_115 [1, 2] : vector<1x1x384xf32> to vector<1xf32>
    %360 = vector.shape_cast %359 : vector<1xf32> to vector<1x1x1xf32>
    %361 = vector.extract %360[0, 0, 0] : f32 from vector<1x1x1xf32>
    %362 = arith.addf %322, %361 : f32
    %363 = arith.mulf %337, %337 : vector<1x384xf32>
    %364 = vector.shape_cast %363 : vector<1x384xf32> to vector<1x1x384xf32>
    %cst_116 = arith.constant dense<0.000000e+00> : vector<1xf32>
    %365 = vector.multi_reduction <add>, %364, %cst_116 [1, 2] : vector<1x1x384xf32> to vector<1xf32>
    %366 = vector.shape_cast %365 : vector<1xf32> to vector<1x1x1xf32>
    %367 = vector.extract %366[0, 0, 0] : f32 from vector<1x1x1xf32>
    %368 = arith.addf %328, %367 : f32
    %cst_117 = arith.constant 0.000000e+00 : f32
    %369 = arith.subf %cst_117, %350 : f32
    %cst_118 = arith.constant 8.000000e+00 : f32
    %370 = arith.divf %369, %cst_118 : f32
    %371 = arith.addf %356, %362 : f32
    %372 = math.sqrt %368 : f32
    %373 = arith.addf %371, %372 : f32
    %cst_119 = arith.constant 2.000000e+00 : f32
    %374 = arith.divf %373, %cst_119 : f32
    %cst_120 = arith.constant 9.99999974E-5 : f32
    %375 = arith.mulf %cst_120, %374 : f32
    %cst_121 = arith.constant 8.000000e+00 : f32
    %376 = arith.divf %375, %cst_121 : f32
    %377 = arith.addf %370, %376 : f32
    %c0_122 = arith.constant 0 : index
    %c0_123 = arith.constant 0 : index
    %378 = memref.load %arg10[%c0_122, %c0_123] : memref<1x1xf32, #tpu.memory_space<smem>>
    memref.store %377, %arg10[%c0_122, %c0_123] : memref<1x1xf32, #tpu.memory_space<smem>>
    return
  }
  func.func @transform_0(%arg0: i32, %arg1: memref<8xi32, #tpu.memory_space<smem>>, %arg2: memref<8xi32, #tpu.memory_space<smem>>, %arg3: memref<8xi32, #tpu.memory_space<smem>>) -> (i32, i32) {
    %c0_i32 = arith.constant 0 : i32
    %c0_i32_0 = arith.constant 0 : i32
    %c0_i32_1 = arith.constant 0 : i32
    return %c0_i32, %c0_i32_0 : i32, i32
  }
  func.func @transform_1(%arg0: i32, %arg1: memref<8xi32, #tpu.memory_space<smem>>, %arg2: memref<8xi32, #tpu.memory_space<smem>>, %arg3: memref<8xi32, #tpu.memory_space<smem>>) -> (i32, i32) {
    %c0_i32 = arith.constant 0 : i32
    %c0_i32_0 = arith.constant 0 : i32
    %c0_i32_1 = arith.constant 0 : i32
    return %c0_i32, %c0_i32_0 : i32, i32
  }
  func.func @transform_2(%arg0: i32, %arg1: memref<8xi32, #tpu.memory_space<smem>>, %arg2: memref<8xi32, #tpu.memory_space<smem>>, %arg3: memref<8xi32, #tpu.memory_space<smem>>) -> (i32, i32) {
    %c0_i32 = arith.constant 0 : i32
    %c0_i32_0 = arith.constant 0 : i32
    %c0_i32_1 = arith.constant 0 : i32
    return %c0_i32, %c0_i32_0 : i32, i32
  }
  func.func @transform_3(%arg0: i32, %arg1: memref<8xi32, #tpu.memory_space<smem>>, %arg2: memref<8xi32, #tpu.memory_space<smem>>, %arg3: memref<8xi32, #tpu.memory_space<smem>>) -> (i32, i32) {
    %c0_i32 = arith.constant 0 : i32
    %c0_i32_0 = arith.constant 0 : i32
    %c0_i32_1 = arith.constant 0 : i32
    return %c0_i32, %c0_i32_0 : i32, i32
  }
  func.func @transform_4(%arg0: i32, %arg1: memref<8xi32, #tpu.memory_space<smem>>, %arg2: memref<8xi32, #tpu.memory_space<smem>>, %arg3: memref<8xi32, #tpu.memory_space<smem>>) -> (i32, i32) {
    %c0_i32 = arith.constant 0 : i32
    %c0_i32_0 = arith.constant 0 : i32
    %c0_i32_1 = arith.constant 0 : i32
    return %c0_i32, %c0_i32_0 : i32, i32
  }
  func.func @transform_5(%arg0: i32, %arg1: memref<8xi32, #tpu.memory_space<smem>>, %arg2: memref<8xi32, #tpu.memory_space<smem>>, %arg3: memref<8xi32, #tpu.memory_space<smem>>) -> (i32, i32) {
    %c0_i32 = arith.constant 0 : i32
    %c0_i32_0 = arith.constant 0 : i32
    %c0_i32_1 = arith.constant 0 : i32
    return %c0_i32, %c0_i32_0 : i32, i32
  }
  func.func @transform_6(%arg0: i32, %arg1: memref<8xi32, #tpu.memory_space<smem>>, %arg2: memref<8xi32, #tpu.memory_space<smem>>, %arg3: memref<8xi32, #tpu.memory_space<smem>>) -> (i32, i32) {
    %c0_i32 = arith.constant 0 : i32
    %c0_i32_0 = arith.constant 0 : i32
    %c0_i32_1 = arith.constant 0 : i32
    return %c0_i32, %c0_i32_0 : i32, i32
  }
}

</mosaic_0001>

<bundles_post_ra>
// kernel: tpu_custom_call.1
= control target key start
LH: loop header
LB: loop body
LE: loop exit
PB: predicated region body
PF: predicated region fallthrough
CT: control target
= control target key end

     0   :  { %s3362_s15 = smov [#allocation4]   ;;  %s3363_s16 = smov [#allocation5]   ;;  %s4388_s0 = inlined_call_operand.hbm [shape: s32[8], index: 0, kind: input, shape index: {}]   ;;  %s4389_s3 = inlined_call_operand.hbm [shape: bf16[128,128], index: 3, kind: input, shape index: {}]   ;;  %s4390_s4 = inlined_call_operand.hbm [shape: f32[128,128], index: 4, kind: input, shape index: {}]   ;;  %s4391_s5 = inlined_call_operand.hbm [shape: bf16[256,128], index: 5, kind: input, shape index: {}]   ;;  %s4392_s6 = inlined_call_operand.vmem [shape: f32[1,128], index: 6, kind: input, shape index: {}]   ;;  %s4393_s7 = inlined_call_operand.hbm [shape: bf16[256,128], index: 7, kind: input, shape index: {}]   ;;  %s4394_s8 = inlined_call_operand.vmem [shape: f32[1,128], index: 8, kind: input, shape index: {}]   ;;  %s4395_s9 = inlined_call_operand.hbm [shape: f32[1,1], index: 9, kind: output, shape index: {}]   ;;  %s4396_s1 = inlined_call_operand.hbm [shape: s32[8], index: 1, kind: input, shape index: {}]   ;;  %s4397_s2 = inlined_call_operand.vmem [shape: s32[8], index: 2, kind: input, shape index: {}]  }
   0x1   :  { %s15_s11 = sshll.u32 %s4388_s0, 4  ;;  %s20_s14 = sshll.u32 %s4396_s1, 4  ;;  %s16_s11 = int_to_ptr.hbm [resolvable:$true] %s15_s11  ;;  %s21_s14 = int_to_ptr.hbm [resolvable:$true] %s20_s14 }
   0x2   :  { %18 = dma.hbm_to_smem %s16_s11, 16, %s3362_s15, [#allocation3] }
   0x3   :  { %23 = dma.hbm_to_smem %s21_s14, 16, %s3363_s16, [#allocation3] }
   0x4   :  { %s25_s19 = sshll.u32 %s4397_s2, 4  ;;  %s3364_s20 = smov [#allocation6]   ;;  %s26_s19 = int_to_ptr.vmem [resolvable:$true] %s25_s19 }
   0x5   :  { %28 = dma.vmem_to_smem %s26_s19, 16, %s3364_s20, [#allocation3] }
   0x6   :  { %3352 = dma.done.wait [#allocation3], 48 }
   0x7   :  { %3353 = vsyncadd [#allocation3], 4294967248 }
   0x8   :  { %31 = sfence }
   0x9   :  { %32 = vsyncpa [#allocation8], 0 }
   0xa   :  { %33 = vsyncpa [#allocation11], 0 }
   0xb   :  { %34 = vsyncpa [#allocation14], 0  ;;  %s53_s21 = sshll.u32 %s4390_s4, 4  ;;  %s54_s21 = int_to_ptr.hbm [resolvable:$true] %s53_s21 }
   0xc   :  { %35 = vsyncpa [#allocation9], 0  ;;  %s3365_s22 = smov [#allocation10]   ;;  %s40_s25 = sshll.u32 %s4389_s3, 4  ;;  %s41_s25 = int_to_ptr.hbm [resolvable:$true] %s40_s25 }
   0xd   :  { %s55_s23 = sshll.u32 %s3365_s22, 4  ;;  %s3366_s26 = smov 128   ;;  %s56_s23 = int_to_ptr.vmem [resolvable:$true] %s55_s23 }
   0xe   :  { %s3367_s27 = smov 8   ;;  %s3368_s28 = smov [#allocation7]  }
   0xf   :  { %61 = dma.hbm_to_vmem [thread:$0]  %s54_s21, 2048, %s56_s23, [#allocation11], %s3366_s26, %s3366_s26, %s3367_s27  }
  0x10   :  { %s42_s29 = sshll.u32 %s3368_s28, 4  ;;  %s3369_s30 = smov 64   ;;  %s43_s29 = int_to_ptr.vmem [resolvable:$true] %s42_s29 }
  0x11   :  { %s3370_s10 = smov 4   ;;  %s66_s12 = sshll.u32 %s4391_s5, 4  ;;  %s67_s12 = int_to_ptr.hbm [resolvable:$true] %s66_s12 }
  0x12   :  { %48 = dma.hbm_to_vmem [thread:$0]  %s41_s25, 1024, %s43_s29, [#allocation8], %s3369_s30, %s3369_s30, %s3370_s10  }
  0x13   :  { %s3371_s13 = smov [#allocation12]   ;;  %s81_s16 = sshll.u32 %s4393_s7, 4  ;;  %s82_s16 = int_to_ptr.hbm [resolvable:$true] %s81_s16 }
  0x14   :  { %s68_s14 = sshll.u32 %s3371_s13, 4  ;;  %s3372_s17 = smov [#allocation13]   ;;  %s69_s14 = int_to_ptr.vmem [resolvable:$true] %s68_s14 }
  0x15   :  { %74 = dma.hbm_to_vmem [thread:$0]  %s67_s12, 2048, %s69_s14, [#allocation11], %s3369_s30, %s3369_s30, %s3370_s10  }
  0x16   :  { %s83_s18 = sshll.u32 %s3372_s17, 4  ;;  %s84_s18 = int_to_ptr.vmem [resolvable:$true] %s83_s18 }
  0x17   :  { %89 = dma.hbm_to_vmem [thread:$0]  %s82_s16, 2048, %s84_s18, [#allocation14], %s3369_s30, %s3369_s30, %s3370_s10  }
  0x18   :  { %3354 = dma.done.wait [#allocation8], 1024  }
  0x19   :  { %3355 = vsyncadd [#allocation8], 4294966272 }
  0x1a   :  { %3356 = dma.done.wait [#allocation11], 4096  }
  0x1b   :  { %3357 = vsyncadd [#allocation11], 4294963200 }
  0x1c   :  { %3358 = dma.done.wait [#allocation14], 2048  }
  0x1d   :  { %3359 = vsyncadd [#allocation14], 4294965248  ;;  %v3448_v0 = vld [vmem:[#allocation10 + $0x70] sm:$0xff]  ;;  %v3450_v1 = vld [vmem:[#allocation10 + $0x78] sm:$0xff]  ;;  %s3820_s20 = sld [smem:[#allocation4]] }
  0x1e   :  { %v3452_v2 = vld [vmem:[#allocation10 + $0x60] sm:$0xff]  ;;  %154 = vst [vmem:[#allocation2 + $0x150] sm:$0xff] %v3448_v0  ;;  %v196_v3 = vpack.c.bf16 %v3450_v1, %v3448_v0  ;;  %v3457_v4 = vld [vmem:[#allocation10 + $0x68] sm:$0xff]  ;;  %v3464_v6 = vld [vmem:[#allocation10 + $0x50] sm:$0xff]  ;;  %s3824_s1 = sld [smem:[#allocation6]] }
  0x1f   :  { %155 = vst [vmem:[#allocation2 + $0x168] sm:$0xff] %v3450_v1  ;;  %v195_v5 = vpack.c.bf16 %v3457_v4, %v3452_v2  ;;  %v3466_v7 = vld [vmem:[#allocation10 + $0x58] sm:$0xff]  ;;  %v3470_v8 = vld [vmem:[#allocation10 + $0x40] sm:$0xff]  ;;  %v3474_v10 = vld [vmem:[#allocation10 + $0x48] sm:$0xff]  ;;  %s3826_s22 = sld [smem:[#allocation4 + $0x1]] }
  0x20   :  { %245 = vmatpush.bf16.msra.mxu0 %v196_v3  ;;  %152 = vst [vmem:[#allocation2 + $0x120] sm:$0xff] %v3452_v2  ;;  %2970 = vmatpush.bf16.msra.mxu2 %v196_v3  ;;  %v194_v9 = vpack.c.bf16 %v3466_v7, %v3464_v6  ;;  %v3478_v11 = vld [vmem:[#allocation10 + $0x30] sm:$0xff]  ;;  %v3480_v12 = vld [vmem:[#allocation10 + $0x38] sm:$0xff]  ;;  %v3484_v13 = vld [vmem:[#allocation10 + $0x20] sm:$0xff]  ;;  %v193_v14 = vpack.c.bf16 %v3474_v10, %v3470_v8  ;;  %s3830_s2 = sld [smem:[#allocation5 + $0x1]] }
  0x21   :  { %153 = vst [vmem:[#allocation2 + $0x138] sm:$0xff] %v3457_v4  ;;  %v3488_v15 = vld [vmem:[#allocation10 + $0x28] sm:$0xff]  ;;  %v3492_v16 = vld [vmem:[#allocation10 + $0x10] sm:$0xff]  ;;  %v3494_v17 = vld [vmem:[#allocation10 + $0x18] sm:$0xff]  ;;  %v192_v19 = vpack.c.bf16 %v3480_v12, %v3478_v11  ;;  %s3833_s25 = sld [smem:[#allocation6 + $0x1]] }
  0x22   :  { %150 = vst [vmem:[#allocation2 + $0xf0] sm:$0xff] %v3464_v6  ;;  %v3498_v18 = vld [vmem:[#allocation10] sm:$0xff]  ;;  %v3502_v20 = vld [vmem:[#allocation10 + $0x8] sm:$0xff]  ;;  %v191_v21 = vpack.c.bf16 %v3488_v15, %v3484_v13  ;;  %v190_v22 = vpack.c.bf16 %v3494_v17, %v3492_v16  ;;  %v2945_v28 = vld [vmem:[#allocation12 + $0x38] sm:$0xff]  ;;  %s3839_s30 = sld [smem:[#allocation4 + $0x2]] }
  0x23   :  { %151 = vst [vmem:[#allocation2 + $0x108] sm:$0xff] %v3466_v7  ;;  %v189_v23 = vpack.c.bf16 %v3502_v20, %v3498_v18  ;;  %v3512_v24 = vld [vmem:[#allocation7] sm:$0xff]  ;;  %v3518_v26 = vld [vmem:[#allocation7 + $0x8] sm:$0xff]  ;;  %v2953_v29 = vld [vmem:[#allocation12 + $0x78] sm:$0xff]  ;;  %441 = vmatpush.bf16.msra.mxu1 %v2945_v28  ;;  %2978 = vmatpush.bf16.msra.mxu3 %v2945_v28  ;;  %s1451_s24 = sshra.s32 %s3820_s20, 3  ;;  %s1454_s28 = sand.u32 7, %s3820_s20 }
  0x24   :  { %246 = vmatpush.bf16.msra.mxu0 %v195_v5  ;;  %148 = vst [vmem:[#allocation2 + $0xc0] sm:$0xff] %v3470_v8  ;;  %2971 = vmatpush.bf16.msra.mxu2 %v195_v5  ;;  %v3515_v25 = vld [vmem:[#allocation7 + $0x20] sm:$0xff]  ;;  %v3521_v27 = vld [vmem:[#allocation7 + $0x28] sm:$0xff]  ;;  %v2944_v30 = vld [vmem:[#allocation12 + $0x30] sm:$0xff]  ;;  %s2885_s27 = smul.u32 24, %s1451_s24  ;;  %s1471_s29 = sshra.s32 %s3824_s1, 3 }
  0x25   :  { %149 = vst [vmem:[#allocation2 + $0xd8] sm:$0xff] %v3474_v10  ;;  %v2952_v31 = vld [vmem:[#allocation12 + $0x70] sm:$0xff]  ;;  %v2943_v32 = vld [vmem:[#allocation12 + $0x28] sm:$0xff]  ;;  %v2942_v35 = vld [vmem:[#allocation12 + $0x20] sm:$0xff]  ;;  %s2887_s4 = smul.u32 24, %s1471_s29  ;;  %s1474_s11 = sand.u32 7, %s3824_s1 }
  0x26   :  { %146 = vst [vmem:[#allocation2 + $0x90] sm:$0xff] %v3478_v11  ;;  %v2951_v33 = vld [vmem:[#allocation12 + $0x68] sm:$0xff]  ;;  %v3524_v34 = vld [vmem:[#allocation7 + $0x10] sm:$0xff]  ;;  %v2950_v36 = vld [vmem:[#allocation12 + $0x60] sm:$0xff]  ;;  %s3841_s10 = sadd.s32 %s2885_s27, %s1454_s28  ;;  %s1594_s12 = sshra.s32 %s3826_s22, 3 }
  0x27   :  { %147 = vst [vmem:[#allocation2 + $0xa8] sm:$0xff] %v3480_v12  ;;  %442 = vmatpush.bf16.msra.mxu1 %v2944_v30  ;;  %2979 = vmatpush.bf16.msra.mxu3 %v2944_v30  ;;  %v3526_v37 = vld [vmem:[#allocation7 + $0x30] sm:$0xff]  ;;  %v2941_v38 = vld [vmem:[#allocation12 + $0x18] sm:$0xff]  ;;  %v2939_v44 = vld [vmem:[#allocation12 + $0x8] sm:$0xff]  ;;  %s1597_s13 = sand.u32 7, %s3826_s22  ;;  %s1604_s14 = sshra.s32 %s3830_s2, 3 }
  0x28   :  { %247 = vmatpush.bf16.msra.mxu0 %v194_v9  ;;  %144 = vst [vmem:[#allocation2 + $0x60] sm:$0xff] %v3484_v13  ;;  %2972 = vmatpush.bf16.msra.mxu2 %v194_v9  ;;  %v2949_v39 = vld [vmem:[#allocation12 + $0x58] sm:$0xff]  ;;  %v2940_v42 = vld [vmem:[#allocation12 + $0x10] sm:$0xff]  ;;  %v2947_v45 = vld [vmem:[#allocation12 + $0x48] sm:$0xff]  ;;  %s1614_s15 = sshra.s32 %s3833_s25, 3  ;;  %s3849_s3 = sld [smem:[#allocation5 + $0x2]] }
  0x29   :  { %145 = vst [vmem:[#allocation2 + $0x78] sm:$0xff] %v3488_v15  ;;  %v3530_v40 = vld [vmem:[#allocation7 + $0x18] sm:$0xff]  ;;  %v2948_v43 = vld [vmem:[#allocation12 + $0x50] sm:$0xff]  ;;  %v2938_v46 = vld [vmem:[#allocation12] sm:$0xff]  ;;  %s3851_s16 = sadd.s32 %s2887_s4, %s1474_s11  ;;  %s2889_s17 = smul.u32 24, %s1594_s12 }
  0x2a   :  { %142 = vst [vmem:[#allocation2 + $0x30] sm:$0xff] %v3492_v16  ;;  %v2937_v41 = vld [vmem:[#allocation7 + $0x38] sm:$0xff]  ;;  %v2946_v47 = vld [vmem:[#allocation12 + $0x40] sm:$0xff]  ;;  %s2891_s18 = smul.u32 24, %s1604_s14  ;;  %s3853_s5 = sld [smem:[#allocation6 + $0x2]] }
  0x2b   :  { %143 = vst [vmem:[#allocation2 + $0x48] sm:$0xff] %v3494_v17  ;;  %443 = vmatpush.bf16.msra.mxu1 %v2943_v32  ;;  %2980 = vmatpush.bf16.msra.mxu3 %v2943_v32  ;;  %s1607_s7 = sand.u32 7, %s3830_s2  ;;  %s1617_s19 = sand.u32 7, %s3833_s25 }
  0x2c   :  { %248 = vmatpush.bf16.msra.mxu0 %v193_v14  ;;  %140 = vst [vmem:[#allocation2] sm:$0xff] %v3498_v18  ;;  %2973 = vmatpush.bf16.msra.mxu2 %v193_v14  ;;  %s3858_s20 = sadd.s32 %s2889_s17, %s1597_s13  ;;  %s1739_s24 = sand.u32 7, %s3839_s30 }
  0x2d   :  { %141 = vst [vmem:[#allocation2 + $0x18] sm:$0xff] %v3502_v20  ;;  %s3873_s4 = sld [smem:[#allocation4 + $0x3]] }
  0x2e   :  { %s1746_s22 = sshra.s32 %s3849_s3, 3  ;;  %s1749_s28 = sand.u32 7, %s3849_s3 }
  0x2f   :  { %444 = vmatpush.bf16.msra.mxu1 %v2942_v35  ;;  %2981 = vmatpush.bf16.msra.mxu3 %v2942_v35  ;;  %s2897_s25 = smul.u32 24, %s1746_s22  ;;  %s3876_s12 = sld [smem:[#allocation6 + $0x3]] }
  0x30   :  { %249 = vmatpush.bf16.msra.mxu0 %v192_v19  ;;  %2974 = vmatpush.bf16.msra.mxu2 %v192_v19  ;;  %s1756_s2 = sshra.s32 %s3853_s5, 3  ;;  %s1759_s11 = sand.u32 7, %s3853_s5 }
  0x31   :  { %s2899_s29 = smul.u32 24, %s1756_s2  ;;  %s3878_s13 = sadd.s32 %s2897_s25, %s1749_s28 }
  0x32   :  { %s3880_s14 = sld [smem:[#allocation4 + $0x4]]  ;;  %s1601_s5 = scalar_lea.vmem [#allocation2], %s3858_s20 }
  0x33   :  { %445 = vmatpush.bf16.msra.mxu1 %v2941_v38  ;;  %2982 = vmatpush.bf16.msra.mxu3 %v2941_v38  ;;  %s3887_s3 = sadd.s32 %s2899_s29, %s1759_s11  ;;  %s1881_s2 = sand.u32 7, %s3873_s4 }
  0x34   :  { %250 = vmatpush.bf16.msra.mxu0 %v191_v21  ;;  %2975 = vmatpush.bf16.msra.mxu2 %v191_v21 }
  0x35   :  { %s1901_s28 = sand.u32 7, %s3876_s12 }
  0x37   :  { %446 = vmatpush.bf16.msra.mxu1 %v2940_v42  ;;  %2983 = vmatpush.bf16.msra.mxu3 %v2940_v42 }
  0x38   :  { %251 = vmatpush.bf16.msra.mxu0 %v190_v22  ;;  %2976 = vmatpush.bf16.msra.mxu2 %v190_v22 }
  0x3b   :  { %447 = vmatpush.bf16.msra.mxu1 %v2939_v44  ;;  %2984 = vmatpush.bf16.msra.mxu3 %v2939_v44 }
  0x3c   :  { %252 = vmatpush.bf16.msra.mxu0 %v189_v23  ;;  %2977 = vmatpush.bf16.msra.mxu2 %v189_v23 }
  0x3f   :  { %253 = vmatmul.bf16.vlgmr.msra.gmra.mxu0 %v3512_v24  ;;  %273 = vmatmul.bf16.vlgmr.msra.gmra.mxu2 %v3515_v25 }
  0x40   :  { %490 = vmatpush.bf16.msrb.mxu2 %v2953_v29  ;;  %448 = vmatpush.bf16.msra.mxu1 %v2938_v46 }
  0x41   :  { %2985 = vmatpush.bf16.msra.mxu3 %v2938_v46 }
  0x44   :  { %491 = vmatpush.bf16.msrb.mxu2 %v2952_v31 }
  0x48   :  { %492 = vmatpush.bf16.msrb.mxu2 %v2951_v33 }
  0x4c   :  { %493 = vmatpush.bf16.msrb.mxu2 %v2950_v36 }
  0x4f   :  { %258 = vmatmul.bf16.gmra.mxu0 %v3518_v26  ;;  %278 = vmatmul.bf16.gmra.mxu2 %v3521_v27 }
  0x50   :  { %494 = vmatpush.bf16.msrb.mxu2 %v2949_v39 }
  0x54   :  { %495 = vmatpush.bf16.msrb.mxu2 %v2948_v43 }
  0x58   :  { %496 = vmatpush.bf16.msrb.mxu2 %v2947_v45 }
  0x5c   :  { %497 = vmatpush.bf16.msrb.mxu2 %v2946_v47 }
  0x5f   :  { %263 = vmatmul.bf16.gmra.mxu0 %v3524_v34  ;;  %283 = vmatmul.bf16.gmra.mxu2 %v3526_v37 }
  0x6f   :  { %268 = vmatmul.bf16.gmra.mxu0 %v3530_v40  ;;  %288 = vmatmul.bf16.gmra.mxu2 %v2937_v41 }
  0xbc   :  { %v254_v48 = vpop.f32.mrf.mxu0 }
  0xbd   :  { %v294_v50 = vadd.f32 %v254_v48, %v3498_v18  ;;  %v310_v51 = vmul.f32 %v254_v48, %v3498_v18 }
  0xc2   :  { %v274_v56 = vpop.f32.mrf.mxu2 }
  0xc3   :  { %v302_v58 = vadd.f32 %v274_v56, %v3470_v8 }
  0xc4   :  { %v256_v49 = vpop.f32.mrf.mxu0 }
  0xc5   :  { %v295_v52 = vadd.f32 %v256_v49, %v3502_v20  ;;  %v311_v53 = vmul.f32 %v256_v49, %v3502_v20 }
  0xc7   :  { %v327_v54 = vpack.c.bf16 %v311_v53, %v310_v51  ;;  %v326_v55 = vpack.c.bf16 %v295_v52, %v294_v50  ;;  %v318_v52 = vmul.f32 %v274_v56, %v3470_v8 }
  0xc9   :  { %449 = vmatmul.bf16.vlgmr.msra.gmra.mxu1 %v326_v55  ;;  %498 = vmatmul.bf16.vlgmr.msrb.gmra.mxu2 %v327_v54 }
  0xca   :  { %v276_v59 = vpop.f32.mrf.mxu2 }
  0xcb   :  { %v303_v60 = vadd.f32 %v276_v59, %v3474_v10  ;;  %v319_v53 = vmul.f32 %v276_v59, %v3474_v10 }
  0xcc   :  { %v259_v57 = vpop.f32.mrf.mxu0 }
  0xcd   :  { %v296_v61 = vadd.f32 %v259_v57, %v3492_v16  ;;  %v312_v63 = vmul.f32 %v259_v57, %v3492_v16  ;;  %v334_v9 = vpack.c.bf16 %v303_v60, %v302_v58  ;;  %v335_v54 = vpack.c.bf16 %v319_v53, %v318_v52 }
  0xcf   :  { %469 = vmatmul.bf16.vlgmr.msra.gmra.mxu3 %v334_v9 }
  0xd2   :  { %v279_v19 = vpop.f32.mrf.mxu2 }
  0xd3   :  { %v304_v21 = vadd.f32 %v279_v19, %v3464_v6 }
  0xd4   :  { %v261_v62 = vpop.f32.mrf.mxu0 }
  0xd5   :  { %v297_v3 = vadd.f32 %v261_v62, %v3494_v17  ;;  %v313_v5 = vmul.f32 %v261_v62, %v3494_v17 }
  0xd7   :  { %v328_v14 = vpack.c.bf16 %v297_v3, %v296_v61  ;;  %v329_v18 = vpack.c.bf16 %v313_v5, %v312_v63 }
  0xd9   :  { %454 = vmatmul.bf16.gmra.mxu1 %v328_v14  ;;  %503 = vmatmul.bf16.gmra.mxu2 %v329_v18 }
  0xda   :  { %v281_v22 = vpop.f32.mrf.mxu2 }
  0xdb   :  { %v305_v23 = vadd.f32 %v281_v22, %v3466_v7  ;;  %v321_v55 = vmul.f32 %v281_v22, %v3466_v7 }
  0xdc   :  { %v264_v20 = vpop.f32.mrf.mxu0 }
  0xdd   :  { %v336_v29 = vpack.c.bf16 %v305_v23, %v304_v21  ;;  %v298_v16 = vadd.f32 %v264_v20, %v3484_v13  ;;  %v314_v30 = vmul.f32 %v264_v20, %v3484_v13 }
  0xdf   :  { %474 = vmatmul.bf16.gmra.mxu3 %v336_v29 }
  0xe2   :  { %v284_v35 = vpop.f32.mrf.mxu2 }
  0xe3   :  { %v306_v38 = vadd.f32 %v284_v35, %v3452_v2  ;;  %v322_v58 = vmul.f32 %v284_v35, %v3452_v2 }
  0xe4   :  { %v266_v28 = vpop.f32.mrf.mxu0 }
  0xe5   :  { %v299_v17 = vadd.f32 %v266_v28, %v3488_v15  ;;  %v315_v31 = vmul.f32 %v266_v28, %v3488_v15 }
  0xe7   :  { %v330_v32 = vpack.c.bf16 %v299_v17, %v298_v16  ;;  %v331_v33 = vpack.c.bf16 %v315_v31, %v314_v30 }
  0xe9   :  { %459 = vmatmul.bf16.gmra.mxu1 %v330_v32  ;;  %508 = vmatmul.bf16.gmra.mxu2 %v331_v33 }
  0xea   :  { %v286_v39 = vpop.f32.mrf.mxu2 }
  0xeb   :  { %v307_v41 = vadd.f32 %v286_v39, %v3457_v4  ;;  %v323_v60 = vmul.f32 %v286_v39, %v3457_v4 }
  0xec   :  { %v269_v36 = vpop.f32.mrf.mxu0 }
  0xed   :  { %v338_v43 = vpack.c.bf16 %v307_v41, %v306_v38  ;;  %v300_v13 = vadd.f32 %v269_v36, %v3478_v11  ;;  %v316_v44 = vmul.f32 %v269_v36, %v3478_v11  ;;  %v339_v61 = vpack.c.bf16 %v323_v60, %v322_v58 }
  0xef   :  { %479 = vmatmul.bf16.gmra.mxu3 %v338_v43 }
  0xf2   :  { %v289_v48 = vpop.f32.mrf.mxu2 }
  0xf3   :  { %v308_v49 = vadd.f32 %v289_v48, %v3448_v0  ;;  %v324_v8 = vmul.f32 %v289_v48, %v3448_v0 }
  0xf4   :  { %v271_v42 = vpop.f32.mrf.mxu0 }
  0xf5   :  { %v301_v15 = vadd.f32 %v271_v42, %v3480_v12  ;;  %v317_v45 = vmul.f32 %v271_v42, %v3480_v12  ;;  %v320_v12 = vmul.f32 %v279_v19, %v3464_v6  ;;  %v3568_v6 = vld [vmem:[%s4392_s6] ss:$0 sm:$0xff]  ;;  %s2893_s6 = smul.u32 24, %s1614_s15  ;;  %s3883_s15 = sld [smem:[#allocation5 + $0x4]] }
  0xf7   :  { %v332_v46 = vpack.c.bf16 %v301_v15, %v300_v13  ;;  %v333_v47 = vpack.c.bf16 %v317_v45, %v316_v44  ;;  %v337_v57 = vpack.c.bf16 %v321_v55, %v320_v12  ;;  %s3862_s1 = sadd.s32 %s2893_s6, %s1617_s19  ;;  %s1878_s19 = sshra.s32 %s3873_s4, 3 }
  0xf8   :  { %s1621_s20 = scalar_lea.vmem [#allocation2], %s3862_s1  ;;  %s2020_s1 = sshra.s32 %s3880_s14, 3 }
  0xf9   :  { %464 = vmatmul.bf16.gmra.mxu1 %v332_v46  ;;  %513 = vmatmul.bf16.gmra.mxu2 %v333_v47  ;;  %s3925_s22 = smul.u32 24, %s1878_s19 }
  0xfa   :  { %v291_v50 = vpop.f32.mrf.mxu2  ;;  %s3941_s29 = smul.u32 24, %s2020_s1 }
  0xfb   :  { %v309_v51 = vadd.f32 %v291_v50, %v3450_v1  ;;  %v325_v10 = vmul.f32 %v291_v50, %v3450_v1 }
  0xfd   :  { %v340_v11 = vpack.c.bf16 %v309_v51, %v308_v49  ;;  %v341_v56 = vpack.c.bf16 %v325_v10, %v324_v8 }
  0xff   :  { %484 = vmatmul.bf16.gmra.mxu3 %v340_v11 }
 0x109   :  { %518 = vmatmul.bf16.gmra.mxu2 %v335_v54 }
 0x119   :  { %523 = vmatmul.bf16.gmra.mxu2 %v337_v57 }
 0x129   :  { %528 = vmatmul.bf16.gmra.mxu2 %v339_v61 }
 0x139   :  { %533 = vmatmul.bf16.gmra.mxu2 %v341_v56 }
 0x146   :  { %v450_v59 = vpop.f32.mrf.mxu1 }
 0x147   :  { %v451_v7 = vadd.f32 %v3568_v6, %v450_v59 }
 0x14c   :  { %v499_v62 = vpop.f32.mrf.mxu2 }
 0x14d   :  { %v500_v2 = vadd.f32 %v499_v62, %v451_v7 }
 0x14e   :  { %v452_v63 = vpop.f32.mrf.mxu1 }
 0x14f   :  { %v539_v4 = vmul.f32 0.2, %v500_v2  ;;  %v453_v0 = vadd.f32 %v3568_v6, %v452_v63 }
 0x151   :  { %v3571_v3 = vmax.f32 %v500_v2, %v539_v4 }
 0x152   :  { %v470_v51 = vpop.f32.mrf.mxu3 }
 0x153   :  { %v571_v1 = vmul.f32 %v3571_v3, %v3571_v3  ;;  %v471_v7 = vadd.f32 %v3568_v6, %v470_v51 }
 0x154   :  { %v501_v5 = vpop.f32.mrf.mxu2 }
 0x155   :  { %v502_v9 = vadd.f32 %v501_v5, %v453_v0  ;;  %587 = vadd.xlane.f32.xlu0 %v571_v1 }
 0x156   :  { %v455_v14 = vpop.f32.mrf.mxu1 }
 0x157   :  { %v540_v18 = vmul.f32 0.2, %v502_v9  ;;  %v456_v20 = vadd.f32 %v3568_v6, %v455_v14 }
 0x159   :  { %v3576_v19 = vmax.f32 %v502_v9, %v540_v18 }
 0x15a   :  { %v472_v61 = vpop.f32.mrf.mxu3 }
 0x15b   :  { %v572_v21 = vmul.f32 %v3576_v19, %v3576_v19  ;;  %v473_v5 = vadd.f32 %v3568_v6, %v472_v61 }
 0x15c   :  { %v504_v22 = vpop.f32.mrf.mxu2 }
 0x15d   :  { %v505_v23 = vadd.f32 %v504_v22, %v456_v20  ;;  %589 = vadd.xlane.f32.xlu0 %v572_v21 }
 0x15e   :  { %v457_v28 = vpop.f32.mrf.mxu1 }
 0x15f   :  { %v541_v29 = vmul.f32 0.2, %v505_v23  ;;  %v458_v30 = vadd.f32 %v3568_v6, %v457_v28 }
 0x161   :  { %v3581_v16 = vmax.f32 %v505_v23, %v541_v29 }
 0x162   :  { %v475_v4 = vpop.f32.mrf.mxu3 }
 0x163   :  { %v573_v17 = vmul.f32 %v3581_v16, %v3581_v16  ;;  %v476_v23 = vadd.f32 %v3568_v6, %v475_v4 }
 0x164   :  { %v506_v31 = vpop.f32.mrf.mxu2 }
 0x165   :  { %v507_v32 = vadd.f32 %v506_v31, %v458_v30  ;;  %591 = vadd.xlane.f32.xlu1 %v573_v17 }
 0x166   :  { %v460_v33 = vpop.f32.mrf.mxu1 }
 0x167   :  { %v542_v35 = vmul.f32 0.2, %v507_v32  ;;  %v461_v38 = vadd.f32 %v3568_v6, %v460_v33 }
 0x169   :  { %v3586_v36 = vmax.f32 %v507_v32, %v542_v35 }
 0x16a   :  { %v477_v21 = vpop.f32.mrf.mxu3 }
 0x16b   :  { %v574_v39 = vmul.f32 %v3586_v36, %v3586_v36  ;;  %v478_v33 = vadd.f32 %v3568_v6, %v477_v21 }
 0x16c   :  { %v509_v41 = vpop.f32.mrf.mxu2 }
 0x16d   :  { %v510_v42 = vadd.f32 %v509_v41, %v461_v38  ;;  %593 = vadd.xlane.f32.xlu1 %v574_v39 }
 0x16e   :  { %v462_v43 = vpop.f32.mrf.mxu1 }
 0x16f   :  { %v543_v13 = vmul.f32 0.2, %v510_v42  ;;  %v463_v15 = vadd.f32 %v3568_v6, %v462_v43 }
 0x171   :  { %v3591_v44 = vmax.f32 %v510_v42, %v543_v13 }
 0x172   :  { %v480_v32 = vpop.f32.mrf.mxu3 }
 0x173   :  { %v575_v45 = vmul.f32 %v3591_v44, %v3591_v44  ;;  %v481_v43 = vadd.f32 %v3568_v6, %v480_v32 }
 0x174   :  { %v511_v46 = vpop.f32.mrf.mxu2 }
 0x175   :  { %v512_v47 = vadd.f32 %v511_v46, %v463_v15  ;;  %595 = vadd.xlane.f32.xlu2 %v575_v45 }
 0x176   :  { %v465_v48 = vpop.f32.mrf.mxu1 }
 0x177   :  { %v544_v49 = vmul.f32 0.2, %v512_v47  ;;  %v466_v52 = vadd.f32 %v3568_v6, %v465_v48 }
 0x179   :  { %v3596_v50 = vmax.f32 %v512_v47, %v544_v49 }
 0x17a   :  { %v482_v15 = vpop.f32.mrf.mxu3 }
 0x17b   :  { %v576_v53 = vmul.f32 %v3596_v50, %v3596_v50  ;;  %v483_v49 = vadd.f32 %v3568_v6, %v482_v15 }
 0x17c   :  { %v514_v11 = vpop.f32.mrf.mxu2 }
 0x17d   :  { %v515_v54 = vadd.f32 %v514_v11, %v466_v52  ;;  %597 = vadd.xlane.f32.xlu2 %v576_v53 }
 0x17e   :  { %v467_v55 = vpop.f32.mrf.mxu1 }
 0x17f   :  { %v545_v12 = vmul.f32 0.2, %v515_v54  ;;  %v468_v58 = vadd.f32 %v3568_v6, %v467_v55 }
 0x181   :  { %v3601_v57 = vmax.f32 %v515_v54, %v545_v12 }
 0x182   :  { %v485_v11 = vpop.f32.mrf.mxu3 }
 0x183   :  { %v577_v60 = vmul.f32 %v3601_v57, %v3601_v57  ;;  %v486_v55 = vadd.f32 %v3568_v6, %v485_v11 }
 0x184   :  { %v516_v8 = vpop.f32.mrf.mxu2 }
 0x185   :  { %v517_v10 = vadd.f32 %v516_v8, %v468_v58  ;;  %599 = vadd.xlane.f32.xlu0 %v577_v60 }
 0x187   :  { %v546_v56 = vmul.f32 0.2, %v517_v10 }
 0x189   :  { %v3606_v59 = vmax.f32 %v517_v10, %v546_v56 }
 0x18a   :  { %v487_v10 = vpop.f32.mrf.mxu3 }
 0x18b   :  { %v578_v62 = vmul.f32 %v3606_v59, %v3606_v59 }
 0x18c   :  { %v519_v2 = vpop.f32.mrf.mxu2 }
 0x18d   :  { %v520_v63 = vadd.f32 %v519_v2, %v471_v7  ;;  %601 = vadd.xlane.f32.xlu1 %v578_v62  ;;  %v488_v7 = vadd.f32 %v3568_v6, %v487_v10 }
 0x18f   :  { %v547_v0 = vmul.f32 0.2, %v520_v63 }
 0x191   :  { %v3611_v1 = vmax.f32 %v520_v63, %v547_v0 }
 0x193   :  { %v579_v9 = vmul.f32 %v3611_v1, %v3611_v1 }
 0x194   :  { %v521_v14 = vpop.f32.mrf.mxu2 }
 0x195   :  { %v522_v18 = vadd.f32 %v521_v14, %v473_v5  ;;  %603 = vadd.xlane.f32.xlu2 %v579_v9 }
 0x197   :  { %v548_v20 = vmul.f32 0.2, %v522_v18 }
 0x199   :  { %v3616_v22 = vmax.f32 %v522_v18, %v548_v20 }
 0x19b   :  { %v580_v28 = vmul.f32 %v3616_v22, %v3616_v22  ;;  %v864_v32 = vpack.c.bf16 %v3616_v22, %v3611_v1 }
 0x19c   :  { %v524_v29 = vpop.f32.mrf.mxu2 }
 0x19d   :  { %v525_v30 = vadd.f32 %v524_v29, %v476_v23  ;;  %605 = vadd.xlane.f32.xlu0 %v580_v28 }
 0x19f   :  { %v549_v17 = vmul.f32 0.2, %v525_v30 }
 0x1a1   :  { %v3621_v31 = vmax.f32 %v525_v30, %v549_v17 }
 0x1a3   :  { %v581_v35 = vmul.f32 %v3621_v31, %v3621_v31 }
 0x1a4   :  { %v526_v38 = vpop.f32.mrf.mxu2 }
 0x1a5   :  { %v527_v39 = vadd.f32 %v526_v38, %v478_v33  ;;  %607 = vadd.xlane.f32.xlu1 %v581_v35 }
 0x1a7   :  { %v550_v41 = vmul.f32 0.2, %v527_v39 }
 0x1a9   :  { %v3626_v42 = vmax.f32 %v527_v39, %v550_v41 }
 0x1ab   :  { %v582_v13 = vmul.f32 %v3626_v42, %v3626_v42  ;;  %v865_v29 = vpack.c.bf16 %v3626_v42, %v3621_v31 }
 0x1ac   :  { %v529_v45 = vpop.f32.mrf.mxu2 }
 0x1ad   :  { %v530_v46 = vadd.f32 %v529_v45, %v481_v43  ;;  %609 = vadd.xlane.f32.xlu2 %v582_v13  ;;  %v863_v13 = vpack.c.bf16 %v3606_v59, %v3601_v57 }
 0x1af   :  { %v551_v47 = vmul.f32 0.2, %v530_v46 }
 0x1b1   :  { %v3631_v48 = vmax.f32 %v530_v46, %v551_v47 }
 0x1b3   :  { %v583_v51 = vmul.f32 %v3631_v48, %v3631_v48 }
 0x1b4   :  { %v531_v52 = vpop.f32.mrf.mxu2 }
 0x1b5   :  { %v532_v53 = vadd.f32 %v531_v52, %v483_v49  ;;  %611 = vadd.xlane.f32.xlu0 %v583_v51  ;;  %v862_v49 = vpack.c.bf16 %v3596_v50, %v3591_v44 }
 0x1b7   :  { %v552_v54 = vmul.f32 0.2, %v532_v53 }
 0x1b9   :  { %v3636_v12 = vmax.f32 %v532_v53, %v552_v54 }
 0x1bb   :  { %v584_v58 = vmul.f32 %v3636_v12, %v3636_v12  ;;  %v866_v6 = vpack.c.bf16 %v3636_v12, %v3631_v48 }
 0x1bc   :  { %v534_v60 = vpop.f32.mrf.mxu2 }
 0x1bd   :  { %v535_v61 = vadd.f32 %v534_v60, %v486_v55  ;;  %613 = vadd.xlane.f32.xlu1 %v584_v58  ;;  %v861_v58 = vpack.c.bf16 %v3586_v36, %v3581_v16 }
 0x1bf   :  { %v553_v8 = vmul.f32 0.2, %v535_v61 }
 0x1c1   :  { %v3641_v56 = vmax.f32 %v535_v61, %v553_v8 }
 0x1c3   :  { %v585_v62 = vmul.f32 %v3641_v56, %v3641_v56 }
 0x1c4   :  { %v536_v2 = vpop.f32.mrf.mxu2 }
 0x1c5   :  { %v537_v63 = vadd.f32 %v536_v2, %v488_v7  ;;  %615 = vadd.xlane.f32.xlu2 %v585_v62  ;;  %v860_v7 = vpack.c.bf16 %v3576_v19, %v3571_v3 }
 0x1c7   :  { %v554_v4 = vmul.f32 0.2, %v537_v63 }
 0x1c8   :  { %v588_v0 = vpop.xlane.xlu0 %587 }
 0x1c9   :  { %v3646_v5 = vmax.f32 %v537_v63, %v554_v4  ;;  %v619_v9 = vmax.f32 %v588_v0, 1e-24 }
 0x1cb   :  { %3105 = vrsqrt.f32 %v619_v9  ;;  %v867_v14 = vpack.c.bf16 %v3646_v5, %v3641_v56  ;;  %v586_v18 = vmul.f32 %v3646_v5, %v3646_v5  ;;  %vm641_vm1 = vweird.f32 %v619_v9 }
 0x1cd   :  { %868 = vmatpush.bf16.msrb.mxu3 %v867_v14  ;;  %617 = vadd.xlane.f32.xlu0 %v586_v18 }
 0x1d0   :  { %v590_v20 = vpop.xlane.xlu0 %589 }
 0x1d1   :  { %v3106_v21 = vpop.eup %3105  ;;  %v620_v23 = vmax.f32 %v590_v20, 1e-24  ;;  %869 = vmatpush.bf16.msrb.mxu3 %v866_v6 }
 0x1d2   :  { %v636_v28 = vmul.f32 %v3106_v21, %v619_v9  ;;  %vm642_vm0 = vweird.f32 %v3106_v21 }
 0x1d3   :  { %3107 = vrsqrt.f32 %v620_v23  ;;  %vm643_vm2 = vmor %vm641_vm1, %vm642_vm0  ;;  %vm651_vm4 = vweird.f32 %v620_v23 }
 0x1d4   :  { %v637_v30 = vmul.f32 %v3106_v21, %v636_v28 }
 0x1d5   :  { %870 = vmatpush.bf16.msrb.mxu3 %v865_v29 }
 0x1d6   :  { %v638_v17 = vmul.f32 0.5, %v637_v30 }
 0x1d8   :  { %v639_v33 = vsub.f32 1.5, %v638_v17  ;;  %v592_v35 = vpop.xlane.xlu1 %591 }
 0x1d9   :  { %v3108_v38 = vpop.eup %3107  ;;  %v621_v39 = vmax.f32 %v592_v35, 1e-24  ;;  %871 = vmatpush.bf16.msrb.mxu3 %v864_v32 }
 0x1da   :  { %v640_v41 = vmul.f32 %v3106_v21, %v639_v33  ;;  %v646_v43 = vmul.f32 %v3108_v38, %v620_v23  ;;  %vm652_vm3 = vweird.f32 %v3108_v38 }
 0x1db   :  { %3109 = vrsqrt.f32 %v621_v39  ;;  %vm653_vm5 = vmor %vm651_vm4, %vm652_vm3  ;;  %vm661_vm7 = vweird.f32 %v621_v39 }
 0x1dc   :  { %v644_v15 = vsel %vm643_vm2, %v3106_v21, %v640_v41  ;;  %v647_v45 = vmul.f32 %v3108_v38, %v646_v43 }
 0x1dd   :  { %v795_v46 = vmul.f32 %v644_v15, %v3571_v3  ;;  %872 = vmatpush.bf16.msrb.mxu3 %v863_v13 }
 0x1de   :  { %v648_v47 = vmul.f32 0.5, %v647_v45 }
 0x1df   :  { %811 = vst [vmem:[#allocation2 + $0x8] sm:$0xff] %v795_v46 }
 0x1e0   :  { %v649_v51 = vsub.f32 1.5, %v648_v47  ;;  %v594_v52 = vpop.xlane.xlu1 %593 }
 0x1e1   :  { %v3110_v53 = vpop.eup %3109  ;;  %v622_v11 = vmax.f32 %v594_v52, 1e-24  ;;  %873 = vmatpush.bf16.msrb.mxu3 %v862_v49 }
 0x1e2   :  { %v650_v54 = vmul.f32 %v3108_v38, %v649_v51  ;;  %v656_v55 = vmul.f32 %v3110_v53, %v621_v39  ;;  %vm662_vm6 = vweird.f32 %v3110_v53 }
 0x1e3   :  { %3111 = vrsqrt.f32 %v622_v11  ;;  %vm663_vm8 = vmor %vm661_vm7, %vm662_vm6  ;;  %vm671_vm10 = vweird.f32 %v622_v11 }
 0x1e4   :  { %v654_v60 = vsel %vm653_vm5, %v3108_v38, %v650_v54  ;;  %v657_v61 = vmul.f32 %v3110_v53, %v656_v55 }
 0x1e5   :  { %v796_v8 = vmul.f32 %v654_v60, %v3576_v19  ;;  %874 = vmatpush.bf16.msrb.mxu3 %v861_v58 }
 0x1e6   :  { %v658_v10 = vmul.f32 0.5, %v657_v61 }
 0x1e7   :  { %812 = vst [vmem:[#allocation2 + $0x20] sm:$0xff] %v796_v8 }
 0x1e8   :  { %v659_v62 = vsub.f32 1.5, %v658_v10  ;;  %v596_v2 = vpop.xlane.xlu2 %595 }
 0x1e9   :  { %v3112_v63 = vpop.eup %3111  ;;  %v623_v4 = vmax.f32 %v596_v2, 1e-24  ;;  %875 = vmatpush.bf16.msrb.mxu3 %v860_v7 }
 0x1ea   :  { %v660_v0 = vmul.f32 %v3110_v53, %v659_v62  ;;  %v666_v9 = vmul.f32 %v3112_v63, %v622_v11  ;;  %vm672_vm9 = vweird.f32 %v3112_v63 }
 0x1eb   :  { %3113 = vrsqrt.f32 %v623_v4  ;;  %vm673_vm11 = vmor %vm671_vm10, %vm672_vm9  ;;  %vm681_vm13 = vweird.f32 %v623_v4 }
 0x1ec   :  { %v664_v14 = vsel %vm663_vm8, %v3110_v53, %v660_v0  ;;  %v667_v18 = vmul.f32 %v3112_v63, %v666_v9  ;;  %876 = vmatmul.bf16.vlgmr.msrb.gmra.mxu3 %v3512_v24 }
 0x1ed   :  { %v797_v6 = vmul.f32 %v664_v14, %v3581_v16 }
 0x1ee   :  { %v668_v20 = vmul.f32 0.5, %v667_v18 }
 0x1ef   :  { %813 = vst [vmem:[#allocation2 + $0x38] sm:$0xff] %v797_v6 }
 0x1f0   :  { %v669_v21 = vsub.f32 1.5, %v668_v20  ;;  %v598_v23 = vpop.xlane.xlu2 %597 }
 0x1f1   :  { %v3114_v28 = vpop.eup %3113  ;;  %v624_v29 = vmax.f32 %v598_v23, 1e-24 }
 0x1f2   :  { %v670_v30 = vmul.f32 %v3112_v63, %v669_v21  ;;  %v676_v17 = vmul.f32 %v3114_v28, %v623_v4  ;;  %vm682_vm12 = vweird.f32 %v3114_v28 }
 0x1f3   :  { %3115 = vrsqrt.f32 %v624_v29  ;;  %vm683_vm14 = vmor %vm681_vm13, %vm682_vm12  ;;  %vm691_vm0 = vweird.f32 %v624_v29 }
 0x1f4   :  { %v674_v32 = vsel %vm673_vm11, %v3112_v63, %v670_v30  ;;  %v677_v33 = vmul.f32 %v3114_v28, %v676_v17 }
 0x1f5   :  { %v798_v35 = vmul.f32 %v674_v32, %v3586_v36 }
 0x1f6   :  { %v678_v38 = vmul.f32 0.5, %v677_v33 }
 0x1f7   :  { %814 = vst [vmem:[#allocation2 + $0x50] sm:$0xff] %v798_v35 }
 0x1f8   :  { %v679_v24 = vsub.f32 1.5, %v678_v38  ;;  %v600_v39 = vpop.xlane.xlu0 %599 }
 0x1f9   :  { %v3116_v41 = vpop.eup %3115  ;;  %v625_v43 = vmax.f32 %v600_v39, 1e-24 }
 0x1fa   :  { %v680_v13 = vmul.f32 %v3114_v28, %v679_v24  ;;  %v686_v15 = vmul.f32 %v3116_v41, %v624_v29  ;;  %vm692_vm15 = vweird.f32 %v3116_v41 }
 0x1fb   :  { %3117 = vrsqrt.f32 %v625_v43  ;;  %vm693_vm1 = vmor %vm691_vm0, %vm692_vm15  ;;  %vm701_vm3 = vweird.f32 %v625_v43 }
 0x1fc   :  { %v684_v45 = vsel %vm683_vm14, %v3114_v28, %v680_v13  ;;  %v687_v46 = vmul.f32 %v3116_v41, %v686_v15  ;;  %881 = vmatmul.bf16.gmra.mxu3 %v3518_v26 }
 0x1fd   :  { %v799_v47 = vmul.f32 %v684_v45, %v3591_v44 }
 0x1fe   :  { %v688_v49 = vmul.f32 0.5, %v687_v46 }
 0x1ff   :  { %815 = vst [vmem:[#allocation2 + $0x68] sm:$0xff] %v799_v47 }
 0x200   :  { %v689_v51 = vsub.f32 1.5, %v688_v49  ;;  %v602_v52 = vpop.xlane.xlu1 %601 }
 0x201   :  { %v3118_v53 = vpop.eup %3117  ;;  %v626_v11 = vmax.f32 %v602_v52, 1e-24 }
 0x202   :  { %v690_v54 = vmul.f32 %v3116_v41, %v689_v51  ;;  %v696_v55 = vmul.f32 %v3118_v53, %v625_v43  ;;  %vm702_vm2 = vweird.f32 %v3118_v53 }
 0x203   :  { %3119 = vrsqrt.f32 %v626_v11  ;;  %vm703_vm4 = vmor %vm701_vm3, %vm702_vm2  ;;  %vm711_vm6 = vweird.f32 %v626_v11 }
 0x204   :  { %v694_v58 = vsel %vm693_vm1, %v3116_v41, %v690_v54  ;;  %v697_v60 = vmul.f32 %v3118_v53, %v696_v55 }
 0x205   :  { %v800_v61 = vmul.f32 %v694_v58, %v3596_v50 }
 0x206   :  { %v698_v8 = vmul.f32 0.5, %v697_v60 }
 0x207   :  { %816 = vst [vmem:[#allocation2 + $0x80] sm:$0xff] %v800_v61 }
 0x208   :  { %v699_v26 = vsub.f32 1.5, %v698_v8  ;;  %v604_v10 = vpop.xlane.xlu2 %603 }
 0x209   :  { %v3120_v7 = vpop.eup %3119  ;;  %v627_v62 = vmax.f32 %v604_v10, 1e-24 }
 0x20a   :  { %v700_v2 = vmul.f32 %v3118_v53, %v699_v26  ;;  %v706_v63 = vmul.f32 %v3120_v7, %v626_v11  ;;  %vm712_vm5 = vweird.f32 %v3120_v7 }
 0x20b   :  { %3121 = vrsqrt.f32 %v627_v62  ;;  %vm713_vm7 = vmor %vm711_vm6, %vm712_vm5  ;;  %vm721_vm9 = vweird.f32 %v627_v62 }
 0x20c   :  { %v704_v4 = vsel %vm703_vm4, %v3118_v53, %v700_v2  ;;  %v707_v0 = vmul.f32 %v3120_v7, %v706_v63  ;;  %886 = vmatmul.bf16.gmra.mxu3 %v3524_v34 }
 0x20d   :  { %v801_v9 = vmul.f32 %v704_v4, %v3601_v57 }
 0x20e   :  { %v708_v14 = vmul.f32 0.5, %v707_v0 }
 0x20f   :  { %817 = vst [vmem:[#allocation2 + $0x98] sm:$0xff] %v801_v9 }
 0x210   :  { %v709_v18 = vsub.f32 1.5, %v708_v14  ;;  %v606_v6 = vpop.xlane.xlu0 %605 }
 0x211   :  { %v3122_v20 = vpop.eup %3121  ;;  %v628_v21 = vmax.f32 %v606_v6, 1e-24 }
 0x212   :  { %v710_v23 = vmul.f32 %v3120_v7, %v709_v18  ;;  %v716_v28 = vmul.f32 %v3122_v20, %v627_v62  ;;  %vm722_vm8 = vweird.f32 %v3122_v20 }
 0x213   :  { %3123 = vrsqrt.f32 %v628_v21  ;;  %vm723_vm10 = vmor %vm721_vm9, %vm722_vm8  ;;  %vm731_vm12 = vweird.f32 %v628_v21 }
 0x214   :  { %v714_v29 = vsel %vm713_vm7, %v3120_v7, %v710_v23  ;;  %v717_v30 = vmul.f32 %v3122_v20, %v716_v28 }
 0x215   :  { %v802_v17 = vmul.f32 %v714_v29, %v3606_v59 }
 0x216   :  { %v718_v32 = vmul.f32 0.5, %v717_v30 }
 0x217   :  { %818 = vst [vmem:[#allocation2 + $0xb0] sm:$0xff] %v802_v17 }
 0x218   :  { %v719_v34 = vsub.f32 1.5, %v718_v32  ;;  %v608_v33 = vpop.xlane.xlu1 %607 }
 0x219   :  { %v3124_v35 = vpop.eup %3123  ;;  %v629_v38 = vmax.f32 %v608_v33, 1e-24  ;;  %v2969_v33 = vld [vmem:[#allocation13 + $0x78] sm:$0xff] }
 0x21a   :  { %v720_v24 = vmul.f32 %v3122_v20, %v719_v34  ;;  %v726_v39 = vmul.f32 %v3124_v35, %v628_v21  ;;  %vm732_vm11 = vweird.f32 %v3124_v35  ;;  %v2961_v34 = vld [vmem:[#allocation13 + $0x38] sm:$0xff]  ;;  %1113 = vmatpush.bf16.msrb.mxu1 %v2969_v33 }
 0x21b   :  { %3125 = vrsqrt.f32 %v629_v38  ;;  %vm733_vm13 = vmor %vm731_vm12, %vm732_vm11  ;;  %vm741_vm15 = vweird.f32 %v629_v38  ;;  %1064 = vmatpush.bf16.msrb.mxu0 %v2961_v34 }
 0x21c   :  { %v724_v41 = vsel %vm723_vm10, %v3122_v20, %v720_v24  ;;  %v727_v43 = vmul.f32 %v3124_v35, %v726_v39  ;;  %891 = vmatmul.bf16.gmra.mxu3 %v3530_v40  ;;  %v2960_v39 = vld [vmem:[#allocation13 + $0x30] sm:$0xff] }
 0x21d   :  { %v803_v13 = vmul.f32 %v724_v41, %v3611_v1  ;;  %v2968_v41 = vld [vmem:[#allocation13 + $0x70] sm:$0xff] }
 0x21e   :  { %v728_v15 = vmul.f32 0.5, %v727_v43  ;;  %1114 = vmatpush.bf16.msrb.mxu1 %v2968_v41 }
 0x21f   :  { %819 = vst [vmem:[#allocation2 + $0xc8] sm:$0xff] %v803_v13  ;;  %1065 = vmatpush.bf16.msrb.mxu0 %v2960_v39 }
 0x220   :  { %v729_v45 = vsub.f32 1.5, %v728_v15  ;;  %v610_v46 = vpop.xlane.xlu2 %609 }
 0x221   :  { %v3126_v47 = vpop.eup %3125  ;;  %v630_v49 = vmax.f32 %v610_v46, 1e-24 }
 0x222   :  { %v730_v51 = vmul.f32 %v3124_v35, %v729_v45  ;;  %v736_v52 = vmul.f32 %v3126_v47, %v629_v38  ;;  %vm742_vm14 = vweird.f32 %v3126_v47 }
 0x223   :  { %3127 = vrsqrt.f32 %v630_v49  ;;  %vm743_vm0 = vmor %vm741_vm15, %vm742_vm14  ;;  %vm751_vm2 = vweird.f32 %v630_v49 }
 0x224   :  { %v734_v53 = vsel %vm733_vm13, %v3124_v35, %v730_v51  ;;  %v737_v11 = vmul.f32 %v3126_v47, %v736_v52 }
 0x225   :  { %v804_v54 = vmul.f32 %v734_v53, %v3616_v22 }
 0x226   :  { %v738_v55 = vmul.f32 0.5, %v737_v11 }
 0x227   :  { %820 = vst [vmem:[#allocation2 + $0xe0] sm:$0xff] %v804_v54  ;;  %v2958_v54 = vld [vmem:[#allocation13 + $0x20] sm:$0xff] }
 0x228   :  { %v739_v40 = vsub.f32 1.5, %v738_v55  ;;  %v612_v58 = vpop.xlane.xlu0 %611  ;;  %v2966_v55 = vld [vmem:[#allocation13 + $0x60] sm:$0xff] }
 0x229   :  { %v3128_v60 = vpop.eup %3127  ;;  %v631_v61 = vmax.f32 %v612_v58, 1e-24 }
 0x22a   :  { %v740_v8 = vmul.f32 %v3126_v47, %v739_v40  ;;  %v746_v26 = vmul.f32 %v3128_v60, %v630_v49  ;;  %vm752_vm1 = vweird.f32 %v3128_v60  ;;  %v2967_v49 = vld [vmem:[#allocation13 + $0x68] sm:$0xff] }
 0x22b   :  { %3129 = vrsqrt.f32 %v631_v61  ;;  %vm753_vm3 = vmor %vm751_vm2, %vm752_vm1  ;;  %vm761_vm5 = vweird.f32 %v631_v61  ;;  %1115 = vmatpush.bf16.msrb.mxu1 %v2967_v49 }
 0x22c   :  { %v744_v10 = vsel %vm743_vm0, %v3126_v47, %v740_v8  ;;  %v747_v7 = vmul.f32 %v3128_v60, %v746_v26  ;;  %896 = vmatmul.bf16.gmra.mxu3 %v3515_v25  ;;  %v2959_v47 = vld [vmem:[#allocation13 + $0x28] sm:$0xff]  ;;  %v2965_v8 = vld [vmem:[#allocation13 + $0x58] sm:$0xff] }
 0x22d   :  { %v805_v62 = vmul.f32 %v744_v10, %v3621_v31  ;;  %1066 = vmatpush.bf16.msrb.mxu0 %v2959_v47 }
 0x22e   :  { %v748_v2 = vmul.f32 0.5, %v747_v7 }
 0x22f   :  { %821 = vst [vmem:[#allocation2 + $0xf8] sm:$0xff] %v805_v62  ;;  %1116 = vmatpush.bf16.msrb.mxu1 %v2966_v55 }
 0x230   :  { %v749_v63 = vsub.f32 1.5, %v748_v2  ;;  %v614_v4 = vpop.xlane.xlu1 %613 }
 0x231   :  { %v3130_v0 = vpop.eup %3129  ;;  %v632_v9 = vmax.f32 %v614_v4, 1e-24  ;;  %1067 = vmatpush.bf16.msrb.mxu0 %v2958_v54  ;;  %v2956_v4 = vld [vmem:[#allocation13 + $0x10] sm:$0xff] }
 0x232   :  { %v750_v14 = vmul.f32 %v3128_v60, %v749_v63  ;;  %v756_v18 = vmul.f32 %v3130_v0, %v631_v61  ;;  %vm762_vm4 = vweird.f32 %v3130_v0  ;;  %v2957_v61 = vld [vmem:[#allocation13 + $0x18] sm:$0xff] }
 0x233   :  { %3131 = vrsqrt.f32 %v632_v9  ;;  %vm763_vm6 = vmor %vm761_vm5, %vm762_vm4  ;;  %vm771_vm8 = vweird.f32 %v632_v9  ;;  %1117 = vmatpush.bf16.msrb.mxu1 %v2965_v8 }
 0x234   :  { %v754_v6 = vsel %vm753_vm3, %v3128_v60, %v750_v14  ;;  %v757_v20 = vmul.f32 %v3130_v0, %v756_v18  ;;  %v2955_v14 = vld [vmem:[#allocation13 + $0x8] sm:$0xff] }
 0x235   :  { %v806_v21 = vmul.f32 %v754_v6, %v3626_v42  ;;  %1068 = vmatpush.bf16.msrb.mxu0 %v2957_v61  ;;  %v2963_v18 = vld [vmem:[#allocation13 + $0x48] sm:$0xff] }
 0x236   :  { %v758_v23 = vmul.f32 0.5, %v757_v20 }
 0x237   :  { %822 = vst [vmem:[#allocation2 + $0x110] sm:$0xff] %v806_v21  ;;  %v2954_v21 = vld [vmem:[#allocation13] sm:$0xff] }
 0x238   :  { %v759_v25 = vsub.f32 1.5, %v758_v23  ;;  %v616_v28 = vpop.xlane.xlu2 %615  ;;  %v2962_v23 = vld [vmem:[#allocation13 + $0x40] sm:$0xff] }
 0x239   :  { %v3132_v29 = vpop.eup %3131  ;;  %v633_v30 = vmax.f32 %v616_v28, 1e-24  ;;  %1069 = vmatpush.bf16.msrb.mxu0 %v2956_v4 }
 0x23a   :  { %v760_v17 = vmul.f32 %v3130_v0, %v759_v25  ;;  %v766_v32 = vmul.f32 %v3132_v29, %v632_v9  ;;  %vm772_vm7 = vweird.f32 %v3132_v29  ;;  %v3207_v25 = vld [vmem:[#allocation7 + $0x38] sm:$0xff] }
 0x23b   :  { %3133 = vrsqrt.f32 %v633_v30  ;;  %vm773_vm9 = vmor %vm771_vm8, %vm772_vm7  ;;  %vm781_vm11 = vweird.f32 %v633_v30 }
 0x23c   :  { %v764_v35 = vsel %vm763_vm6, %v3130_v0, %v760_v17  ;;  %v767_v38 = vmul.f32 %v3132_v29, %v766_v32  ;;  %901 = vmatmul.bf16.gmra.mxu3 %v3521_v27  ;;  %v2964_v0 = vld [vmem:[#allocation13 + $0x50] sm:$0xff] }
 0x23d   :  { %v807_v24 = vmul.f32 %v764_v35, %v3631_v48  ;;  %1118 = vmatpush.bf16.msrb.mxu1 %v2964_v0  ;;  %1070 = vmatpush.bf16.msrb.mxu0 %v2955_v14 }
 0x23e   :  { %v768_v43 = vmul.f32 0.5, %v767_v38 }
 0x23f   :  { %823 = vst [vmem:[#allocation2 + $0x128] sm:$0xff] %v807_v24 }
 0x240   :  { %v769_v13 = vsub.f32 1.5, %v768_v43  ;;  %v618_v15 = vpop.xlane.xlu0 %617 }
 0x241   :  { %v3134_v45 = vpop.eup %3133  ;;  %v634_v46 = vmax.f32 %v618_v15, 1e-24  ;;  %1119 = vmatpush.bf16.msrb.mxu1 %v2963_v18  ;;  %1071 = vmatpush.bf16.msrb.mxu0 %v2954_v21 }
 0x242   :  { %v770_v51 = vmul.f32 %v3132_v29, %v769_v13  ;;  %v776_v27 = vmul.f32 %v3134_v45, %v633_v30  ;;  %vm782_vm10 = vweird.f32 %v3134_v45 }
 0x243   :  { %3135 = vrsqrt.f32 %v634_v46  ;;  %vm783_vm12 = vmor %vm781_vm11, %vm782_vm10  ;;  %vm791_vm14 = vweird.f32 %v634_v46 }
 0x244   :  { %v774_v52 = vsel %vm773_vm9, %v3132_v29, %v770_v51  ;;  %v777_v53 = vmul.f32 %v3134_v45, %v776_v27 }
 0x245   :  { %v808_v11 = vmul.f32 %v774_v52, %v3636_v12  ;;  %1120 = vmatpush.bf16.msrb.mxu1 %v2962_v23 }
 0x246   :  { %v778_v40 = vmul.f32 0.5, %v777_v53 }
 0x247   :  { %824 = vst [vmem:[#allocation2 + $0x140] sm:$0xff] %v808_v11 }
 0x248   :  { %v779_v58 = vsub.f32 1.5, %v778_v40 }
 0x249   :  { %v3136_v60 = vpop.eup %3135 }
 0x24a   :  { %v780_v26 = vmul.f32 %v3134_v45, %v779_v58  ;;  %v786_v10 = vmul.f32 %v3136_v60, %v634_v46  ;;  %vm792_vm13 = vweird.f32 %v3136_v60 }
 0x24b   :  { %vm793_vm15 = vmor %vm791_vm14, %vm792_vm13 }
 0x24c   :  { %v784_v7 = vsel %vm783_vm12, %v3134_v45, %v780_v26  ;;  %v787_v62 = vmul.f32 %v3136_v60, %v786_v10  ;;  %906 = vmatmul.bf16.gmra.mxu3 %v3526_v37 }
 0x24d   :  { %v809_v2 = vmul.f32 %v784_v7, %v3641_v56 }
 0x24e   :  { %v788_v63 = vmul.f32 0.5, %v787_v62 }
 0x24f   :  { %825 = vst [vmem:[#allocation2 + $0x158] sm:$0xff] %v809_v2 }
 0x250   :  { %v789_v9 = vsub.f32 1.5, %v788_v63 }
 0x252   :  { %v790_v6 = vmul.f32 %v3136_v60, %v789_v9 }
 0x254   :  { %v794_v20 = vsel %vm793_vm15, %v3136_v60, %v790_v6 }
 0x255   :  { %v810_v37 = vmul.f32 %v794_v20, %v3646_v5 }
 0x257   :  { %826 = vst [vmem:[#allocation2 + $0x170] sm:$0xff] %v810_v37 }
 0x25c   :  { %911 = vmatmul.bf16.gmra.mxu3 %v3207_v25 }
 0x26f   :  { %v877_v28 = vpop.f32.mrf.mxu3 }
 0x270   :  { %v917_v30 = vadd.f32 %v877_v28, %v3571_v3  ;;  %v933_v17 = vmul.f32 %v877_v28, %v3571_v3 }
 0x277   :  { %v879_v29 = vpop.f32.mrf.mxu3 }
 0x278   :  { %v918_v32 = vadd.f32 %v879_v29, %v3576_v19  ;;  %v934_v34 = vmul.f32 %v879_v29, %v3576_v19 }
 0x27a   :  { %v949_v33 = vpack.c.bf16 %v918_v32, %v917_v30  ;;  %v950_v35 = vpack.c.bf16 %v934_v34, %v933_v17 }
 0x27c   :  { %1072 = vmatmul.bf16.vlgmr.msrb.gmra.mxu0 %v949_v33  ;;  %1121 = vmatmul.bf16.vlgmr.msrb.gmra.mxu1 %v950_v35 }
 0x27f   :  { %v882_v38 = vpop.f32.mrf.mxu3 }
 0x280   :  { %v919_v39 = vadd.f32 %v882_v38, %v3581_v16  ;;  %v935_v41 = vmul.f32 %v882_v38, %v3581_v16 }
 0x287   :  { %v884_v24 = vpop.f32.mrf.mxu3 }
 0x288   :  { %v920_v43 = vadd.f32 %v884_v24, %v3586_v36  ;;  %v936_v13 = vmul.f32 %v884_v24, %v3586_v36 }
 0x28a   :  { %v951_v15 = vpack.c.bf16 %v920_v43, %v919_v39  ;;  %v952_v3 = vpack.c.bf16 %v936_v13, %v935_v41 }
 0x28c   :  { %1077 = vmatmul.bf16.gmra.mxu0 %v951_v15  ;;  %1126 = vmatmul.bf16.gmra.mxu1 %v952_v3 }
 0x28f   :  { %v887_v45 = vpop.f32.mrf.mxu3 }
 0x290   :  { %v921_v46 = vadd.f32 %v887_v45, %v3591_v44  ;;  %v937_v47 = vmul.f32 %v887_v45, %v3591_v44 }
 0x297   :  { %v889_v19 = vpop.f32.mrf.mxu3 }
 0x298   :  { %v922_v49 = vadd.f32 %v889_v19, %v3596_v50  ;;  %v938_v51 = vmul.f32 %v889_v19, %v3596_v50 }
 0x29a   :  { %v953_v27 = vpack.c.bf16 %v922_v49, %v921_v46  ;;  %v954_v16 = vpack.c.bf16 %v938_v51, %v937_v47 }
 0x29c   :  { %1082 = vmatmul.bf16.gmra.mxu0 %v953_v27  ;;  %1131 = vmatmul.bf16.gmra.mxu1 %v954_v16 }
 0x29f   :  { %v892_v52 = vpop.f32.mrf.mxu3 }
 0x2a0   :  { %v923_v53 = vadd.f32 %v892_v52, %v3601_v57  ;;  %v939_v11 = vmul.f32 %v892_v52, %v3601_v57 }
 0x2a7   :  { %v894_v36 = vpop.f32.mrf.mxu3 }
 0x2a8   :  { %v924_v54 = vadd.f32 %v894_v36, %v3606_v59  ;;  %v940_v55 = vmul.f32 %v894_v36, %v3606_v59 }
 0x2aa   :  { %v955_v40 = vpack.c.bf16 %v924_v54, %v923_v53  ;;  %v956_v44 = vpack.c.bf16 %v940_v55, %v939_v11 }
 0x2ac   :  { %1087 = vmatmul.bf16.gmra.mxu0 %v955_v40  ;;  %1136 = vmatmul.bf16.gmra.mxu1 %v956_v44 }
 0x2af   :  { %v897_v58 = vpop.f32.mrf.mxu3 }
 0x2b0   :  { %v925_v60 = vadd.f32 %v897_v58, %v3611_v1  ;;  %v941_v61 = vmul.f32 %v897_v58, %v3611_v1 }
 0x2b7   :  { %v899_v50 = vpop.f32.mrf.mxu3 }
 0x2b8   :  { %v926_v8 = vadd.f32 %v899_v50, %v3616_v22  ;;  %v942_v26 = vmul.f32 %v899_v50, %v3616_v22 }
 0x2ba   :  { %v957_v10 = vpack.c.bf16 %v926_v8, %v925_v60  ;;  %v958_v57 = vpack.c.bf16 %v942_v26, %v941_v61 }
 0x2bc   :  { %1092 = vmatmul.bf16.gmra.mxu0 %v957_v10  ;;  %1141 = vmatmul.bf16.gmra.mxu1 %v958_v57 }
 0x2bf   :  { %v902_v7 = vpop.f32.mrf.mxu3 }
 0x2c0   :  { %v927_v62 = vadd.f32 %v902_v7, %v3621_v31  ;;  %v943_v2 = vmul.f32 %v902_v7, %v3621_v31 }
 0x2c7   :  { %v904_v59 = vpop.f32.mrf.mxu3 }
 0x2c8   :  { %v928_v63 = vadd.f32 %v904_v59, %v3626_v42  ;;  %v944_v4 = vmul.f32 %v904_v59, %v3626_v42 }
 0x2ca   :  { %v959_v0 = vpack.c.bf16 %v928_v63, %v927_v62  ;;  %v960_v1 = vpack.c.bf16 %v944_v4, %v943_v2 }
 0x2cc   :  { %1097 = vmatmul.bf16.gmra.mxu0 %v959_v0  ;;  %1146 = vmatmul.bf16.gmra.mxu1 %v960_v1 }
 0x2cf   :  { %v907_v9 = vpop.f32.mrf.mxu3 }
 0x2d0   :  { %v929_v14 = vadd.f32 %v907_v9, %v3631_v48  ;;  %v945_v18 = vmul.f32 %v907_v9, %v3631_v48 }
 0x2d7   :  { %v909_v22 = vpop.f32.mrf.mxu3 }
 0x2d8   :  { %v930_v6 = vadd.f32 %v909_v22, %v3636_v12  ;;  %v946_v20 = vmul.f32 %v909_v22, %v3636_v12  ;;  %v3724_v12 = vld [vmem:[%s4394_s8] ss:$0 sm:$0xff]  ;;  %s3818_s8 = sld [smem:[#allocation5]] }
 0x2da   :  { %v961_v37 = vpack.c.bf16 %v930_v6, %v929_v14  ;;  %v962_v31 = vpack.c.bf16 %v946_v20, %v945_v18 }
 0x2dc   :  { %1102 = vmatmul.bf16.gmra.mxu0 %v961_v37  ;;  %1151 = vmatmul.bf16.gmra.mxu1 %v962_v31 }
 0x2de   :  { %s1461_s0 = sshra.s32 %s3818_s8, 3  ;;  %s1464_s23 = sand.u32 7, %s3818_s8 }
 0x2df   :  { %v912_v21 = vpop.f32.mrf.mxu3  ;;  %s2886_s21 = smul.u32 24, %s1461_s0  ;;  %s1736_s8 = sshra.s32 %s3839_s30, 3 }
 0x2e0   :  { %v931_v23 = vadd.f32 %v912_v21, %v3641_v56  ;;  %v947_v25 = vmul.f32 %v912_v21, %v3641_v56  ;;  %s3860_s0 = sadd.s32 %s2891_s18, %s1607_s7  ;;  %s1458_s18 = scalar_lea.vmem [#allocation2], %s3841_s10 }
 0x2e1   :  { %s3835_s26 = sadd.s32 %s2886_s21, %s1464_s23  ;;  %s2895_s21 = smul.u32 24, %s1736_s8 }
 0x2e2   :  { %s3866_s23 = sld [smem:[#allocation5 + $0x3]]  ;;  %s1468_s17 = scalar_lea.vmem [#allocation2], %s3835_s26 }
 0x2e3   :  { %s3870_s27 = sadd.s32 %s2895_s21, %s1739_s24  ;;  %s1478_s7 = scalar_lea.vmem [#allocation2], %s3851_s16 }
 0x2e4   :  { %s3898_s16 = sld [smem:[#allocation6 + $0x4]]  ;;  %s1611_s6 = scalar_lea.vmem [#allocation2], %s3860_s0 }
 0x2e5   :  { %s1898_s8 = sshra.s32 %s3876_s12, 3  ;;  %s1753_s0 = scalar_lea.vmem [#allocation2], %s3878_s13 }
 0x2e6   :  { %s1763_s21 = scalar_lea.vmem [#allocation2], %s3887_s3  ;;  %s2030_s24 = sshra.s32 %s3883_s15, 3 }
 0x2e7   :  { %v914_v42 = vpop.f32.mrf.mxu3  ;;  %s3933_s25 = smul.u32 24, %s1898_s8  ;;  %s1743_s11 = scalar_lea.vmem [#allocation2], %s3870_s27 }
 0x2e8   :  { %v932_v28 = vadd.f32 %v914_v42, %v3646_v5  ;;  %v948_v29 = vmul.f32 %v914_v42, %v3646_v5  ;;  %s1888_s30 = sshra.s32 %s3866_s23, 3  ;;  %s1891_s26 = sand.u32 7, %s3866_s23 }
 0x2e9   :  { %s3896_s10 = smul.u32 24, %s1888_s30  ;;  %s2023_s13 = sand.u32 7, %s3880_s14 }
 0x2ea   :  { %v963_v30 = vpack.c.bf16 %v932_v28, %v931_v23  ;;  %v964_v48 = vpack.c.bf16 %v948_v29, %v947_v25  ;;  %s3947_s30 = smul.u32 24, %s2030_s24  ;;  %s3960_s3 = sld [smem:[#allocation6 + $0x5]] }
 0x2eb   :  { %s3958_s27 = sadd.s32 %s3896_s10, %s1891_s26  ;;  %s2033_s23 = sand.u32 7, %s3883_s15 }
 0x2ec   :  { %1107 = vmatmul.bf16.gmra.mxu0 %v963_v30  ;;  %1156 = vmatmul.bf16.gmra.mxu1 %v964_v48  ;;  %s3979_s4 = sadd.s32 %s3933_s25, %s1901_s28  ;;  %s2043_s10 = sand.u32 7, %s3898_s16 }
 0x2ed   :  { %s3989_s15 = sadd.s32 %s3941_s29, %s2023_s13  ;;  %s4002_s12 = sadd.s32 %s3947_s30, %s2033_s23 }
 0x2ee   :  { %s1895_s8 = scalar_lea.vmem [#allocation2], %s3958_s27  ;;  %s1905_s24 = scalar_lea.vmem [#allocation2], %s3979_s4 }
 0x2ef   :  { %s4045_s28 = sld [smem:[#allocation5 + $0x6]] }
 0x2f0   :  { %s2185_s1 = sand.u32 7, %s3960_s3  ;;  %s4051_s29 = sld [smem:[#allocation4 + $0x6]] }
 0x2f1   :  { %s4068_s30 = sld [smem:[#allocation6 + $0x6]] }
 0x2f9   :  { %v1073_v17 = vpop.f32.mrf.mxu0  ;;  %v1122_v32 = vpop.f32.mrf.mxu1 }
 0x2fa   :  { %v1074_v34 = vadd.f32 %v3724_v12, %v1073_v17 }
 0x2fc   :  { %v1123_v33 = vadd.f32 %v1122_v32, %v1074_v34 }
 0x2fe   :  { %v1162_v35 = vmul.f32 0.2, %v1123_v33 }
 0x300   :  { %v3727_v56 = vmax.f32 %v1123_v33, %v1162_v35 }
 0x301   :  { %v1075_v38 = vpop.f32.mrf.mxu0  ;;  %v1124_v24 = vpop.f32.mrf.mxu1 }
 0x302   :  { %v1076_v5 = vadd.f32 %v3724_v12, %v1075_v38  ;;  %v1194_v39 = vmul.f32 %v3727_v56, %v3727_v56 }
 0x304   :  { %v1125_v41 = vadd.f32 %v1124_v24, %v1076_v5  ;;  %1210 = vadd.xlane.f32.xlu1 %v1194_v39 }
 0x306   :  { %v1163_v43 = vmul.f32 0.2, %v1125_v41 }
 0x308   :  { %v3732_v13 = vmax.f32 %v1125_v41, %v1163_v43 }
 0x309   :  { %v1078_v15 = vpop.f32.mrf.mxu0  ;;  %v1127_v3 = vpop.f32.mrf.mxu1 }
 0x30a   :  { %v1079_v45 = vadd.f32 %v3724_v12, %v1078_v15  ;;  %v1195_v19 = vmul.f32 %v3732_v13, %v3732_v13 }
 0x30c   :  { %v1128_v46 = vadd.f32 %v1127_v3, %v1079_v45  ;;  %1212 = vadd.xlane.f32.xlu2 %v1195_v19 }
 0x30e   :  { %v1164_v47 = vmul.f32 0.2, %v1128_v46 }
 0x310   :  { %v3737_v49 = vmax.f32 %v1128_v46, %v1164_v47 }
 0x311   :  { %v1080_v51 = vpop.f32.mrf.mxu0  ;;  %v1129_v27 = vpop.f32.mrf.mxu1 }
 0x312   :  { %v1081_v16 = vadd.f32 %v3724_v12, %v1080_v51  ;;  %v1196_v52 = vmul.f32 %v3737_v49, %v3737_v49 }
 0x314   :  { %v1130_v36 = vadd.f32 %v1129_v27, %v1081_v16  ;;  %1214 = vadd.xlane.f32.xlu0 %v1196_v52 }
 0x316   :  { %v1165_v53 = vmul.f32 0.2, %v1130_v36 }
 0x318   :  { %v3742_v11 = vmax.f32 %v1130_v36, %v1165_v53 }
 0x319   :  { %v1083_v54 = vpop.f32.mrf.mxu0  ;;  %v1132_v55 = vpop.f32.mrf.mxu1 }
 0x31a   :  { %v1084_v40 = vadd.f32 %v3724_v12, %v1083_v54  ;;  %v1197_v44 = vmul.f32 %v3742_v11, %v3742_v11 }
 0x31c   :  { %v1133_v58 = vadd.f32 %v1132_v55, %v1084_v40  ;;  %1216 = vadd.xlane.f32.xlu1 %v1197_v44 }
 0x31e   :  { %v1166_v50 = vmul.f32 0.2, %v1133_v58 }
 0x320   :  { %v3747_v60 = vmax.f32 %v1133_v58, %v1166_v50 }
 0x321   :  { %v1085_v61 = vpop.f32.mrf.mxu0  ;;  %v1134_v8 = vpop.f32.mrf.mxu1 }
 0x322   :  { %v1086_v26 = vadd.f32 %v3724_v12, %v1085_v61  ;;  %v1198_v10 = vmul.f32 %v3747_v60, %v3747_v60 }
 0x324   :  { %v1135_v57 = vadd.f32 %v1134_v8, %v1086_v26  ;;  %1218 = vadd.xlane.f32.xlu2 %v1198_v10 }
 0x326   :  { %v1167_v7 = vmul.f32 0.2, %v1135_v57 }
 0x328   :  { %v3752_v59 = vmax.f32 %v1135_v57, %v1167_v7 }
 0x329   :  { %v1088_v62 = vpop.f32.mrf.mxu0  ;;  %v1137_v2 = vpop.f32.mrf.mxu1 }
 0x32a   :  { %v1089_v63 = vadd.f32 %v3724_v12, %v1088_v62  ;;  %v1199_v4 = vmul.f32 %v3752_v59, %v3752_v59 }
 0x32c   :  { %v1138_v0 = vadd.f32 %v1137_v2, %v1089_v63  ;;  %1220 = vadd.xlane.f32.xlu0 %v1199_v4 }
 0x32e   :  { %v1168_v1 = vmul.f32 0.2, %v1138_v0 }
 0x330   :  { %v3757_v9 = vmax.f32 %v1138_v0, %v1168_v1 }
 0x331   :  { %v1090_v22 = vpop.f32.mrf.mxu0  ;;  %v1139_v14 = vpop.f32.mrf.mxu1 }
 0x332   :  { %v1091_v18 = vadd.f32 %v3724_v12, %v1090_v22  ;;  %v1200_v6 = vmul.f32 %v3757_v9, %v3757_v9 }
 0x334   :  { %v1140_v20 = vadd.f32 %v1139_v14, %v1091_v18  ;;  %1222 = vadd.xlane.f32.xlu1 %v1200_v6 }
 0x336   :  { %v1169_v37 = vmul.f32 0.2, %v1140_v20 }
 0x338   :  { %v3762_v31 = vmax.f32 %v1140_v20, %v1169_v37 }
 0x339   :  { %v1093_v21 = vpop.f32.mrf.mxu0  ;;  %v1142_v42 = vpop.f32.mrf.mxu1 }
 0x33a   :  { %v1094_v23 = vadd.f32 %v3724_v12, %v1093_v21  ;;  %v1201_v25 = vmul.f32 %v3762_v31, %v3762_v31 }
 0x33c   :  { %v1143_v28 = vadd.f32 %v1142_v42, %v1094_v23  ;;  %1224 = vadd.xlane.f32.xlu2 %v1201_v25 }
 0x33e   :  { %v1170_v29 = vmul.f32 0.2, %v1143_v28 }
 0x340   :  { %v3767_v30 = vmax.f32 %v1143_v28, %v1170_v29 }
 0x341   :  { %v1095_v48 = vpop.f32.mrf.mxu0  ;;  %v1144_v17 = vpop.f32.mrf.mxu1 }
 0x342   :  { %v1096_v32 = vadd.f32 %v3724_v12, %v1095_v48  ;;  %v1202_v34 = vmul.f32 %v3767_v30, %v3767_v30 }
 0x344   :  { %v1145_v33 = vadd.f32 %v1144_v17, %v1096_v32  ;;  %1226 = vadd.xlane.f32.xlu0 %v1202_v34 }
 0x346   :  { %v1171_v35 = vmul.f32 0.2, %v1145_v33 }
 0x348   :  { %v3772_v38 = vmax.f32 %v1145_v33, %v1171_v35 }
 0x349   :  { %v1098_v24 = vpop.f32.mrf.mxu0  ;;  %v1147_v5 = vpop.f32.mrf.mxu1 }
 0x34a   :  { %v1099_v39 = vadd.f32 %v3724_v12, %v1098_v24  ;;  %v1203_v41 = vmul.f32 %v3772_v38, %v3772_v38 }
 0x34c   :  { %v1148_v43 = vadd.f32 %v1147_v5, %v1099_v39  ;;  %1228 = vadd.xlane.f32.xlu1 %v1203_v41 }
 0x34e   :  { %v1172_v15 = vmul.f32 0.2, %v1148_v43 }
 0x350   :  { %v3777_v3 = vmax.f32 %v1148_v43, %v1172_v15 }
 0x351   :  { %v1100_v45 = vpop.f32.mrf.mxu0  ;;  %v1149_v19 = vpop.f32.mrf.mxu1 }
 0x352   :  { %v1101_v46 = vadd.f32 %v3724_v12, %v1100_v45  ;;  %v1204_v47 = vmul.f32 %v3777_v3, %v3777_v3 }
 0x354   :  { %v1150_v51 = vadd.f32 %v1149_v19, %v1101_v46  ;;  %1230 = vadd.xlane.f32.xlu2 %v1204_v47 }
 0x356   :  { %v1173_v27 = vmul.f32 0.2, %v1150_v51 }
 0x358   :  { %v3782_v16 = vmax.f32 %v1150_v51, %v1173_v27 }
 0x359   :  { %v1103_v52 = vpop.f32.mrf.mxu0  ;;  %v1152_v36 = vpop.f32.mrf.mxu1 }
 0x35a   :  { %v1104_v53 = vadd.f32 %v3724_v12, %v1103_v52  ;;  %v1205_v54 = vmul.f32 %v3782_v16, %v3782_v16 }
 0x35c   :  { %v1153_v55 = vadd.f32 %v1152_v36, %v1104_v53  ;;  %1232 = vadd.xlane.f32.xlu0 %v1205_v54 }
 0x35e   :  { %v1174_v40 = vmul.f32 0.2, %v1153_v55 }
 0x360   :  { %v3787_v44 = vmax.f32 %v1153_v55, %v1174_v40 }
 0x361   :  { %v1105_v58 = vpop.f32.mrf.mxu0  ;;  %v1154_v50 = vpop.f32.mrf.mxu1 }
 0x362   :  { %v1106_v61 = vadd.f32 %v3724_v12, %v1105_v58  ;;  %v1206_v8 = vmul.f32 %v3787_v44, %v3787_v44 }
 0x364   :  { %v1155_v26 = vadd.f32 %v1154_v50, %v1106_v61  ;;  %1234 = vadd.xlane.f32.xlu1 %v1206_v8 }
 0x366   :  { %v1175_v10 = vmul.f32 0.2, %v1155_v26 }
 0x368   :  { %v3792_v57 = vmax.f32 %v1155_v26, %v1175_v10 }
 0x369   :  { %v1108_v7 = vpop.f32.mrf.mxu0  ;;  %v1157_v62 = vpop.f32.mrf.mxu1 }
 0x36a   :  { %v1109_v2 = vadd.f32 %v3724_v12, %v1108_v7  ;;  %v1207_v63 = vmul.f32 %v3792_v57, %v3792_v57 }
 0x36c   :  { %v1158_v4 = vadd.f32 %v1157_v62, %v1109_v2  ;;  %1236 = vadd.xlane.f32.xlu2 %v1207_v63 }
 0x36e   :  { %v1176_v0 = vmul.f32 0.2, %v1158_v4 }
 0x370   :  { %v3797_v1 = vmax.f32 %v1158_v4, %v1176_v0 }
 0x371   :  { %v1110_v22 = vpop.f32.mrf.mxu0  ;;  %v1159_v6 = vpop.f32.mrf.mxu1 }
 0x372   :  { %v1111_v14 = vadd.f32 %v3724_v12, %v1110_v22  ;;  %v1208_v18 = vmul.f32 %v3797_v1, %v3797_v1 }
 0x374   :  { %v1160_v20 = vadd.f32 %v1159_v6, %v1111_v14  ;;  %1238 = vadd.xlane.f32.xlu0 %v1208_v18 }
 0x376   :  { %v1177_v37 = vmul.f32 0.2, %v1160_v20 }
 0x377   :  { %v1211_v21 = vpop.xlane.xlu1 %1210 }
 0x378   :  { %v3802_v42 = vmax.f32 %v1160_v20, %v1177_v37  ;;  %v1242_v23 = vmax.f32 %v1211_v21, 1e-24 }
 0x37a   :  { %3137 = vrsqrt.f32 %v1242_v23  ;;  %v1209_v25 = vmul.f32 %v3802_v42, %v3802_v42  ;;  %vm1264_vm1 = vweird.f32 %v1242_v23 }
 0x37c   :  { %1240 = vadd.xlane.f32.xlu1 %v1209_v25 }
 0x37f   :  { %v1213_v28 = vpop.xlane.xlu2 %1212 }
 0x380   :  { %v3138_v29 = vpop.eup %3137  ;;  %v1243_v48 = vmax.f32 %v1213_v28, 1e-24 }
 0x381   :  { %v1259_v12 = vmul.f32 %v3138_v29, %v1242_v23  ;;  %vm1265_vm0 = vweird.f32 %v3138_v29 }
 0x382   :  { %3139 = vrsqrt.f32 %v1243_v48  ;;  %vm1266_vm2 = vmor %vm1264_vm1, %vm1265_vm0  ;;  %vm1274_vm4 = vweird.f32 %v1243_v48 }
 0x383   :  { %v1260_v17 = vmul.f32 %v3138_v29, %v1259_v12 }
 0x385   :  { %v1261_v32 = vmul.f32 0.5, %v1260_v17 }
 0x387   :  { %v1262_v34 = vsub.f32 1.5, %v1261_v32  ;;  %v1215_v33 = vpop.xlane.xlu0 %1214 }
 0x388   :  { %v3140_v35 = vpop.eup %3139  ;;  %v1244_v24 = vmax.f32 %v1215_v33, 1e-24 }
 0x389   :  { %v1263_v5 = vmul.f32 %v3138_v29, %v1262_v34  ;;  %v1269_v39 = vmul.f32 %v3140_v35, %v1243_v48  ;;  %vm1275_vm3 = vweird.f32 %v3140_v35 }
 0x38a   :  { %3141 = vrsqrt.f32 %v1244_v24  ;;  %vm1276_vm5 = vmor %vm1274_vm4, %vm1275_vm3  ;;  %vm1284_vm7 = vweird.f32 %v1244_v24 }
 0x38b   :  { %v1267_v41 = vsel %vm1266_vm2, %v3138_v29, %v1263_v5  ;;  %v1270_v43 = vmul.f32 %v3140_v35, %v1269_v39 }
 0x38c   :  { %v1418_v15 = vmul.f32 %v1267_v41, %v3727_v56 }
 0x38d   :  { %v1271_v45 = vmul.f32 0.5, %v1270_v43 }
 0x38e   :  { %1434 = vst [vmem:[#allocation2 + $0x10] sm:$0xff] %v1418_v15 }
 0x38f   :  { %v1272_v19 = vsub.f32 1.5, %v1271_v45  ;;  %v1217_v46 = vpop.xlane.xlu1 %1216 }
 0x390   :  { %v3142_v47 = vpop.eup %3141  ;;  %v1245_v51 = vmax.f32 %v1217_v46, 1e-24 }
 0x391   :  { %v1273_v27 = vmul.f32 %v3140_v35, %v1272_v19  ;;  %v1279_v52 = vmul.f32 %v3142_v47, %v1244_v24  ;;  %vm1285_vm6 = vweird.f32 %v3142_v47 }
 0x392   :  { %3143 = vrsqrt.f32 %v1245_v51  ;;  %vm1286_vm8 = vmor %vm1284_vm7, %vm1285_vm6  ;;  %vm1294_vm10 = vweird.f32 %v1245_v51 }
 0x393   :  { %v1277_v36 = vsel %vm1276_vm5, %v3140_v35, %v1273_v27  ;;  %v1280_v53 = vmul.f32 %v3142_v47, %v1279_v52 }
 0x394   :  { %v1419_v54 = vmul.f32 %v1277_v36, %v3732_v13 }
 0x395   :  { %v1281_v55 = vmul.f32 0.5, %v1280_v53 }
 0x396   :  { %1435 = vst [vmem:[#allocation2 + $0x28] sm:$0xff] %v1419_v54 }
 0x397   :  { %v1282_v40 = vsub.f32 1.5, %v1281_v55  ;;  %v1219_v56 = vpop.xlane.xlu2 %1218 }
 0x398   :  { %v3144_v58 = vpop.eup %3143  ;;  %v1246_v50 = vmax.f32 %v1219_v56, 1e-24 }
 0x399   :  { %v1283_v61 = vmul.f32 %v3142_v47, %v1282_v40  ;;  %v1289_v8 = vmul.f32 %v3144_v58, %v1245_v51  ;;  %vm1295_vm9 = vweird.f32 %v3144_v58 }
 0x39a   :  { %3145 = vrsqrt.f32 %v1246_v50  ;;  %vm1296_vm11 = vmor %vm1294_vm10, %vm1295_vm9  ;;  %vm1304_vm13 = vweird.f32 %v1246_v50 }
 0x39b   :  { %v1287_v26 = vsel %vm1286_vm8, %v3142_v47, %v1283_v61  ;;  %v1290_v10 = vmul.f32 %v3144_v58, %v1289_v8 }
 0x39c   :  { %v1420_v7 = vmul.f32 %v1287_v26, %v3737_v49 }
 0x39d   :  { %v1291_v62 = vmul.f32 0.5, %v1290_v10 }
 0x39e   :  { %1436 = vst [vmem:[#allocation2 + $0x40] sm:$0xff] %v1420_v7 }
 0x39f   :  { %v1292_v2 = vsub.f32 1.5, %v1291_v62  ;;  %v1221_v13 = vpop.xlane.xlu0 %1220 }
 0x3a0   :  { %v3146_v63 = vpop.eup %3145  ;;  %v1247_v4 = vmax.f32 %v1221_v13, 1e-24 }
 0x3a1   :  { %v1293_v0 = vmul.f32 %v3144_v58, %v1292_v2  ;;  %v1299_v22 = vmul.f32 %v3146_v63, %v1246_v50  ;;  %vm1305_vm12 = vweird.f32 %v3146_v63 }
 0x3a2   :  { %3147 = vrsqrt.f32 %v1247_v4  ;;  %vm1306_vm14 = vmor %vm1304_vm13, %vm1305_vm12  ;;  %vm1314_vm0 = vweird.f32 %v1247_v4 }
 0x3a3   :  { %v1297_v14 = vsel %vm1296_vm11, %v3144_v58, %v1293_v0  ;;  %v1300_v18 = vmul.f32 %v3146_v63, %v1299_v22 }
 0x3a4   :  { %v1421_v6 = vmul.f32 %v1297_v14, %v3742_v11 }
 0x3a5   :  { %v1301_v20 = vmul.f32 0.5, %v1300_v18 }
 0x3a6   :  { %1437 = vst [vmem:[#allocation2 + $0x58] sm:$0xff] %v1421_v6 }
 0x3a7   :  { %v1302_v37 = vsub.f32 1.5, %v1301_v20  ;;  %v1223_v49 = vpop.xlane.xlu1 %1222 }
 0x3a8   :  { %v3148_v21 = vpop.eup %3147  ;;  %v1248_v23 = vmax.f32 %v1223_v49, 1e-24 }
 0x3a9   :  { %v1303_v25 = vmul.f32 %v3146_v63, %v1302_v37  ;;  %v1309_v28 = vmul.f32 %v3148_v21, %v1247_v4  ;;  %vm1315_vm15 = vweird.f32 %v3148_v21 }
 0x3aa   :  { %3149 = vrsqrt.f32 %v1248_v23  ;;  %vm1316_vm1 = vmor %vm1314_vm0, %vm1315_vm15  ;;  %vm1324_vm3 = vweird.f32 %v1248_v23 }
 0x3ab   :  { %v1307_v29 = vsel %vm1306_vm14, %v3146_v63, %v1303_v25  ;;  %v1310_v48 = vmul.f32 %v3148_v21, %v1309_v28 }
 0x3ac   :  { %v1422_v12 = vmul.f32 %v1307_v29, %v3747_v60 }
 0x3ad   :  { %v1311_v17 = vmul.f32 0.5, %v1310_v48 }
 0x3ae   :  { %1438 = vst [vmem:[#allocation2 + $0x70] sm:$0xff] %v1422_v12 }
 0x3af   :  { %v1312_v32 = vsub.f32 1.5, %v1311_v17  ;;  %v1225_v11 = vpop.xlane.xlu2 %1224 }
 0x3b0   :  { %v3150_v34 = vpop.eup %3149  ;;  %v1249_v33 = vmax.f32 %v1225_v11, 1e-24 }
 0x3b1   :  { %v1313_v35 = vmul.f32 %v3148_v21, %v1312_v32  ;;  %v1319_v24 = vmul.f32 %v3150_v34, %v1248_v23  ;;  %vm1325_vm2 = vweird.f32 %v3150_v34 }
 0x3b2   :  { %3151 = vrsqrt.f32 %v1249_v33  ;;  %vm1326_vm4 = vmor %vm1324_vm3, %vm1325_vm2  ;;  %vm1334_vm6 = vweird.f32 %v1249_v33 }
 0x3b3   :  { %v1317_v5 = vsel %vm1316_vm1, %v3148_v21, %v1313_v35  ;;  %v1320_v39 = vmul.f32 %v3150_v34, %v1319_v24 }
 0x3b4   :  { %v1423_v41 = vmul.f32 %v1317_v5, %v3752_v59 }
 0x3b5   :  { %v1321_v43 = vmul.f32 0.5, %v1320_v39 }
 0x3b6   :  { %1439 = vst [vmem:[#allocation2 + $0x88] sm:$0xff] %v1423_v41 }
 0x3b7   :  { %v1322_v15 = vsub.f32 1.5, %v1321_v43  ;;  %v1227_v60 = vpop.xlane.xlu0 %1226 }
 0x3b8   :  { %v3152_v45 = vpop.eup %3151  ;;  %v1250_v19 = vmax.f32 %v1227_v60, 1e-24 }
 0x3b9   :  { %v1323_v46 = vmul.f32 %v3150_v34, %v1322_v15  ;;  %v1329_v47 = vmul.f32 %v3152_v45, %v1249_v33  ;;  %vm1335_vm5 = vweird.f32 %v3152_v45 }
 0x3ba   :  { %3153 = vrsqrt.f32 %v1250_v19  ;;  %vm1336_vm7 = vmor %vm1334_vm6, %vm1335_vm5  ;;  %vm1344_vm9 = vweird.f32 %v1250_v19 }
 0x3bb   :  { %v1327_v51 = vsel %vm1326_vm4, %v3150_v34, %v1323_v46  ;;  %v1330_v27 = vmul.f32 %v3152_v45, %v1329_v47 }
 0x3bc   :  { %v1424_v52 = vmul.f32 %v1327_v51, %v3757_v9 }
 0x3bd   :  { %v1331_v36 = vmul.f32 0.5, %v1330_v27 }
 0x3be   :  { %1440 = vst [vmem:[#allocation2 + $0xa0] sm:$0xff] %v1424_v52 }
 0x3bf   :  { %v1332_v53 = vsub.f32 1.5, %v1331_v36  ;;  %v1229_v59 = vpop.xlane.xlu1 %1228 }
 0x3c0   :  { %v3154_v54 = vpop.eup %3153  ;;  %v1251_v55 = vmax.f32 %v1229_v59, 1e-24 }
 0x3c1   :  { %v1333_v40 = vmul.f32 %v3152_v45, %v1332_v53  ;;  %v1339_v56 = vmul.f32 %v3154_v54, %v1250_v19  ;;  %vm1345_vm8 = vweird.f32 %v3154_v54 }
 0x3c2   :  { %3155 = vrsqrt.f32 %v1251_v55  ;;  %vm1346_vm10 = vmor %vm1344_vm9, %vm1345_vm8  ;;  %vm1354_vm12 = vweird.f32 %v1251_v55 }
 0x3c3   :  { %v1337_v58 = vsel %vm1336_vm7, %v3152_v45, %v1333_v40  ;;  %v1340_v50 = vmul.f32 %v3154_v54, %v1339_v56 }
 0x3c4   :  { %v1425_v61 = vmul.f32 %v1337_v58, %v3762_v31 }
 0x3c5   :  { %v1341_v8 = vmul.f32 0.5, %v1340_v50 }
 0x3c6   :  { %1441 = vst [vmem:[#allocation2 + $0xb8] sm:$0xff] %v1425_v61 }
 0x3c7   :  { %v1342_v26 = vsub.f32 1.5, %v1341_v8  ;;  %v1231_v9 = vpop.xlane.xlu2 %1230 }
 0x3c8   :  { %v3156_v10 = vpop.eup %3155  ;;  %v1252_v7 = vmax.f32 %v1231_v9, 1e-24 }
 0x3c9   :  { %v1343_v62 = vmul.f32 %v3154_v54, %v1342_v26  ;;  %v1349_v2 = vmul.f32 %v3156_v10, %v1251_v55  ;;  %vm1355_vm11 = vweird.f32 %v3156_v10 }
 0x3ca   :  { %3157 = vrsqrt.f32 %v1252_v7  ;;  %vm1356_vm13 = vmor %vm1354_vm12, %vm1355_vm11  ;;  %vm1364_vm15 = vweird.f32 %v1252_v7 }
 0x3cb   :  { %v1347_v13 = vsel %vm1346_vm10, %v3154_v54, %v1343_v62  ;;  %v1350_v63 = vmul.f32 %v3156_v10, %v1349_v2 }
 0x3cc   :  { %v1426_v4 = vmul.f32 %v1347_v13, %v3767_v30 }
 0x3cd   :  { %v1351_v0 = vmul.f32 0.5, %v1350_v63 }
 0x3ce   :  { %1442 = vst [vmem:[#allocation2 + $0xd0] sm:$0xff] %v1426_v4 }
 0x3cf   :  { %v1352_v22 = vsub.f32 1.5, %v1351_v0  ;;  %v1233_v31 = vpop.xlane.xlu0 %1232 }
 0x3d0   :  { %v3158_v14 = vpop.eup %3157  ;;  %v1253_v18 = vmax.f32 %v1233_v31, 1e-24 }
 0x3d1   :  { %v1353_v6 = vmul.f32 %v3156_v10, %v1352_v22  ;;  %v1359_v20 = vmul.f32 %v3158_v14, %v1252_v7  ;;  %vm1365_vm14 = vweird.f32 %v3158_v14 }
 0x3d2   :  { %3159 = vrsqrt.f32 %v1253_v18  ;;  %vm1366_vm0 = vmor %vm1364_vm15, %vm1365_vm14  ;;  %vm1374_vm2 = vweird.f32 %v1253_v18 }
 0x3d3   :  { %v1357_v37 = vsel %vm1356_vm13, %v3156_v10, %v1353_v6  ;;  %v1360_v49 = vmul.f32 %v3158_v14, %v1359_v20 }
 0x3d4   :  { %v1427_v21 = vmul.f32 %v1357_v37, %v3772_v38 }
 0x3d5   :  { %v1361_v23 = vmul.f32 0.5, %v1360_v49 }
 0x3d6   :  { %1443 = vst [vmem:[#allocation2 + $0xe8] sm:$0xff] %v1427_v21 }
 0x3d7   :  { %v1362_v25 = vsub.f32 1.5, %v1361_v23  ;;  %v1235_v30 = vpop.xlane.xlu1 %1234 }
 0x3d8   :  { %v3160_v28 = vpop.eup %3159  ;;  %v1254_v29 = vmax.f32 %v1235_v30, 1e-24 }
 0x3d9   :  { %v1363_v48 = vmul.f32 %v3158_v14, %v1362_v25  ;;  %v1369_v12 = vmul.f32 %v3160_v28, %v1253_v18  ;;  %vm1375_vm1 = vweird.f32 %v3160_v28 }
 0x3da   :  { %3161 = vrsqrt.f32 %v1254_v29  ;;  %vm1376_vm3 = vmor %vm1374_vm2, %vm1375_vm1  ;;  %vm1384_vm5 = vweird.f32 %v1254_v29 }
 0x3db   :  { %v1367_v17 = vsel %vm1366_vm0, %v3158_v14, %v1363_v48  ;;  %v1370_v32 = vmul.f32 %v3160_v28, %v1369_v12  ;;  %vm1489_vm0 = vcmask 1040384  }
 0x3dc   :  { %v1428_v11 = vmul.f32 %v1367_v17, %v3777_v3 }
 0x3dd   :  { %v1371_v34 = vmul.f32 0.5, %v1370_v32 }
 0x3de   :  { %1444 = vst [vmem:[#allocation2 + $0x100] sm:$0xff] %v1428_v11 }
 0x3df   :  { %v1372_v33 = vsub.f32 1.5, %v1371_v34  ;;  %v1237_v38 = vpop.xlane.xlu2 %1236 }
 0x3e0   :  { %v3162_v35 = vpop.eup %3161  ;;  %v1255_v24 = vmax.f32 %v1237_v38, 1e-24 }
 0x3e1   :  { %v1373_v5 = vmul.f32 %v3160_v28, %v1372_v33  ;;  %v1379_v39 = vmul.f32 %v3162_v35, %v1254_v29  ;;  %vm1385_vm4 = vweird.f32 %v3162_v35 }
 0x3e2   :  { %3163 = vrsqrt.f32 %v1255_v24  ;;  %vm1386_vm6 = vmor %vm1384_vm5, %vm1385_vm4  ;;  %vm1394_vm8 = vweird.f32 %v1255_v24 }
 0x3e3   :  { %v1377_v41 = vsel %vm1376_vm3, %v3160_v28, %v1373_v5  ;;  %v1380_v43 = vmul.f32 %v3162_v35, %v1379_v39 }
 0x3e4   :  { %v1429_v15 = vmul.f32 %v1377_v41, %v3782_v16 }
 0x3e5   :  { %v1381_v60 = vmul.f32 0.5, %v1380_v43 }
 0x3e6   :  { %1445 = vst [vmem:[#allocation2 + $0x118] sm:$0xff] %v1429_v15 }
 0x3e7   :  { %v1382_v3 = vsub.f32 1.5, %v1381_v60  ;;  %v1239_v45 = vpop.xlane.xlu0 %1238 }
 0x3e8   :  { %v3164_v19 = vpop.eup %3163  ;;  %v1256_v46 = vmax.f32 %v1239_v45, 1e-24 }
 0x3e9   :  { %v1383_v47 = vmul.f32 %v3162_v35, %v1382_v3  ;;  %v1389_v51 = vmul.f32 %v3164_v19, %v1255_v24  ;;  %vm1395_vm7 = vweird.f32 %v3164_v19 }
 0x3ea   :  { %3165 = vrsqrt.f32 %v1256_v46  ;;  %vm1396_vm9 = vmor %vm1394_vm8, %vm1395_vm7  ;;  %vm1404_vm11 = vweird.f32 %v1256_v46 }
 0x3eb   :  { %v1387_v27 = vsel %vm1386_vm6, %v3162_v35, %v1383_v47  ;;  %v1390_v52 = vmul.f32 %v3164_v19, %v1389_v51 }
 0x3ec   :  { %v1430_v16 = vmul.f32 %v1387_v27, %v3787_v44 }
 0x3ed   :  { %v1391_v36 = vmul.f32 0.5, %v1390_v52 }
 0x3ee   :  { %1446 = vst [vmem:[#allocation2 + $0x130] sm:$0xff] %v1430_v16 }
 0x3ef   :  { %v1392_v53 = vsub.f32 1.5, %v1391_v36  ;;  %v1241_v59 = vpop.xlane.xlu1 %1240 }
 0x3f0   :  { %v3166_v54 = vpop.eup %3165  ;;  %v1257_v55 = vmax.f32 %v1241_v59, 1e-24 }
 0x3f1   :  { %v1393_v40 = vmul.f32 %v3164_v19, %v1392_v53  ;;  %v1399_v56 = vmul.f32 %v3166_v54, %v1256_v46  ;;  %vm1405_vm10 = vweird.f32 %v3166_v54 }
 0x3f2   :  { %3167 = vrsqrt.f32 %v1257_v55  ;;  %vm1406_vm12 = vmor %vm1404_vm11, %vm1405_vm10  ;;  %vm1414_vm14 = vweird.f32 %v1257_v55 }
 0x3f3   :  { %v1397_v44 = vsel %vm1396_vm9, %v3164_v19, %v1393_v40  ;;  %v1400_v58 = vmul.f32 %v3166_v54, %v1399_v56 }
 0x3f4   :  { %v1431_v50 = vmul.f32 %v1397_v44, %v3792_v57 }
 0x3f5   :  { %v1401_v61 = vmul.f32 0.5, %v1400_v58 }
 0x3f6   :  { %1447 = vst [vmem:[#allocation2 + $0x148] sm:$0xff] %v1431_v50 }
 0x3f7   :  { %v1402_v8 = vsub.f32 1.5, %v1401_v61 }
 0x3f8   :  { %v3168_v26 = vpop.eup %3167 }
 0x3f9   :  { %v1403_v57 = vmul.f32 %v3166_v54, %v1402_v8  ;;  %v1409_v9 = vmul.f32 %v3168_v26, %v1257_v55  ;;  %vm1415_vm13 = vweird.f32 %v3168_v26 }
 0x3fa   :  { %vm1416_vm15 = vmor %vm1414_vm14, %vm1415_vm13 }
 0x3fb   :  { %v1407_v10 = vsel %vm1406_vm12, %v3166_v54, %v1403_v57  ;;  %v1410_v7 = vmul.f32 %v3168_v26, %v1409_v9 }
 0x3fc   :  { %v1432_v62 = vmul.f32 %v1407_v10, %v3797_v1 }
 0x3fd   :  { %v1411_v2 = vmul.f32 0.5, %v1410_v7 }
 0x3fe   :  { %1448 = vst [vmem:[#allocation2 + $0x160] sm:$0xff] %v1432_v62 }
 0x3ff   :  { %v1412_v13 = vsub.f32 1.5, %v1411_v2 }
 0x401   :  { %v1413_v1 = vmul.f32 %v3168_v26, %v1412_v13 }
 0x403   :  { %v1417_v63 = vsel %vm1416_vm15, %v3168_v26, %v1413_v1 }
 0x404   :  { %v1433_v4 = vmul.f32 %v1417_v63, %v3802_v42 }
 0x406   :  { %1449 = vst [vmem:[#allocation2 + $0x178] sm:$0xff] %v1433_v4 }
 0x40d   :  { %v1469_v42 = vld [vmem:[%s1468_s17] ss:$8 sm:$0x7]  ;;  %s2040_s17 = sshra.s32 %s3898_s16, 3 }
 0x40e   :  { %v1459_v0 = vld [vmem:[%s1458_s18] ss:$8 sm:$0x7]  ;;  %v1547_v22 = vmul.f32 %v1469_v42, %v1469_v42  ;;  %s3952_s18 = sld [smem:[#allocation5 + $0x5]]  ;;  %s2911_s26 = smul.u32 24, %s2040_s17 }
 0x40f   :  { %v1524_v31 = vmul.f32 %v1459_v0, %v1459_v0  ;;  %v1479_v14 = vld [vmem:[%s1478_s7] ss:$8 sm:$0x7]  ;;  %s3967_s7 = sadd.s32 %s3925_s22, %s1881_s2  ;;  %s2027_s2 = scalar_lea.vmem [#allocation2], %s3989_s15 }
 0x410   :  { %v1602_v18 = vld [vmem:[%s1601_s5] ss:$8 sm:$0x7]  ;;  %v1480_v6 = vsub.f32 %v1469_v42, %v1479_v14  ;;  %v1549_v37 = vperm.slane %v1547_v22, 0  ;;  %v1550_v49 = vperm.slane %v1547_v22, 1  ;;  %v1551_v21 = vperm.slane %v1547_v22, 2  ;;  %s4005_s14 = sadd.s32 %s2911_s26, %s2043_s10 }
 0x411   :  { %v3891_v20 = vmul.f32 %v1602_v18, %v1602_v18  ;;  %v1526_v23 = vperm.slane %v1524_v31, 0  ;;  %v1527_v25 = vperm.slane %v1524_v31, 1  ;;  %v1528_v30 = vperm.slane %v1524_v31, 2  ;;  %v3905_v11 = vld [vmem:[%s1611_s6] ss:$8 sm:$0x7] }
 0x412   :  { %v1481_v28 = vmul.f32 %v1480_v6, %v1459_v0  ;;  %v3894_v29 = vmul.f32 %v1479_v14, %v1479_v14  ;;  %v1555_v48 = vsel %vm1489_vm0, %v1549_v37, 0.0  ;;  %v1556_v12 = vsel %vm1489_vm0, %v1550_v49, 0.0  ;;  %v1622_v24 = vld [vmem:[%s1621_s20] ss:$8 sm:$0x7]  ;;  %s3969_s5 = sld [smem:[#allocation4 + $0x5]] }
 0x413   :  { %v1532_v17 = vsel %vm1489_vm0, %v1526_v23, 0.0  ;;  %v1668_v32 = vperm.slane %v3891_v20, 0  ;;  %v1557_v34 = vadd.f32 %v1556_v12, %v1555_v48  ;;  %v1558_v33 = vsel %vm1489_vm0, %v1551_v21, 0.0  ;;  %v3914_v15 = vld [vmem:[%s1753_s0] ss:$8 sm:$0x7] }
 0x414   :  { %v1533_v38 = vsel %vm1489_vm0, %v1527_v25, 0.0  ;;  %v1483_v35 = vperm.slane %v1481_v28, 0  ;;  %v1484_v39 = vperm.slane %v1481_v28, 1  ;;  %v1485_v41 = vperm.slane %v1481_v28, 2  ;;  %s2172_s16 = sshra.s32 %s3952_s18, 3  ;;  %s2182_s6 = sshra.s32 %s3960_s3, 3 }
 0x415   :  { %v1534_v5 = vadd.f32 %v1533_v38, %v1532_v17  ;;  %v1669_v43 = vperm.slane %v3891_v20, 1  ;;  %v1559_v60 = vadd.f32 %v1558_v33, %v1557_v34  ;;  %v1535_v3 = vsel %vm1489_vm0, %v1528_v30, 0.0  ;;  %v3919_v19 = vld [vmem:[%s1763_s21] ss:$8 sm:$0x7]  ;;  %s2175_s20 = sand.u32 7, %s3952_s18 }
 0x416   :  { %v1490_v45 = vsel %vm1489_vm0, %v1483_v35, 0.0  ;;  %v1491_v47 = vsel %vm1489_vm0, %v1484_v39, 0.0  ;;  %v1674_v51 = vsel %vm1489_vm0, %v1668_v32, 0.0  ;;  %v1670_v16 = vperm.slane %v3891_v20, 2  ;;  %s2915_s0 = smul.u32 24, %s2172_s16  ;;  %s1885_s21 = scalar_lea.vmem [#allocation2], %s3967_s7 }
 0x417   :  { %v1536_v46 = vadd.f32 %v1535_v3, %v1534_v5  ;;  %v1675_v27 = vsel %vm1489_vm0, %v1669_v43, 0.0  ;;  %1560 = vadd.xlane.f32.xlu1 %v1559_v60  ;;  %v1492_v52 = vadd.f32 %v1491_v47, %v1490_v45  ;;  %v1623_v36 = vsub.f32 %v3905_v11, %v1622_v24  ;;  %v1744_v58 = vld [vmem:[%s1743_s11] ss:$8 sm:$0x7]  ;;  %s4027_s22 = smul.u32 24, %s2182_s6  ;;  %s2037_s17 = scalar_lea.vmem [#allocation2], %s4002_s12 }
 0x418   :  { %v1493_v53 = vsel %vm1489_vm0, %v1485_v41, 0.0  ;;  %v1572_v59 = vperm.slane %v3894_v29, 0  ;;  %v1573_v54 = vperm.slane %v3894_v29, 1  ;;  %v1765_v55 = vsub.f32 %v3914_v15, %v3919_v19  ;;  %s2162_s19 = sshra.s32 %s3969_s5, 3  ;;  %s4043_s25 = sadd.s32 %s2915_s0, %s2175_s20 }
 0x419   :  { %1537 = vadd.xlane.f32.xlu0 %v1536_v46  ;;  %v1494_v40 = vadd.f32 %v1493_v53, %v1492_v52  ;;  %v1676_v56 = vadd.f32 %v1675_v27, %v1674_v51  ;;  %v1624_v44 = vmul.f32 %v1623_v36, %v1602_v18  ;;  %v3944_v50 = vmul.f32 %v1622_v24, %v1622_v24  ;;  %v1896_v60 = vld [vmem:[%s1895_s8] ss:$8 sm:$0x7]  ;;  %s4058_s11 = smul.u32 24, %s2162_s19  ;;  %s4063_s13 = sadd.s32 %s4027_s22, %s2185_s1 }
 0x41a   :  { %v1578_v61 = vsel %vm1489_vm0, %v1572_v59, 0.0  ;;  %v1579_v8 = vsel %vm1489_vm0, %v1573_v54, 0.0  ;;  %v1766_v26 = vmul.f32 %v1765_v55, %v1744_v58  ;;  %v1574_v7 = vperm.slane %v3894_v29, 2  ;;  %v1886_v47 = vld [vmem:[%s1885_s21] ss:$8 sm:$0x7] }
 0x41b   :  { %1495 = vadd.xlane.f32.xlu2 %v1494_v40  ;;  %v1626_v57 = vperm.slane %v1624_v44, 0  ;;  %v1627_v9 = vperm.slane %v1624_v44, 1  ;;  %v1628_v10 = vperm.slane %v1624_v44, 2  ;;  %v1677_v62 = vsel %vm1489_vm0, %v1670_v16, 0.0  ;;  %s2165_s18 = sand.u32 7, %s3969_s5  ;;  %s2047_s27 = scalar_lea.vmem [#allocation2], %s4005_s14 }
 0x41c   :  { %v1768_v2 = vperm.slane %v1766_v26, 0  ;;  %v1769_v13 = vperm.slane %v1766_v26, 1  ;;  %v1714_v1 = vperm.slane %v3944_v50, 0  ;;  %v1678_v63 = vadd.f32 %v1677_v62, %v1676_v56  ;;  %v4033_v36 = vld [vmem:[%s1905_s24] ss:$8 sm:$0x7]  ;;  %s4085_s7 = sadd.s32 %s4058_s11, %s2165_s18 }
 0x41d   :  { %v1632_v4 = vsel %vm1489_vm0, %v1626_v57, 0.0  ;;  %v1633_v42 = vsel %vm1489_vm0, %v1627_v9, 0.0  ;;  %v1580_v0 = vadd.f32 %v1579_v8, %v1578_v61  ;;  %v1770_v31 = vperm.slane %v1766_v26, 2  ;;  %v2028_v40 = vld [vmem:[%s2027_s2] ss:$8 sm:$0x7] }
 0x41e   :  { %v1634_v22 = vadd.f32 %v1633_v42, %v1632_v4  ;;  %v1774_v14 = vsel %vm1489_vm0, %v1768_v2, 0.0  ;;  %v1775_v18 = vsel %vm1489_vm0, %v1769_v13, 0.0  ;;  %v1635_v6 = vsel %vm1489_vm0, %v1628_v10, 0.0  ;;  %s2179_s3 = scalar_lea.vmem [#allocation2], %s4043_s25  ;;  %s4087_s5 = sld [smem:[#allocation4 + $0x7]] }
 0x41f   :  { %1679 = vadd.xlane.f32.xlu1 %v1678_v63  ;;  %v1581_v20 = vsel %vm1489_vm0, %v1574_v7, 0.0  ;;  %v1715_v37 = vperm.slane %v3944_v50, 1  ;;  %v1720_v49 = vsel %vm1489_vm0, %v1714_v1, 0.0  ;;  %v1689_v23 = vmul.f32 %v3905_v11, %v3905_v11  ;;  %s2189_s23 = scalar_lea.vmem [#allocation2], %s4063_s13  ;;  %s2314_s26 = sshra.s32 %s4045_s28, 3 }
 0x420   :  { %v1636_v21 = vadd.f32 %v1635_v6, %v1634_v22  ;;  %v3995_v25 = vmul.f32 %v3919_v19, %v3919_v19  ;;  %v3999_v30 = vmul.f32 %v3914_v15, %v3914_v15  ;;  %v1582_v28 = vadd.f32 %v1581_v20, %v1580_v0  ;;  %v4071_v22 = vld [vmem:[%s2037_s17] ss:$8 sm:$0x7]  ;;  %s4100_s4 = smul.u32 24, %s2314_s26  ;;  %s4102_s10 = sld [smem:[#allocation5 + $0x7]] }
 0x421   :  { %v1776_v29 = vadd.f32 %v1775_v18, %v1774_v14  ;;  %v1721_v48 = vsel %vm1489_vm0, %v1715_v37, 0.0  ;;  %v1777_v12 = vsel %vm1489_vm0, %v1770_v31, 0.0  ;;  %v1716_v17 = vperm.slane %v3944_v50, 2  ;;  %v2048_v6 = vld [vmem:[%s2047_s27] ss:$8 sm:$0x7] }
 0x422   :  { %1637 = vadd.xlane.f32.xlu0 %v1636_v21  ;;  %v1691_v32 = vperm.slane %v1689_v23, 0  ;;  %v1692_v11 = vperm.slane %v1689_v23, 1  ;;  %v1722_v34 = vadd.f32 %v1721_v48, %v1720_v49  ;;  %v1856_v33 = vperm.slane %v3995_v25, 0  ;;  %s2324_s15 = sshra.s32 %s4068_s30, 3  ;;  %s4106_s12 = sld [smem:[#allocation6 + $0x7]] }
 0x423   :  { %1583 = vadd.xlane.f32.xlu2 %v1582_v28  ;;  %v1857_v38 = vperm.slane %v3995_v25, 1  ;;  %v4012_v35 = vmul.f32 %v1744_v58, %v1744_v58  ;;  %v1693_v24 = vperm.slane %v1689_v23, 2  ;;  %v1833_v41 = vperm.slane %v3999_v30, 0  ;;  %v4080_v23 = vld [vmem:[%s2179_s3] ss:$8 sm:$0x7] }
 0x424   :  { %v1697_v5 = vsel %vm1489_vm0, %v1691_v32, 0.0  ;;  %v1698_v39 = vsel %vm1489_vm0, %v1692_v11, 0.0  ;;  %v1778_v43 = vadd.f32 %v1777_v12, %v1776_v29  ;;  %v1723_v3 = vsel %vm1489_vm0, %v1716_v17, 0.0  ;;  %v2190_v32 = vld [vmem:[%s2189_s23] ss:$8 sm:$0x7] }
 0x425   :  { %v1699_v15 = vadd.f32 %v1698_v39, %v1697_v5  ;;  %v1862_v45 = vsel %vm1489_vm0, %v1856_v33, 0.0  ;;  %v1863_v19 = vsel %vm1489_vm0, %v1857_v38, 0.0  ;;  %v1834_v46 = vperm.slane %v3999_v30, 1  ;;  %s2169_s14 = scalar_lea.vmem [#allocation2], %s4085_s7  ;;  %s2317_s16 = sand.u32 7, %s4045_s28 }
 0x426   :  { %v1724_v51 = vadd.f32 %v1723_v3, %v1722_v34  ;;  %v1858_v27 = vperm.slane %v3995_v25, 2  ;;  %v1810_v52 = vperm.slane %v4012_v35, 0  ;;  %v1811_v16 = vperm.slane %v4012_v35, 1  ;;  %s2304_s6 = sshra.s32 %s4051_s29, 3  ;;  %s2923_s19 = smul.u32 24, %s2324_s15 }
 0x427   :  { %1779 = vadd.xlane.f32.xlu1 %v1778_v43  ;;  %v1700_v53 = vsel %vm1489_vm0, %v1693_v24, 0.0  ;;  %v1839_v59 = vsel %vm1489_vm0, %v1833_v41, 0.0  ;;  %v1840_v54 = vsel %vm1489_vm0, %v1834_v46, 0.0  ;;  %v4038_v55 = vmul.f32 %v1896_v60, %v1896_v60  ;;  %s2446_s8 = sshra.s32 %s4087_s5, 3  ;;  %s2327_s20 = sand.u32 7, %s4068_s30 }
 0x428   :  { %v1701_v56 = vadd.f32 %v1700_v53, %v1699_v15  ;;  %v1864_v44 = vadd.f32 %v1863_v19, %v1862_v45  ;;  %v1835_v58 = vperm.slane %v3999_v30, 2  ;;  %v1812_v50 = vperm.slane %v4012_v35, 2  ;;  %s4131_s0 = sadd.s32 %s4100_s4, %s2317_s16  ;;  %s2919_s21 = smul.u32 24, %s2304_s6 }
 0x429   :  { %v1816_v61 = vsel %vm1489_vm0, %v1810_v52, 0.0  ;;  %v1817_v8 = vsel %vm1489_vm0, %v1811_v16, 0.0  ;;  %v1975_v26 = vperm.slane %v4038_v55, 0  ;;  %v1976_v57 = vperm.slane %v4038_v55, 1  ;;  %s2307_s1 = sand.u32 7, %s4051_s29  ;;  %s2925_s22 = smul.u32 24, %s2446_s8 }
 0x42a   :  { %1725 = vadd.xlane.f32.xlu0 %v1724_v51  ;;  %v1841_v9 = vadd.f32 %v1840_v54, %v1839_v59  ;;  %v1950_v10 = vmul.f32 %v1886_v47, %v1886_v47  ;;  %v1907_v7 = vsub.f32 %v1896_v60, %v4033_v36  ;;  %v4054_v62 = vmul.f32 %v2028_v40, %v2028_v40  ;;  %s4139_s24 = sadd.s32 %s2923_s19, %s2327_s20  ;;  %s2456_s2 = sshra.s32 %s4102_s10, 3 }
 0x42b   :  { %1702 = vadd.xlane.f32.xlu2 %v1701_v56  ;;  %v1865_v2 = vsel %vm1489_vm0, %v1858_v27, 0.0  ;;  %v1981_v13 = vsel %vm1489_vm0, %v1975_v26, 0.0  ;;  %v1982_v1 = vsel %vm1489_vm0, %v1976_v57, 0.0  ;;  %v1818_v4 = vadd.f32 %v1817_v8, %v1816_v61  ;;  %v2170_v27 = vld [vmem:[%s2169_s14] ss:$8 sm:$0x7]  ;;  %s4150_s29 = sadd.s32 %s2919_s21, %s2307_s1 }
 0x42c   :  { %v1866_v63 = vadd.f32 %v1865_v2, %v1864_v44  ;;  %v1952_v42 = vperm.slane %v1950_v10, 0  ;;  %v1953_v0 = vperm.slane %v1950_v10, 1  ;;  %v1842_v31 = vsel %vm1489_vm0, %v1835_v58, 0.0  ;;  %s2449_s25 = sand.u32 7, %s4087_s5  ;;  %s2466_s28 = sshra.s32 %s4106_s12, 3 }
 0x42d   :  { %v1819_v14 = vsel %vm1489_vm0, %v1812_v50, 0.0  ;;  %v1908_v18 = vmul.f32 %v1907_v7, %v1886_v47  ;;  %v1843_v20 = vadd.f32 %v1842_v31, %v1841_v9  ;;  %v1977_v37 = vperm.slane %v4038_v55, 2  ;;  %s2927_s11 = smul.u32 24, %s2456_s2  ;;  %s4159_s13 = sadd.s32 %s2925_s22, %s2449_s25 }
 0x42e   :  { %v1983_v49 = vadd.f32 %v1982_v1, %v1981_v13  ;;  %v2094_v21 = vperm.slane %v4054_v62, 0  ;;  %v1958_v25 = vsel %vm1489_vm0, %v1952_v42, 0.0  ;;  %v1959_v30 = vsel %vm1489_vm0, %v1953_v0, 0.0  ;;  %s2929_s30 = smul.u32 24, %s2466_s28  ;;  %s2321_s17 = scalar_lea.vmem [#allocation2], %s4131_s0 }
 0x42f   :  { %1867 = vadd.xlane.f32.xlu1 %v1866_v63  ;;  %v1910_v28 = vperm.slane %v1908_v18, 0  ;;  %v1911_v29 = vperm.slane %v1908_v18, 1  ;;  %v1820_v48 = vadd.f32 %v1819_v14, %v1818_v4  ;;  %v2095_v12 = vperm.slane %v4054_v62, 1  ;;  %s2459_s18 = sand.u32 7, %s4102_s10  ;;  %s2469_s27 = sand.u32 7, %s4106_s12 }
 0x430   :  { %v2049_v17 = vsub.f32 %v4071_v22, %v2048_v6  ;;  %v1954_v11 = vperm.slane %v1950_v10, 2  ;;  %v1984_v38 = vsel %vm1489_vm0, %v1977_v37, 0.0  ;;  %v1960_v35 = vadd.f32 %v1959_v30, %v1958_v25  ;;  %s2331_s3 = scalar_lea.vmem [#allocation2], %s4139_s24  ;;  %s2462_s7 = sadd.s32 %s2927_s11, %s2459_s18 }
 0x431   :  { %v1916_v34 = vsel %vm1489_vm0, %v1910_v28, 0.0  ;;  %v1917_v33 = vsel %vm1489_vm0, %v1911_v29, 0.0  ;;  %v1996_v5 = vmul.f32 %v4033_v36, %v4033_v36  ;;  %v1985_v39 = vadd.f32 %v1984_v38, %v1983_v49  ;;  %s4181_s5 = sadd.s32 %s2929_s30, %s2469_s27  ;;  %s2311_s23 = scalar_lea.vmem [#allocation2], %s4150_s29 }
 0x432   :  { %1844 = vadd.xlane.f32.xlu0 %v1843_v20  ;;  %v2050_v24 = vmul.f32 %v2049_v17, %v2028_v40  ;;  %v1912_v41 = vperm.slane %v1908_v18, 2  ;;  %v2100_v43 = vsel %vm1489_vm0, %v2094_v21, 0.0  ;;  %v2191_v15 = vsub.f32 %v4080_v23, %v2190_v32  ;;  %s2453_s26 = scalar_lea.vmem [#allocation2], %s4159_s13  ;;  %s2463_s4 = scalar_lea.vmem [#allocation2], %s2462_s7 }
 0x433   :  { %1821 = vadd.xlane.f32.xlu2 %v1820_v48  ;;  %v1918_v60 = vadd.f32 %v1917_v33, %v1916_v34  ;;  %v2101_v3 = vsel %vm1489_vm0, %v2095_v12, 0.0  ;;  %v1961_v46 = vsel %vm1489_vm0, %v1954_v11, 0.0  ;;  %v1998_v47 = vperm.slane %v1996_v5, 0  ;;  %v2322_v12 = vld [vmem:[%s2321_s17] ss:$8 sm:$0x7] }
 0x434   :  { %v2052_v45 = vperm.slane %v2050_v24, 0  ;;  %v2053_v19 = vperm.slane %v2050_v24, 1  ;;  %v1999_v51 = vperm.slane %v1996_v5, 1  ;;  %v1962_v52 = vadd.f32 %v1961_v46, %v1960_v35  ;;  %s2473_s10 = scalar_lea.vmem [#allocation2], %s4181_s5  ;;  %s3373_s6 = smov 0.0  }
 0x435   :  { %v2096_v16 = vperm.slane %v4054_v62, 2  ;;  %v4111_v36 = vmul.f32 %v2191_v15, %v2170_v27  ;;  %v4113_v53 = vmul.f32 %v2048_v6, %v2048_v6  ;;  %v1919_v59 = vsel %vm1489_vm0, %v1912_v41, 0.0 }
 0x436   :  { %v2102_v54 = vadd.f32 %v2101_v3, %v2100_v43  ;;  %v2058_v55 = vsel %vm1489_vm0, %v2052_v45, 0.0  ;;  %v2059_v40 = vsel %vm1489_vm0, %v2053_v19, 0.0  ;;  %v1920_v56 = vadd.f32 %v1919_v59, %v1918_v60  ;;  %v2312_v60 = vld [vmem:[%s2311_s23] ss:$8 sm:$0x7] }
 0x437   :  { %1986 = vadd.xlane.f32.xlu1 %v1985_v39  ;;  %v2054_v44 = vperm.slane %v2050_v24, 2  ;;  %v2000_v58 = vperm.slane %v1996_v5, 2  ;;  %v4123_v50 = vmul.f32 %v4071_v22, %v4071_v22  ;;  %v2004_v61 = vsel %vm1489_vm0, %v1998_v47, 0.0 }
 0x438   :  { %v2005_v8 = vsel %vm1489_vm0, %v1999_v51, 0.0  ;;  %v2194_v26 = vperm.slane %v4111_v36, 0  ;;  %v2195_v57 = vperm.slane %v4111_v36, 1  ;;  %v2060_v9 = vadd.f32 %v2059_v40, %v2058_v55 }
 0x439   :  { %v2140_v10 = vperm.slane %v4113_v53, 0  ;;  %v2141_v7 = vperm.slane %v4113_v53, 1  ;;  %v2103_v62 = vsel %vm1489_vm0, %v2096_v16, 0.0  ;;  %v4137_v2 = vmul.f32 %v2190_v32, %v2190_v32 }
 0x43a   :  { %1963 = vadd.xlane.f32.xlu0 %v1962_v52  ;;  %v2104_v13 = vadd.f32 %v2103_v62, %v2102_v54  ;;  %v2006_v1 = vadd.f32 %v2005_v8, %v2004_v61  ;;  %v2117_v63 = vperm.slane %v4123_v50, 0  ;;  %v2118_v4 = vperm.slane %v4123_v50, 1 }
 0x43b   :  { %1921 = vadd.xlane.f32.xlu2 %v1920_v56  ;;  %v2061_v42 = vsel %vm1489_vm0, %v2054_v44, 0.0  ;;  %v2007_v0 = vsel %vm1489_vm0, %v2000_v58, 0.0  ;;  %v2200_v22 = vsel %vm1489_vm0, %v2194_v26, 0.0  ;;  %v2201_v31 = vsel %vm1489_vm0, %v2195_v57, 0.0 }
 0x43c   :  { %v2062_v14 = vadd.f32 %v2061_v42, %v2060_v9  ;;  %v2196_v18 = vperm.slane %v4111_v36, 2  ;;  %v2146_v6 = vsel %vm1489_vm0, %v2140_v10, 0.0  ;;  %v2147_v20 = vsel %vm1489_vm0, %v2141_v7, 0.0  ;;  %v2464_v44 = vld [vmem:[%s2463_s4] ss:$8 sm:$0x7] }
 0x43d   :  { %v2123_v37 = vsel %vm1489_vm0, %v2117_v63, 0.0  ;;  %v2124_v49 = vsel %vm1489_vm0, %v2118_v4, 0.0  ;;  %v2282_v21 = vperm.slane %v4137_v2, 0  ;;  %v2283_v25 = vperm.slane %v4137_v2, 1 }
 0x43e   :  { %v2008_v30 = vadd.f32 %v2007_v0, %v2006_v1  ;;  %v2202_v28 = vadd.f32 %v2201_v31, %v2200_v22  ;;  %v4163_v29 = vmul.f32 %v4080_v23, %v4080_v23  ;;  %v4165_v48 = vmul.f32 %v2170_v27, %v2170_v27  ;;  %v4174_v23 = vld [vmem:[%s2331_s3] ss:$8 sm:$0x7] }
 0x43f   :  { %2105 = vadd.xlane.f32.xlu1 %v2104_v13  ;;  %v2142_v17 = vperm.slane %v4113_v53, 2  ;;  %v2203_v32 = vsel %vm1489_vm0, %v2196_v18, 0.0  ;;  %v2148_v11 = vadd.f32 %v2147_v20, %v2146_v6  ;;  %v2119_v34 = vperm.slane %v4123_v50, 2  ;;  %v2454_v53 = vld [vmem:[%s2453_s26] ss:$8 sm:$0x7] }
 0x440   :  { %v2125_v33 = vadd.f32 %v2124_v49, %v2123_v37  ;;  %v2288_v38 = vsel %vm1489_vm0, %v2282_v21, 0.0  ;;  %v2289_v35 = vsel %vm1489_vm0, %v2283_v25, 0.0  ;;  %v2259_v24 = vperm.slane %v4163_v29, 0  ;;  %v2474_v58 = vld [vmem:[%s2473_s10] ss:$8 sm:$0x7] }
 0x441   :  { %v4179_v5 = vmul.f32 %v2322_v12, %v2322_v12  ;;  %v2204_v39 = vadd.f32 %v2203_v32, %v2202_v28  ;;  %v2260_v41 = vperm.slane %v4163_v29, 1  ;;  %v2236_v43 = vperm.slane %v4165_v48, 0 }
 0x442   :  { %2063 = vadd.xlane.f32.xlu0 %v2062_v14  ;;  %v2237_v15 = vperm.slane %v4165_v48, 1  ;;  %v2149_v3 = vsel %vm1489_vm0, %v2142_v17, 0.0  ;;  %v2333_v45 = vsub.f32 %v2322_v12, %v4174_v23  ;;  %v2126_v46 = vsel %vm1489_vm0, %v2119_v34, 0.0 }
 0x443   :  { %2009 = vadd.xlane.f32.xlu2 %v2008_v30  ;;  %v2150_v19 = vadd.f32 %v2149_v3, %v2148_v11  ;;  %v2284_v47 = vperm.slane %v4137_v2, 2  ;;  %v2290_v51 = vadd.f32 %v2289_v35, %v2288_v38  ;;  %v2127_v27 = vadd.f32 %v2126_v46, %v2125_v33 }
 0x444   :  { %v2265_v52 = vsel %vm1489_vm0, %v2259_v24, 0.0  ;;  %v2401_v16 = vperm.slane %v4179_v5, 0  ;;  %v2376_v36 = vmul.f32 %v2312_v60, %v2312_v60  ;;  %v2266_v59 = vsel %vm1489_vm0, %v2260_v41, 0.0 }
 0x445   :  { %v2242_v54 = vsel %vm1489_vm0, %v2236_v43, 0.0  ;;  %v2243_v55 = vsel %vm1489_vm0, %v2237_v15, 0.0  ;;  %v2402_v40 = vperm.slane %v4179_v5, 1  ;;  %v2334_v56 = vmul.f32 %v2333_v45, %v2312_v60 }
 0x446   :  { %v2291_v50 = vsel %vm1489_vm0, %v2284_v47, 0.0  ;;  %v2261_v61 = vperm.slane %v4163_v29, 2  ;;  %v2238_v8 = vperm.slane %v4165_v48, 2  ;;  %v2518_v26 = vmul.f32 %v2454_v53, %v2454_v53 }
 0x447   :  { %2205 = vadd.xlane.f32.xlu1 %v2204_v39  ;;  %v2292_v57 = vadd.f32 %v2291_v50, %v2290_v51  ;;  %v2267_v9 = vadd.f32 %v2266_v59, %v2265_v52  ;;  %v2244_v10 = vadd.f32 %v2243_v55, %v2242_v54  ;;  %v2407_v7 = vsel %vm1489_vm0, %v2401_v16, 0.0 }
 0x448   :  { %v2408_v62 = vsel %vm1489_vm0, %v2402_v40, 0.0  ;;  %v2378_v2 = vperm.slane %v2376_v36, 0  ;;  %v2379_v13 = vperm.slane %v2376_v36, 1  ;;  %v2475_v1 = vsub.f32 %v2464_v44, %v2474_v58 }
 0x449   :  { %v2336_v63 = vperm.slane %v2334_v56, 0  ;;  %v2337_v4 = vperm.slane %v2334_v56, 1  ;;  %v2268_v42 = vsel %vm1489_vm0, %v2261_v61, 0.0  ;;  %v2245_v0 = vsel %vm1489_vm0, %v2238_v8, 0.0 }
 0x44a   :  { %2151 = vadd.xlane.f32.xlu0 %v2150_v19  ;;  %v2403_v22 = vperm.slane %v4179_v5, 2  ;;  %v2269_v31 = vadd.f32 %v2268_v42, %v2267_v9  ;;  %v2246_v14 = vadd.f32 %v2245_v0, %v2244_v10  ;;  %v2409_v18 = vadd.f32 %v2408_v62, %v2407_v7 }
 0x44b   :  { %2128 = vadd.xlane.f32.xlu2 %v2127_v27  ;;  %v2520_v6 = vperm.slane %v2518_v26, 0  ;;  %v2384_v20 = vsel %vm1489_vm0, %v2378_v2, 0.0  ;;  %v2385_v37 = vsel %vm1489_vm0, %v2379_v13, 0.0  ;;  %v2521_v49 = vperm.slane %v2518_v26, 1 }
 0x44c   :  { %v2476_v21 = vmul.f32 %v2475_v1, %v2454_v53  ;;  %v2342_v25 = vsel %vm1489_vm0, %v2336_v63, 0.0  ;;  %v2343_v30 = vsel %vm1489_vm0, %v2337_v4, 0.0  ;;  %v2422_v28 = vmul.f32 %v4174_v23, %v4174_v23 }
 0x44d   :  { %v2410_v29 = vsel %vm1489_vm0, %v2403_v22, 0.0  ;;  %v2380_v48 = vperm.slane %v2376_v36, 2  ;;  %v2386_v17 = vadd.f32 %v2385_v37, %v2384_v20  ;;  %v2338_v32 = vperm.slane %v2334_v56, 2 }
 0x44e   :  { %v2411_v12 = vadd.f32 %v2410_v29, %v2409_v18  ;;  %v2526_v11 = vsel %vm1489_vm0, %v2520_v6, 0.0  ;;  %v2344_v34 = vadd.f32 %v2343_v30, %v2342_v25  ;;  %v2527_v33 = vsel %vm1489_vm0, %v2521_v49, 0.0 }
 0x44f   :  { %2293 = vadd.xlane.f32.xlu1 %v2292_v57  ;;  %v2478_v38 = vperm.slane %v2476_v21, 0  ;;  %v2479_v35 = vperm.slane %v2476_v21, 1  ;;  %v2424_v24 = vperm.slane %v2422_v28, 0  ;;  %v2425_v5 = vperm.slane %v2422_v28, 1 }
 0x450   :  { %v2387_v39 = vsel %vm1489_vm0, %v2380_v48, 0.0  ;;  %v2345_v41 = vsel %vm1489_vm0, %v2338_v32, 0.0  ;;  %v2522_v43 = vperm.slane %v2518_v26, 2  ;;  %v2528_v15 = vadd.f32 %v2527_v33, %v2526_v11 }
 0x451   :  { %v2388_v23 = vadd.f32 %v2387_v39, %v2386_v17  ;;  %v2346_v60 = vadd.f32 %v2345_v41, %v2344_v34  ;;  %v2484_v3 = vsel %vm1489_vm0, %v2478_v38, 0.0  ;;  %v2485_v45 = vsel %vm1489_vm0, %v2479_v35, 0.0 }
 0x452   :  { %2270 = vadd.xlane.f32.xlu0 %v2269_v31  ;;  %v2564_v19 = vmul.f32 %v2474_v58, %v2474_v58  ;;  %v2430_v46 = vsel %vm1489_vm0, %v2424_v24, 0.0  ;;  %v2431_v47 = vsel %vm1489_vm0, %v2425_v5, 0.0  ;;  %v2541_v51 = vmul.f32 %v2464_v44, %v2464_v44 }
 0x453   :  { %2247 = vadd.xlane.f32.xlu2 %v2246_v14  ;;  %v2480_v27 = vperm.slane %v2476_v21, 2  ;;  %v2529_v52 = vsel %vm1489_vm0, %v2522_v43, 0.0  ;;  %v2486_v16 = vadd.f32 %v2485_v45, %v2484_v3  ;;  %v2426_v36 = vperm.slane %v2422_v28, 2 }
 0x454   :  { %v2530_v53 = vadd.f32 %v2529_v52, %v2528_v15  ;;  %v2432_v59 = vadd.f32 %v2431_v47, %v2430_v46  ;;  %v2566_v54 = vperm.slane %v2564_v19, 0  ;;  %v2567_v55 = vperm.slane %v2564_v19, 1 }
 0x455   :  { %v2543_v40 = vperm.slane %v2541_v51, 0  ;;  %v2544_v56 = vperm.slane %v2541_v51, 1  ;;  %v2487_v58 = vsel %vm1489_vm0, %v2480_v27, 0.0  ;;  %v2433_v61 = vsel %vm1489_vm0, %v2426_v36, 0.0 }
 0x456   :  { %v2488_v50 = vadd.f32 %v2487_v58, %v2486_v16  ;;  %v2434_v8 = vadd.f32 %v2433_v61, %v2432_v59  ;;  %v2572_v44 = vsel %vm1489_vm0, %v2566_v54, 0.0  ;;  %v2573_v26 = vsel %vm1489_vm0, %v2567_v55, 0.0 }
 0x457   :  { %2412 = vadd.xlane.f32.xlu1 %v2411_v12  ;;  %v2549_v57 = vsel %vm1489_vm0, %v2543_v40, 0.0  ;;  %v2550_v9 = vsel %vm1489_vm0, %v2544_v56, 0.0  ;;  %v2568_v10 = vperm.slane %v2564_v19, 2  ;;  %v2574_v7 = vadd.f32 %v2573_v26, %v2572_v44 }
 0x458   :  { %v2545_v62 = vperm.slane %v2541_v51, 2  ;;  %v2551_v2 = vadd.f32 %v2550_v9, %v2549_v57 }
 0x459   :  { %v2575_v13 = vsel %vm1489_vm0, %v2568_v10, 0.0 }
 0x45a   :  { %2389 = vadd.xlane.f32.xlu0 %v2388_v23  ;;  %v2576_v1 = vadd.f32 %v2575_v13, %v2574_v7  ;;  %v2552_v63 = vsel %vm1489_vm0, %v2545_v62, 0.0 }
 0x45b   :  { %2347 = vadd.xlane.f32.xlu2 %v2346_v60  ;;  %v2553_v4 = vadd.f32 %v2552_v63, %v2551_v2 }
 0x45f   :  { %2531 = vadd.xlane.f32.xlu1 %v2530_v53 }
 0x462   :  { %2489 = vadd.xlane.f32.xlu0 %v2488_v50 }
 0x463   :  { %2435 = vadd.xlane.f32.xlu2 %v2434_v8 }
 0x46a   :  { %2577 = vadd.xlane.f32.xlu0 %v2576_v1 }
 0x46b   :  { %2554 = vadd.xlane.f32.xlu2 %v2553_v4 }
 0x48a   :  { %v1561_v25 = vpop.xlane.xlu1 %1560 }
 0x48b   :  { %v1562_v48 = vrot.slane %v1561_v25, 4 }
 0x48c   :  { %v1538_v21 = vpop.xlane.xlu0 %1537 }
 0x48d   :  { %v1539_v28 = vrot.slane %v1538_v21, 4  ;;  %v1563_v11 = vadd.f32 %v1562_v48, %v1561_v25 }
 0x48e   :  { %v1496_v42 = vpop.xlane.xlu2 %1495 }
 0x48f   :  { %v1497_v0 = vrot.slane %v1496_v42, 4  ;;  %v1540_v32 = vadd.f32 %v1539_v28, %v1538_v21  ;;  %v1564_v24 = vrot.slane %v1563_v11, 2 }
 0x491   :  { %v1498_v22 = vadd.f32 %v1497_v0, %v1496_v42  ;;  %v1541_v38 = vrot.slane %v1540_v32, 2  ;;  %v1565_v15 = vadd.f32 %v1564_v24, %v1563_v11 }
 0x492   :  { %v1680_v61 = vpop.xlane.xlu1 %1679 }
 0x493   :  { %v1499_v31 = vrot.slane %v1498_v22, 2  ;;  %v1542_v43 = vadd.f32 %v1541_v38, %v1540_v32  ;;  %v1566_v51 = vrot.slane %v1565_v15, 1  ;;  %v1681_v26 = vrot.slane %v1680_v61, 4 }
 0x495   :  { %v1500_v14 = vadd.f32 %v1499_v31, %v1498_v22  ;;  %v1638_v29 = vpop.xlane.xlu0 %1637  ;;  %v1543_v46 = vrot.slane %v1542_v43, 1  ;;  %v1567_v54 = vadd.f32 %v1566_v51, %v1565_v15  ;;  %v1682_v62 = vadd.f32 %v1681_v26, %v1680_v61 }
 0x496   :  { %v1584_v30 = vpop.xlane.xlu2 %1583  ;;  %v1639_v17 = vrot.slane %v1638_v29, 4 }
 0x497   :  { %v1501_v18 = vrot.slane %v1500_v14, 1  ;;  %v1585_v12 = vrot.slane %v1584_v30, 4  ;;  %v1544_v59 = vadd.f32 %v1543_v46, %v1542_v43  ;;  %v1683_v63 = vrot.slane %v1682_v62, 2 }
 0x498   :  { %v1640_v33 = vadd.f32 %v1639_v17, %v1638_v29 }
 0x499   :  { %v1502_v6 = vadd.f32 %v1501_v18, %v1500_v14  ;;  %v1586_v34 = vadd.f32 %v1585_v12, %v1584_v30  ;;  %v1684_v18 = vadd.f32 %v1683_v63, %v1682_v62 }
 0x49a   :  { %v1641_v41 = vrot.slane %v1640_v33, 2  ;;  %v1780_v57 = vpop.xlane.xlu1 %1779 }
 0x49b   :  { %2986 = vpush %v1502_v6  ;;  %v1587_v39 = vrot.slane %v1586_v34, 2  ;;  %v1781_v7 = vrot.slane %v1780_v57, 4  ;;  %v1685_v25 = vrot.slane %v1684_v18, 1 }
 0x49c   :  { %v1642_v19 = vadd.f32 %v1641_v41, %v1640_v33 }
 0x49d   :  { %v1588_v3 = vadd.f32 %v1587_v39, %v1586_v34  ;;  %v1726_v44 = vpop.xlane.xlu0 %1725  ;;  %v1782_v1 = vadd.f32 %v1781_v7, %v1780_v57  ;;  %v1686_v11 = vadd.f32 %v1685_v25, %v1684_v18 }
 0x49e   :  { %v1643_v36 = vrot.slane %v1642_v19, 1  ;;  %v1703_v8 = vpop.xlane.xlu2 %1702  ;;  %v1727_v10 = vrot.slane %v1726_v44, 4 }
 0x49f   :  { %v1589_v16 = vrot.slane %v1588_v3, 1  ;;  %v1704_v9 = vrot.slane %v1703_v8, 4  ;;  %v1783_v14 = vrot.slane %v1782_v1, 2 }
 0x4a0   :  { %v1644_v40 = vadd.f32 %v1643_v36, %v1642_v19  ;;  %v1728_v13 = vadd.f32 %v1727_v10, %v1726_v44 }
 0x4a1   :  { %v1590_v55 = vadd.f32 %v1589_v16, %v1588_v3  ;;  %v1705_v2 = vadd.f32 %v1704_v9, %v1703_v8  ;;  %v1784_v21 = vadd.f32 %v1783_v14, %v1782_v1 }
 0x4a2   :  { %v1729_v22 = vrot.slane %v1728_v13, 2  ;;  %v1868_v41 = vpop.xlane.xlu1 %1867 }
 0x4a3   :  { %v1706_v42 = vrot.slane %v1705_v2, 2  ;;  %v1785_v17 = vrot.slane %v1784_v21, 1  ;;  %v1869_v3 = vrot.slane %v1868_v41, 4 }
 0x4a5   :  { %v1707_v6 = vadd.f32 %v1706_v42, %v1705_v2  ;;  %v1786_v38 = vadd.f32 %v1785_v17, %v1784_v21 }
 0x4a6   :  { %v1822_v39 = vpop.xlane.xlu2 %1821 }
 0x4a7   :  { %v1708_v28 = vrot.slane %v1707_v6, 1  ;;  %v1823_v43 = vrot.slane %v1822_v39, 4 }
 0x4a9   :  { %v1709_v34 = vadd.f32 %v1708_v28, %v1707_v6  ;;  %v1824_v19 = vadd.f32 %v1823_v43, %v1822_v39 }
 0x4ae   :  { %v1922_v15 = vpop.xlane.xlu2 %1921 }
 0x4b6   :  { %v2010_v14 = vpop.xlane.xlu2 %2009 }
 0x4cc   :  { %s4231_s15 = spop %2986 }
 0x4cd   :  { %s1505_s12 = sand.u32 2147483647, %s4231_s15  ;;  %s4236_s19 = smin.f32 %s3373_s6, %s4231_s15 }
 0x4ce   :  { %s1506_s14 = ssub.f32 0.0, %s1505_s12 }
 0x4d0   :  { %v1507_v20 = vstv %s1506_s14 }
 0x4d1   :  { %v1508_v37 = vmul.f32 1.442695, %v1507_v20 }
 0x4d3   :  { %3169 = vpow2.f32 %v1508_v37  ;;  %v1730_v37 = vadd.f32 %v1729_v22, %v1728_v13 }
 0x4d5   :  { %v1731_v12 = vrot.slane %v1730_v37, 1 }
 0x4d7   :  { %v1732_v33 = vadd.f32 %v1731_v12, %v1730_v37  ;;  %v2011_v37 = vrot.slane %v2010_v14, 4 }
 0x4d9   :  { %v3170_v49 = vpop.eup %3169 }
 0x4da   :  { %2988 = vpush %v3170_v49 }
 0x50b   :  { %s2989_s16 = spop %2988 }
 0x50c   :  { %v1511_v35 = vstv %s2989_s16 }
 0x50d   :  { %v1512_v5 = vadd.f32 1.0, %v1511_v35  ;;  %v1515_v23 = vmul.f32 -0.5, %v1511_v35  ;;  %v1518_v45 = vand.u32 2147483647, %v1511_v35 }
 0x50f   :  { %3171 = vlog2.f32 %v1512_v5  ;;  %v1516_v60 = vadd.f32 1.0, %v1515_v23  ;;  %vm1519_vm1 = vcmp.lt.f32.partialorder %v1518_v45, 0.0004427343  ;;  %v1845_v23 = vpop.xlane.xlu0 %1844  ;;  %v1923_v45 = vrot.slane %v1922_v15, 4 }
 0x511   :  { %v1517_v27 = vmul.f32 %v1516_v60, %v1511_v35  ;;  %v1846_v60 = vrot.slane %v1845_v23, 4  ;;  %v1924_v51 = vadd.f32 %v1923_v45, %v1922_v15 }
 0x513   :  { %v1847_v46 = vadd.f32 %v1846_v60, %v1845_v23 }
 0x515   :  { %v3172_v47 = vpop.eup %3171  ;;  %v1848_v16 = vrot.slane %v1847_v46, 2 }
 0x516   :  { %v1514_v52 = vmul.f32 0.6931472, %v3172_v47  ;;  %v1870_v47 = vadd.f32 %v1869_v3, %v1868_v41 }
 0x517   :  { %v1964_v22 = vpop.xlane.xlu0 %1963 }
 0x518   :  { %v1520_v53 = vsel %vm1519_vm1, %v1517_v27, %v1514_v52  ;;  %v1825_v27 = vrot.slane %v1824_v19, 2  ;;  %v1965_v18 = vrot.slane %v1964_v22, 4 }
 0x519   :  { %2990 = vpush %v1520_v53  ;;  %v1871_v53 = vrot.slane %v1870_v47, 2 }
 0x51a   :  { %2992 = vpush %v1544_v59  ;;  %v1966_v21 = vadd.f32 %v1965_v18, %v1964_v22 }
 0x51b   :  { %2994 = vpush %v1567_v54  ;;  %v1925_v54 = vrot.slane %v1924_v51, 2 }
 0x51c   :  { %2996 = vpush %v1590_v55  ;;  %v1826_v55 = vadd.f32 %v1825_v27, %v1824_v19 }
 0x51d   :  { %2998 = vpush %v1644_v40  ;;  %v1849_v40 = vadd.f32 %v1848_v16, %v1847_v46  ;;  %v1926_v61 = vadd.f32 %v1925_v54, %v1924_v51 }
 0x51e   :  { %v1827_v8 = vrot.slane %v1826_v55, 1 }
 0x51f   :  { %v1850_v26 = vrot.slane %v1849_v40, 1  ;;  %v1927_v7 = vrot.slane %v1926_v61, 1  ;;  %v2064_v6 = vpop.xlane.xlu0 %2063 }
 0x520   :  { %v1828_v2 = vadd.f32 %v1827_v8, %v1826_v55 }
 0x521   :  { %v1851_v13 = vadd.f32 %v1850_v26, %v1849_v40  ;;  %v1928_v63 = vadd.f32 %v1927_v7, %v1926_v61 }
 0x527   :  { %v2152_v54 = vpop.xlane.xlu0 %2151 }
 0x54a   :  { %s4238_s8 = spop %2990 }
 0x54b   :  { %s1522_s20 = ssub.f32 %s4236_s19, %s4238_s8  ;;  %s4242_s0 = spop %2992 }
 0x54c   :  { %s4244_s21 = spop %2994 }
 0x54d   :  { %s4246_s1 = spop %2996 }
 0x54e   :  { %s4248_s22 = spop %2998 }
 0x54f   :  { %s1647_s24 = sand.u32 2147483647, %s4248_s22  ;;  %s1646_s28 = smin.f32 %s3373_s6, %s4248_s22 }
 0x550   :  { %s1648_s2 = ssub.f32 0.0, %s1647_s24 }
 0x552   :  { %v1649_v56 = vstv %s1648_s2 }
 0x553   :  { %v1650_v58 = vmul.f32 1.442695, %v1649_v56 }
 0x555   :  { %3173 = vpow2.f32 %v1650_v58  ;;  %v1872_v58 = vadd.f32 %v1871_v53, %v1870_v47 }
 0x557   :  { %v1873_v10 = vrot.slane %v1872_v58, 1 }
 0x559   :  { %v1874_v1 = vadd.f32 %v1873_v10, %v1872_v58  ;;  %v2153_v58 = vrot.slane %v2152_v54, 4 }
 0x55b   :  { %v3174_v50 = vpop.eup %3173 }
 0x55c   :  { %3000 = vpush %v3174_v50 }
 0x58d   :  { %s3001_s25 = spop %3000 }
 0x58e   :  { %v1653_v4 = vstv %s3001_s25 }
 0x58f   :  { %v1654_v0 = vadd.f32 1.0, %v1653_v4  ;;  %v1657_v31 = vmul.f32 -0.5, %v1653_v4  ;;  %v1660_v49 = vand.u32 2147483647, %v1653_v4 }
 0x591   :  { %3175 = vlog2.f32 %v1654_v0  ;;  %v1658_v20 = vadd.f32 1.0, %v1657_v31  ;;  %vm1661_vm2 = vcmp.lt.f32.partialorder %v1660_v49, 0.0004427343  ;;  %v1987_v31 = vpop.xlane.xlu1 %1986  ;;  %v2065_v49 = vrot.slane %v2064_v6, 4 }
 0x593   :  { %v1659_v29 = vmul.f32 %v1658_v20, %v1653_v4  ;;  %v1988_v20 = vrot.slane %v1987_v31, 4  ;;  %v2066_v28 = vadd.f32 %v2065_v49, %v2064_v6 }
 0x595   :  { %v1989_v25 = vadd.f32 %v1988_v20, %v1987_v31 }
 0x597   :  { %v3176_v30 = vpop.eup %3175  ;;  %v1990_v12 = vrot.slane %v1989_v25, 2 }
 0x598   :  { %v1656_v48 = vmul.f32 0.6931472, %v3176_v30  ;;  %v2012_v30 = vadd.f32 %v2011_v37, %v2010_v14 }
 0x599   :  { %v2106_v53 = vpop.xlane.xlu1 %2105 }
 0x59a   :  { %v1662_v32 = vsel %vm1661_vm2, %v1659_v29, %v1656_v48  ;;  %v1967_v29 = vrot.slane %v1966_v21, 2  ;;  %v2107_v55 = vrot.slane %v2106_v53, 4 }
 0x59b   :  { %3002 = vpush %v1662_v32  ;;  %v2013_v32 = vrot.slane %v2012_v30, 2 }
 0x59c   :  { %3004 = vpush %v1686_v11  ;;  %v2108_v61 = vadd.f32 %v2107_v55, %v2106_v53 }
 0x59d   :  { %3006 = vpush %v1709_v34  ;;  %v2067_v34 = vrot.slane %v2066_v28, 2 }
 0x59e   :  { %3008 = vpush %v1732_v33  ;;  %v1968_v33 = vadd.f32 %v1967_v29, %v1966_v21 }
 0x59f   :  { %3010 = vpush %v1786_v38  ;;  %v1991_v38 = vadd.f32 %v1990_v12, %v1989_v25  ;;  %v2068_v39 = vadd.f32 %v2067_v34, %v2066_v28 }
 0x5a0   :  { %v1969_v23 = vrot.slane %v1968_v33, 1 }
 0x5a1   :  { %v1992_v43 = vrot.slane %v1991_v38, 1  ;;  %v2069_v45 = vrot.slane %v2068_v39, 1  ;;  %v2206_v40 = vpop.xlane.xlu1 %2205 }
 0x5a2   :  { %v1970_v46 = vadd.f32 %v1969_v23, %v1968_v33 }
 0x5a3   :  { %v1993_v47 = vadd.f32 %v1992_v43, %v1991_v38  ;;  %v2070_v27 = vadd.f32 %v2069_v45, %v2068_v39 }
 0x5a9   :  { %v2294_v34 = vpop.xlane.xlu1 %2293 }
 0x5cc   :  { %s3003_s29 = spop %3002 }
 0x5cd   :  { %s1664_s11 = ssub.f32 %s1646_s28, %s3003_s29  ;;  %s4253_s13 = spop %3004 }
 0x5ce   :  { %s4255_s30 = spop %3006  ;;  %s1688_s23 = sadd.f32 %s4253_s13, %s4242_s0 }
 0x5cf   :  { %s4260_s17 = sadd.f32 %s1664_s11, %s1522_s20  ;;  %s4262_s18 = spop %3008 }
 0x5d0   :  { %s4264_s27 = spop %3010  ;;  %s1711_s26 = sadd.f32 %s4255_s30, %s4244_s21 }
 0x5d1   :  { %s1789_s3 = sand.u32 2147483647, %s4264_s27  ;;  %s1734_s4 = sadd.f32 %s4262_s18, %s4246_s1 }
 0x5d2   :  { %s1790_s7 = ssub.f32 0.0, %s1789_s3  ;;  %s1788_s10 = smin.f32 %s3373_s6, %s4264_s27 }
 0x5d4   :  { %v1791_v35 = vstv %s1790_s7 }
 0x5d5   :  { %v1792_v24 = vmul.f32 1.442695, %v1791_v35 }
 0x5d7   :  { %3177 = vpow2.f32 %v1792_v24  ;;  %v2014_v24 = vadd.f32 %v2013_v32, %v2012_v30 }
 0x5d9   :  { %v2015_v3 = vrot.slane %v2014_v24, 1 }
 0x5db   :  { %v2016_v51 = vadd.f32 %v2015_v3, %v2014_v24  ;;  %v2295_v24 = vrot.slane %v2294_v34, 4 }
 0x5dd   :  { %v3178_v5 = vpop.eup %3177 }
 0x5de   :  { %3012 = vpush %v3178_v5 }
 0x60f   :  { %s3013_s5 = spop %3012 }
 0x610   :  { %v1795_v52 = vstv %s3013_s5 }
 0x611   :  { %v1796_v36 = vadd.f32 1.0, %v1795_v52  ;;  %v1799_v59 = vmul.f32 -0.5, %v1795_v52  ;;  %v1802_v50 = vand.u32 2147483647, %v1795_v52 }
 0x613   :  { %3179 = vlog2.f32 %v1796_v36  ;;  %v1800_v56 = vadd.f32 1.0, %v1799_v59  ;;  %vm1803_vm3 = vcmp.lt.f32.partialorder %v1802_v50, 0.0004427343  ;;  %v2129_v59 = vpop.xlane.xlu2 %2128  ;;  %v2207_v50 = vrot.slane %v2206_v40, 4 }
 0x615   :  { %v1801_v57 = vmul.f32 %v1800_v56, %v1795_v52  ;;  %v2130_v56 = vrot.slane %v2129_v59, 4  ;;  %v2208_v26 = vadd.f32 %v2207_v50, %v2206_v40 }
 0x617   :  { %v2131_v8 = vadd.f32 %v2130_v56, %v2129_v59 }
 0x619   :  { %v3180_v44 = vpop.eup %3179  ;;  %v2132_v10 = vrot.slane %v2131_v8, 2 }
 0x61a   :  { %v1798_v9 = vmul.f32 0.6931472, %v3180_v44  ;;  %v2154_v44 = vadd.f32 %v2153_v58, %v2152_v54 }
 0x61b   :  { %v2248_v32 = vpop.xlane.xlu2 %2247 }
 0x61c   :  { %v1804_v62 = vsel %vm1803_vm3, %v1801_v57, %v1798_v9  ;;  %v2109_v57 = vrot.slane %v2108_v61, 2  ;;  %v2249_v33 = vrot.slane %v2248_v32, 4 }
 0x61d   :  { %3014 = vpush %v1804_v62  ;;  %v2155_v62 = vrot.slane %v2154_v44, 2 }
 0x61e   :  { %3016 = vpush %v1828_v2  ;;  %v2250_v39 = vadd.f32 %v2249_v33, %v2248_v32 }
 0x61f   :  { %3018 = vpush %v1851_v13  ;;  %v2209_v13 = vrot.slane %v2208_v26, 2 }
 0x620   :  { %3020 = vpush %v1874_v1  ;;  %v2110_v1 = vadd.f32 %v2109_v57, %v2108_v61 }
 0x621   :  { %3022 = vpush %v1928_v63  ;;  %v2133_v63 = vadd.f32 %v2132_v10, %v2131_v8  ;;  %v2210_v22 = vadd.f32 %v2209_v13, %v2208_v26 }
 0x622   :  { %v2111_v31 = vrot.slane %v2110_v1, 1 }
 0x623   :  { %v2134_v18 = vrot.slane %v2133_v63, 1  ;;  %v2211_v49 = vrot.slane %v2210_v22, 1  ;;  %v2348_v38 = vpop.xlane.xlu2 %2347 }
 0x624   :  { %v2112_v25 = vadd.f32 %v2111_v31, %v2110_v1 }
 0x625   :  { %v2135_v30 = vadd.f32 %v2134_v18, %v2133_v63  ;;  %v2212_v29 = vadd.f32 %v2211_v49, %v2210_v22 }
 0x62b   :  { %v2436_v13 = vpop.xlane.xlu2 %2435 }
 0x64e   :  { %s3015_s15 = spop %3014 }
 0x64f   :  { %s1806_s12 = ssub.f32 %s1788_s10, %s3015_s15  ;;  %s3017_s14 = spop %3016 }
 0x650   :  { %s4275_s16 = sadd.f32 %s3017_s14, %s1688_s23  ;;  %s3019_s19 = spop %3018 }
 0x651   :  { %s4278_s8 = sadd.f32 %s1806_s12, %s4260_s17  ;;  %s3021_s20 = spop %3020 }
 0x652   :  { %s4280_s22 = sadd.f32 %s3019_s19, %s1711_s26  ;;  %s4282_s24 = spop %3022 }
 0x653   :  { %s4284_s2 = sadd.f32 %s3021_s20, %s1734_s4  ;;  %s1931_s0 = sand.u32 2147483647, %s4282_s24 }
 0x654   :  { %s1932_s21 = ssub.f32 0.0, %s1931_s0  ;;  %s1930_s25 = smin.f32 %s3373_s6, %s4282_s24 }
 0x656   :  { %v1933_v4 = vstv %s1932_s21 }
 0x657   :  { %v1934_v42 = vmul.f32 1.442695, %v1933_v4 }
 0x659   :  { %3181 = vpow2.f32 %v1934_v42  ;;  %v2156_v42 = vadd.f32 %v2155_v62, %v2154_v44 }
 0x65b   :  { %v2157_v37 = vrot.slane %v2156_v42, 1 }
 0x65d   :  { %v2158_v28 = vadd.f32 %v2157_v37, %v2156_v42  ;;  %v2437_v42 = vrot.slane %v2436_v13, 4 }
 0x65f   :  { %v3182_v0 = vpop.eup %3181 }
 0x660   :  { %3024 = vpush %v3182_v0 }
 0x691   :  { %s3025_s1 = spop %3024 }
 0x692   :  { %v1937_v48 = vstv %s3025_s1 }
 0x693   :  { %v1938_v17 = vadd.f32 1.0, %v1937_v48  ;;  %v1941_v11 = vmul.f32 -0.5, %v1937_v48  ;;  %v1944_v5 = vand.u32 2147483647, %v1937_v48 }
 0x695   :  { %3183 = vlog2.f32 %v1938_v17  ;;  %v1942_v35 = vadd.f32 1.0, %v1941_v11  ;;  %vm1945_vm4 = vcmp.lt.f32.partialorder %v1944_v5, 0.0004427343  ;;  %v2271_v11 = vpop.xlane.xlu0 %2270  ;;  %v2349_v5 = vrot.slane %v2348_v38, 4 }
 0x697   :  { %v1943_v15 = vmul.f32 %v1942_v35, %v1937_v48  ;;  %v2272_v35 = vrot.slane %v2271_v11, 4  ;;  %v2350_v43 = vadd.f32 %v2349_v5, %v2348_v38 }
 0x699   :  { %v2273_v23 = vadd.f32 %v2272_v35, %v2271_v11 }
 0x69b   :  { %v3184_v41 = vpop.eup %3183  ;;  %v2274_v3 = vrot.slane %v2273_v23, 2 }
 0x69c   :  { %v1940_v60 = vmul.f32 0.6931472, %v3184_v41  ;;  %v2296_v41 = vadd.f32 %v2295_v24, %v2294_v34 }
 0x69d   :  { %v2390_v62 = vpop.xlane.xlu0 %2389 }
 0x69e   :  { %v1946_v19 = vsel %vm1945_vm4, %v1943_v15, %v1940_v60  ;;  %v2251_v15 = vrot.slane %v2250_v39, 2  ;;  %v2391_v1 = vrot.slane %v2390_v62, 4 }
 0x69f   :  { %3026 = vpush %v1946_v19  ;;  %v2297_v19 = vrot.slane %v2296_v41, 2 }
 0x6a0   :  { %3028 = vpush %v1970_v46  ;;  %v2392_v22 = vadd.f32 %v2391_v1, %v2390_v62 }
 0x6a1   :  { %3030 = vpush %v1993_v47  ;;  %v2351_v47 = vrot.slane %v2350_v43, 2 }
 0x6a2   :  { %3032 = vpush %v2016_v51  ;;  %v2252_v51 = vadd.f32 %v2251_v15, %v2250_v39 }
 0x6a3   :  { %3034 = vpush %v2070_v27  ;;  %v2275_v27 = vadd.f32 %v2274_v3, %v2273_v23  ;;  %v2352_v53 = vadd.f32 %v2351_v47, %v2350_v43  ;;  %v2555_v47 = vpop.xlane.xlu2 %2554 }
 0x6a4   :  { %v2253_v59 = vrot.slane %v2252_v51, 1 }
 0x6a5   :  { %v2276_v55 = vrot.slane %v2275_v27, 1  ;;  %v2353_v50 = vrot.slane %v2352_v53, 1  ;;  %v2490_v63 = vpop.xlane.xlu0 %2489 }
 0x6a6   :  { %v2254_v8 = vadd.f32 %v2253_v59, %v2252_v51 }
 0x6a7   :  { %v2277_v44 = vadd.f32 %v2276_v55, %v2275_v27  ;;  %v2354_v57 = vadd.f32 %v2353_v50, %v2352_v53 }
 0x6ad   :  { %v2578_v51 = vpop.xlane.xlu0 %2577 }
 0x6d0   :  { %s3027_s28 = spop %3026 }
 0x6d1   :  { %s1948_s29 = ssub.f32 %s1930_s25, %s3027_s28  ;;  %s4289_s11 = spop %3028 }
 0x6d2   :  { %s1972_s13 = sadd.f32 %s4289_s11, %s4275_s16  ;;  %s4293_s30 = spop %3030 }
 0x6d3   :  { %s4296_s17 = sadd.f32 %s1948_s29, %s4278_s8  ;;  %s4298_s18 = spop %3032 }
 0x6d4   :  { %s1995_s27 = sadd.f32 %s4293_s30, %s4280_s22  ;;  %s4302_s3 = spop %3034 }
 0x6d5   :  { %s2018_s7 = sadd.f32 %s4298_s18, %s4284_s2  ;;  %s2073_s5 = sand.u32 2147483647, %s4302_s3 }
 0x6d6   :  { %s2074_s23 = ssub.f32 0.0, %s2073_s5  ;;  %s2072_s4 = smin.f32 %s3373_s6, %s4302_s3 }
 0x6d8   :  { %v2075_v52 = vstv %s2074_s23 }
 0x6d9   :  { %v2076_v16 = vmul.f32 1.442695, %v2075_v52 }
 0x6db   :  { %3185 = vpow2.f32 %v2076_v16  ;;  %v2298_v16 = vadd.f32 %v2297_v19, %v2296_v41 }
 0x6dd   :  { %v2299_v58 = vrot.slane %v2298_v16, 1 }
 0x6df   :  { %v2300_v26 = vadd.f32 %v2299_v58, %v2298_v16  ;;  %v2579_v16 = vrot.slane %v2578_v51, 4 }
 0x6e1   :  { %v3186_v36 = vpop.eup %3185 }
 0x6e2   :  { %3036 = vpush %v3186_v36 }
 0x713   :  { %s3037_s26 = spop %3036 }
 0x714   :  { %v2079_v9 = vstv %s3037_s26 }
 0x715   :  { %v2080_v7 = vadd.f32 1.0, %v2079_v9  ;;  %v2083_v2 = vmul.f32 -0.5, %v2079_v9  ;;  %v2086_v0 = vand.u32 2147483647, %v2079_v9 }
 0x717   :  { %3187 = vlog2.f32 %v2080_v7  ;;  %v2084_v4 = vadd.f32 1.0, %v2083_v2  ;;  %vm2087_vm5 = vcmp.lt.f32.partialorder %v2086_v0, 0.0004427343  ;;  %v2413_v2 = vpop.xlane.xlu1 %2412  ;;  %v2491_v0 = vrot.slane %v2490_v63, 4 }
 0x719   :  { %v2085_v6 = vmul.f32 %v2084_v4, %v2079_v9  ;;  %v2414_v4 = vrot.slane %v2413_v2, 4  ;;  %v2492_v18 = vadd.f32 %v2491_v0, %v2490_v63 }
 0x71b   :  { %v2415_v31 = vadd.f32 %v2414_v4, %v2413_v2 }
 0x71d   :  { %v3188_v14 = vpop.eup %3187  ;;  %v2416_v37 = vrot.slane %v2415_v31, 2 }
 0x71e   :  { %v2082_v20 = vmul.f32 0.6931472, %v3188_v14  ;;  %v2438_v14 = vadd.f32 %v2437_v42, %v2436_v13 }
 0x71f   :  { %v2532_v19 = vpop.xlane.xlu1 %2531 }
 0x720   :  { %v2088_v21 = vsel %vm2087_vm5, %v2085_v6, %v2082_v20  ;;  %v2393_v6 = vrot.slane %v2392_v22, 2  ;;  %v2533_v27 = vrot.slane %v2532_v19, 4 }
 0x721   :  { %3038 = vpush %v2088_v21  ;;  %v2439_v21 = vrot.slane %v2438_v14, 2 }
 0x722   :  { %3040 = vpush %v2112_v25  ;;  %v2534_v53 = vadd.f32 %v2533_v27, %v2532_v19 }
 0x723   :  { %3042 = vpush %v2135_v30  ;;  %v2493_v30 = vrot.slane %v2492_v18, 2 }
 0x724   :  { %3044 = vpush %v2158_v28  ;;  %v2394_v28 = vadd.f32 %v2393_v6, %v2392_v22 }
 0x725   :  { %3046 = vpush %v2212_v29  ;;  %v2417_v29 = vadd.f32 %v2416_v37, %v2415_v31  ;;  %v2494_v32 = vadd.f32 %v2493_v30, %v2492_v18 }
 0x726   :  { %v2395_v11 = vrot.slane %v2394_v28, 1 }
 0x727   :  { %v2418_v33 = vrot.slane %v2417_v29, 1  ;;  %v2495_v5 = vrot.slane %v2494_v32, 1 }
 0x728   :  { %v2396_v23 = vadd.f32 %v2395_v11, %v2394_v28 }
 0x729   :  { %v2419_v41 = vadd.f32 %v2418_v33, %v2417_v29  ;;  %v2496_v15 = vadd.f32 %v2495_v5, %v2494_v32 }
 0x752   :  { %s3039_s10 = spop %3038 }
 0x753   :  { %s2090_s15 = ssub.f32 %s2072_s4, %s3039_s10  ;;  %s3041_s12 = spop %3040 }
 0x754   :  { %s4312_s14 = sadd.f32 %s3041_s12, %s1972_s13  ;;  %s3043_s19 = spop %3042 }
 0x755   :  { %s4315_s8 = sadd.f32 %s2090_s15, %s4296_s17  ;;  %s3045_s20 = spop %3044 }
 0x756   :  { %s4320_s24 = sadd.f32 %s3043_s19, %s1995_s27  ;;  %s4322_s0 = spop %3046 }
 0x757   :  { %s4327_s21 = sadd.f32 %s3045_s20, %s2018_s7  ;;  %s2215_s1 = sand.u32 2147483647, %s4322_s0 }
 0x758   :  { %s2216_s25 = ssub.f32 0.0, %s2215_s1  ;;  %s2214_s22 = smin.f32 %s3373_s6, %s4322_s0 }
 0x75a   :  { %v2217_v48 = vstv %s2216_s25 }
 0x75b   :  { %v2218_v12 = vmul.f32 1.442695, %v2217_v48 }
 0x75d   :  { %3189 = vpow2.f32 %v2218_v12  ;;  %v2440_v12 = vadd.f32 %v2439_v21, %v2438_v14 }
 0x75f   :  { %v2441_v24 = vrot.slane %v2440_v12, 1 }
 0x761   :  { %v2442_v43 = vadd.f32 %v2441_v24, %v2440_v12 }
 0x763   :  { %v3190_v17 = vpop.eup %3189 }
 0x764   :  { %3048 = vpush %v3190_v17 }
 0x795   :  { %s3049_s16 = spop %3048 }
 0x796   :  { %v2221_v60 = vstv %s3049_s16 }
 0x797   :  { %v2222_v45 = vadd.f32 1.0, %v2221_v60  ;;  %v2225_v46 = vmul.f32 -0.5, %v2221_v60  ;;  %v2228_v36 = vand.u32 2147483647, %v2221_v60 }
 0x799   :  { %3191 = vlog2.f32 %v2222_v45  ;;  %v2226_v52 = vadd.f32 1.0, %v2225_v46  ;;  %vm2229_vm6 = vcmp.lt.f32.partialorder %v2228_v36, 0.0004427343  ;;  %v3374_v46 = vmov 8.0  }
 0x79b   :  { %v2227_v40 = vmul.f32 %v2226_v52, %v2221_v60  ;;  %v2556_v52 = vrot.slane %v2555_v47, 4 }
 0x79d   :  { %v2557_v59 = vadd.f32 %v2556_v52, %v2555_v47 }
 0x79f   :  { %v3192_v54 = vpop.eup %3191  ;;  %v2558_v58 = vrot.slane %v2557_v59, 2 }
 0x7a0   :  { %v2224_v56 = vmul.f32 0.6931472, %v3192_v54  ;;  %v2580_v54 = vadd.f32 %v2579_v16, %v2578_v51 }
 0x7a2   :  { %v2230_v61 = vsel %vm2229_vm6, %v2227_v40, %v2224_v56  ;;  %v2535_v40 = vrot.slane %v2534_v53, 2 }
 0x7a3   :  { %3050 = vpush %v2230_v61  ;;  %v2581_v61 = vrot.slane %v2580_v54, 2 }
 0x7a4   :  { %3052 = vpush %v2254_v8 }
 0x7a5   :  { %3054 = vpush %v2277_v44 }
 0x7a6   :  { %3056 = vpush %v2300_v26  ;;  %v2536_v26 = vadd.f32 %v2535_v40, %v2534_v53 }
 0x7a7   :  { %3058 = vpush %v2354_v57  ;;  %v2559_v57 = vadd.f32 %v2558_v58, %v2557_v59 }
 0x7a8   :  { %v2537_v2 = vrot.slane %v2536_v26, 1 }
 0x7a9   :  { %v2560_v1 = vrot.slane %v2559_v57, 1 }
 0x7aa   :  { %v2538_v31 = vadd.f32 %v2537_v2, %v2536_v26 }
 0x7ab   :  { %v2561_v14 = vadd.f32 %v2560_v1, %v2559_v57 }
 0x7d4   :  { %s3051_s2 = spop %3050 }
 0x7d5   :  { %s2232_s28 = ssub.f32 %s2214_s22, %s3051_s2  ;;  %s4332_s29 = spop %3052 }
 0x7d6   :  { %s2256_s11 = sadd.f32 %s4332_s29, %s4312_s14  ;;  %s4336_s13 = spop %3054 }
 0x7d7   :  { %s4339_s30 = sadd.f32 %s2232_s28, %s4315_s8  ;;  %s4341_s17 = spop %3056 }
 0x7d8   :  { %s2279_s18 = sadd.f32 %s4336_s13, %s4320_s24  ;;  %s4345_s27 = spop %3058 }
 0x7d9   :  { %s2302_s3 = sadd.f32 %s4341_s17, %s4327_s21  ;;  %s2357_s7 = sand.u32 2147483647, %s4345_s27 }
 0x7da   :  { %s2358_s5 = ssub.f32 0.0, %s2357_s7  ;;  %s2356_s26 = smin.f32 %s3373_s6, %s4345_s27 }
 0x7dc   :  { %v2359_v9 = vstv %s2358_s5 }
 0x7dd   :  { %v2360_v10 = vmul.f32 1.442695, %v2359_v9  ;;  %v2582_v9 = vadd.f32 %v2581_v61, %v2580_v54 }
 0x7df   :  { %3193 = vpow2.f32 %v2360_v10  ;;  %v2583_v42 = vrot.slane %v2582_v9, 1 }
 0x7e1   :  { %v2584_v18 = vadd.f32 %v2583_v42, %v2582_v9 }
 0x7e5   :  { %v3194_v7 = vpop.eup %3193 }
 0x7e6   :  { %3060 = vpush %v3194_v7 }
 0x817   :  { %s3061_s23 = spop %3060 }
 0x818   :  { %v2363_v20 = vstv %s3061_s23 }
 0x819   :  { %v2364_v49 = vadd.f32 1.0, %v2363_v20  ;;  %v2367_v25 = vmul.f32 -0.5, %v2363_v20  ;;  %v2370_v17 = vand.u32 2147483647, %v2363_v20 }
 0x81b   :  { %3195 = vlog2.f32 %v2364_v49  ;;  %v2368_v48 = vadd.f32 1.0, %v2367_v25  ;;  %vm2371_vm7 = vcmp.lt.f32.partialorder %v2370_v17, 0.0004427343 }
 0x81d   :  { %v2369_v38 = vmul.f32 %v2368_v48, %v2363_v20  ;;  %v3375_v20 = vmov 2.0  }
 0x821   :  { %v3196_v34 = vpop.eup %3195 }
 0x822   :  { %v2366_v35 = vmul.f32 0.6931472, %v3196_v34 }
 0x824   :  { %v2372_v39 = vsel %vm2371_vm7, %v2369_v38, %v2366_v35 }
 0x825   :  { %3062 = vpush %v2372_v39 }
 0x826   :  { %3064 = vpush %v2396_v23 }
 0x827   :  { %3066 = vpush %v2419_v41 }
 0x828   :  { %3068 = vpush %v2442_v43 }
 0x829   :  { %3070 = vpush %v2496_v15 }
 0x856   :  { %s3063_s4 = spop %3062 }
 0x857   :  { %s2374_s10 = ssub.f32 %s2356_s26, %s3063_s4  ;;  %s3065_s15 = spop %3064 }
 0x858   :  { %s4355_s12 = sadd.f32 %s3065_s15, %s2256_s11  ;;  %s3067_s19 = spop %3066 }
 0x859   :  { %s4358_s8 = sadd.f32 %s2374_s10, %s4339_s30  ;;  %s3069_s20 = spop %3068 }
 0x85a   :  { %s4363_s0 = sadd.f32 %s3067_s19, %s2279_s18  ;;  %s4365_s1 = spop %3070 }
 0x85b   :  { %s4370_s25 = sadd.f32 %s3069_s20, %s2302_s3  ;;  %s2499_s16 = sand.u32 2147483647, %s4365_s1 }
 0x85c   :  { %s2500_s22 = ssub.f32 0.0, %s2499_s16  ;;  %s2498_s24 = smin.f32 %s3373_s6, %s4365_s1 }
 0x85d   :  { %s2640_s19 = sshll.u32 %s4395_s9, 4  ;;  %s2641_s19 = int_to_ptr.hbm [resolvable:$true] %s2640_s19 }
 0x85e   :  { %v2501_v60 = vstv %s2500_s22 }
 0x85f   :  { %v2502_v3 = vmul.f32 1.442695, %v2501_v60 }
 0x861   :  { %3197 = vpow2.f32 %v2502_v3 }
 0x862   :  { %3199 = vrcp.f32 %v3374_v46 }
 0x867   :  { %v3198_v45 = vpop.eup %3197 }
 0x868   :  { %3072 = vpush %v3198_v45  ;;  %v3200_v36 = vpop.eup %3199 }
 0x869   :  { %v2589_v55 = vmul.f32 8.0, %v3200_v36  ;;  %vm2593_vm9 = vweird.f32 %v3200_v36 }
 0x86b   :  { %v2590_v44 = vsub.f32 1.0, %v2589_v55 }
 0x86d   :  { %v2591_v7 = vmul.f32 %v3200_v36, %v2590_v44 }
 0x86f   :  { %v2592_v0 = vadd.f32 %v3200_v36, %v2591_v7 }
 0x871   :  { %v2594_v6 = vsel %vm2593_vm9, %v3200_v36, %v2592_v0 }
 0x899   :  { %s3073_s14 = spop %3072 }
 0x89a   :  { %v2505_v56 = vstv %s3073_s14 }
 0x89b   :  { %v2506_v50 = vadd.f32 1.0, %v2505_v56  ;;  %v2509_v8 = vmul.f32 -0.5, %v2505_v56  ;;  %v2512_v62 = vand.u32 2147483647, %v2505_v56 }
 0x89d   :  { %3201 = vlog2.f32 %v2506_v50  ;;  %v2510_v10 = vadd.f32 1.0, %v2509_v8  ;;  %vm2513_vm8 = vcmp.lt.f32.partialorder %v2512_v62, 0.0004427343 }
 0x89e   :  { %3203 = vrcp.f32 %v3375_v20 }
 0x89f   :  { %v2511_v63 = vmul.f32 %v2510_v10, %v2505_v56 }
 0x8a3   :  { %v3202_v13 = vpop.eup %3201 }
 0x8a4   :  { %v2508_v4 = vmul.f32 0.6931472, %v3202_v13  ;;  %v3204_v49 = vpop.eup %3203 }
 0x8a5   :  { %v2614_v21 = vmul.f32 2.0, %v3204_v49  ;;  %vm2618_vm10 = vweird.f32 %v3204_v49 }
 0x8a6   :  { %v2514_v22 = vsel %vm2513_vm8, %v2511_v63, %v2508_v4 }
 0x8a7   :  { %3074 = vpush %v2514_v22  ;;  %v2615_v28 = vsub.f32 1.0, %v2614_v21 }
 0x8a8   :  { %3076 = vpush %v2538_v31 }
 0x8a9   :  { %3078 = vpush %v2561_v14  ;;  %v2616_v12 = vmul.f32 %v3204_v49, %v2615_v28 }
 0x8aa   :  { %3080 = vpush %v2584_v18 }
 0x8ab   :  { %3082 = vpush %v2594_v6  ;;  %v2617_v11 = vadd.f32 %v3204_v49, %v2616_v12 }
 0x8ad   :  { %v2619_v35 = vsel %vm2618_vm10, %v3204_v49, %v2617_v11 }
 0x8d8   :  { %s3075_s21 = spop %3074 }
 0x8d9   :  { %s2516_s2 = ssub.f32 %s2498_s24, %s3075_s21  ;;  %s3077_s28 = spop %3076 }
 0x8da   :  { %s2540_s29 = sadd.f32 %s3077_s28, %s4355_s12  ;;  %s3079_s11 = spop %3078 }
 0x8db   :  { %s4377_s13 = sadd.f32 %s2516_s2, %s4358_s8  ;;  %s3081_s30 = spop %3080 }
 0x8dc   :  { %s2563_s17 = sadd.f32 %s3079_s11, %s4363_s0  ;;  %s3083_s6 = spop %3082 }
 0x8dd   :  { %s2586_s18 = sadd.f32 %s3081_s30, %s4370_s25  ;;  %s3376_s0 = smov [#allocation15]  }
 0x8de   :  { %s4381_s27 = sadd.f32 %s2563_s17, %s2540_s29 }
 0x8df   :  { %v2598_v37 = vstv %s2586_s18  ;;  %s2587_s23 = ssub.f32 0.0, %s4377_s13 }
 0x8e0   :  { %3205 = vrsqrt.f32 %v2598_v37  ;;  %vm2606_vm11 = vcmp.eq.f32.partialorder %v2598_v37, inf  ;;  %v2609_v33 = vand.u32 2147483648, %v2598_v37  ;;  %vm2608_vm12 = vcmp.eq.f32.partialorder %v2598_v37, 0.0 }
 0x8e1   :  { %s2596_s10 = smul.f32 %s3083_s6, %s2587_s23 }
 0x8e6   :  { %v3206_v25 = vpop.eup %3205 }
 0x8e7   :  { %v2600_v30 = vmul.f32 %v3206_v25, %v2598_v37 }
 0x8e9   :  { %v2601_v29 = vmul.f32 %v3206_v25, %v2600_v30 }
 0x8eb   :  { %v2602_v48 = vmul.f32 0.5, %v2601_v29 }
 0x8ed   :  { %v2603_v17 = vsub.f32 1.5, %v2602_v48 }
 0x8ef   :  { %v2604_v32 = vmul.f32 %v3206_v25, %v2603_v17 }
 0x8f1   :  { %v2605_v34 = vmul.f32 %v2604_v32, %v2598_v37 }
 0x8f3   :  { %v2607_v38 = vsel %vm2606_vm11, %v2598_v37, %v2605_v34 }
 0x8f4   :  { %v2610_v24 = vsel %vm2608_vm12, %v2609_v33, %v2607_v38 }
 0x8f5   :  { %3084 = vpush %v2610_v24 }
 0x8f6   :  { %3086 = vpush %v2619_v35 }
 0x926   :  { %s3085_s3 = spop %3084 }
 0x927   :  { %s2612_s7 = sadd.f32 %s3085_s3, %s4381_s27  ;;  %s3087_s5 = spop %3086 }
 0x929   :  { %s2621_s26 = smul.f32 %s3087_s5, %s2612_s7 }
 0x92b   :  { %s2622_s4 = smul.f32 0.0001, %s2621_s26 }
 0x92d   :  { %s2631_s8 = smul.f32 %s3083_s6, %s2622_s4 }
 0x92f   :  { %s2632_s20 = sadd.f32 %s2631_s8, %s2596_s10 }
 0x931   :  { %2634 = sst [smem:[#allocation15]] %s2632_s20 }
 0x932   :  { %2643 = dma.smem_to_hbm %s3376_s0, 16, %s2641_s19, [#allocation9]  }
 0x933   :  { %3360 = dma.done.wait [#allocation9], 16  }
 0x934   :  { %3361 = vsyncadd [#allocation9], 4294967280 }
 0x935   :  { %2648 = sfence }
 0x936   :  { %2649 = vsyncpa [#allocation8], 1 }
 0x937   :  { %2650 = vsyncpa [#allocation11], 1 }
 0x938   :  { %2651 = vsyncpa [#allocation14], 1 }
 0x939   :  { %2652 = vsyncpa [#allocation9], 1 }

</bundles_post_ra>
